<compile_context>
chip_gen: v7x
topology: tpu7x:2x2x1
jax: 0.10.0
libtpu: 0.0.40
codegen_flags: <defaults>
</compile_context>

<pallas_src>
import jax
import jax.numpy as jnp
import numpy as np
from jax.experimental import pallas as pl
from jax.experimental.pallas import tpu as pltpu

EPS = 1e-5                    # nn.BatchNorm2d default eps
NEG_SLOPE = 0.2               # nn.LeakyReLU(0.2)
KSIZE = 4
STRIDE = 2
MATMUL_DTYPE = jnp.bfloat16   # MXU operand dtype (accumulation stays f32)


def _out_dim(d):
    return (d - KSIZE) // STRIDE + 1


# ---------------------------------------------------------------------------
# The single fused Pallas kernel
# ---------------------------------------------------------------------------
def _disc_fused_kernel(p1t_ref, w1_ref, w2_ref, s2_ref, w3_ref, s3_ref,
                       g1_ref, b1_ref, g2_ref, b2_ref, bias3_ref, o_ref):
    """Conv->BN->LReLU -> Conv->BN->LReLU -> Conv, one VMEM-resident pass.

    Activations are laid out (C, M): channels on the sublane axis, the flat
    batch/spatial index M = N*OH*OW on the lane axis (lane-dense).
    """

    def bn_lrelu(y, g_ref, b_ref):
        # Training-mode BatchNorm2d over the M axis, folded into a single
        # scale/shift FMA; biased variance via fused E[y^2] - E[y]^2.  f32.
        inv_m = 1.0 / y.shape[1]
        mean = jnp.sum(y, axis=1, keepdims=True) * inv_m
        var = jnp.sum(y * y, axis=1, keepdims=True) * inv_m - mean * mean
        scale = g_ref[...] * jax.lax.rsqrt(var + EPS)
        shift = b_ref[...] - mean * scale
        y = y * scale + shift
        return jnp.where(y >= 0.0, y, NEG_SLOPE * y)       # LeakyReLU(0.2)

    # --- Block 1: Conv1 as one transposed GEMM  (C1, K1) @ (K1, M1) ---------
    # (conv bias dropped: exactly cancelled by the batch-mean subtraction)
    y1 = jnp.dot(w1_ref[...], p1t_ref[...], preferred_element_type=jnp.float32)
    a1 = bn_lrelu(y1, g1_ref, b1_ref).astype(MATMUL_DTYPE)          # (C1, M1)

    # --- Block 2: one concatenated-weight GEMM + k*k selection matmuls ------
    # z2 rows [t*C2:(t+1)*C2] hold w2_tap[t] @ a1; the one-hot selection
    # matrices gather the strided patch columns (in-VMEM im2col, MXU only).
    kk = s2_ref.shape[0]
    c2 = w2_ref.shape[0] // kk
    m2 = s2_ref.shape[2]
    z2 = jnp.dot(w2_ref[...], a1,
                 preferred_element_type=jnp.float32).astype(MATMUL_DTYPE)
    y2 = jnp.zeros((c2, m2), jnp.float32)
    for t in range(kk):                                   # unrolled, static
        y2 = y2 + jnp.dot(z2[t * c2:(t + 1) * c2, :], s2_ref[t],
                          preferred_element_type=jnp.float32)       # (C2, M2)
    a2 = bn_lrelu(y2, g2_ref, b2_ref).astype(MATMUL_DTYPE)          # (C2, M2)

    # --- Block 3 (epilogue): final Conv2d (Cout=1, 1x1 spatial) + bias ------
    # Gather the im2col patch of a2 per tap (one-hot selection matmuls),
    # stack on the sublane axis (32-row chunks, tile-aligned) -> one GEMM.
    cols = [jnp.dot(a2, s3_ref[t],
                    preferred_element_type=jnp.float32).astype(MATMUL_DTYPE)
            for t in range(s3_ref.shape[0])]              # each (C2, N)
    p3 = jnp.concatenate(cols, axis=0)                    # (k*k*C2, N)
    y3 = jnp.dot(w3_ref[...], p3, preferred_element_type=jnp.float32)  # (1, N)
    o_ref[...] = y3 + bias3_ref[...]


# ---------------------------------------------------------------------------
# One-time packing: weight reshapes, BN param packing, selection matrices
# ---------------------------------------------------------------------------
def _make_selection(batch, ih, iw, oh, ow):
    """sel[t, m_in, m_out] = 1 where flat input column m_in feeds kernel tap t
    of flat output column m_out (k=4, stride=2, VALID).  One-hot columns, so
    the in-kernel matmul against it is an exact gather."""
    k, s = KSIZE, STRIDE
    sel = np.zeros((k * k, batch * ih * iw, batch * oh * ow), np.float32)
    for di in range(k):
        for dj in range(k):
            t = di * k + dj
            for b in range(batch):
                for r in range(oh):
                    for c in range(ow):
                        m_in = b * ih * iw + (s * r + di) * iw + (s * c + dj)
                        m_out = b * oh * ow + r * ow + c
                        sel[t, m_in, m_out] = 1.0
    return jnp.asarray(sel, MATMUL_DTYPE)


def pack_params(params, batch, height, width):
    """Precompute all kernel-ready operands once (not per forward call)."""
    k = KSIZE
    w1, w2, w3 = params[0]["w"], params[1]["w"], params[2]["w"]
    c1, c2 = w1.shape[0], w2.shape[0]
    oh1, ow1 = _out_dim(height), _out_dim(width)
    oh2, ow2 = _out_dim(oh1), _out_dim(ow1)
    oh3, ow3 = _out_dim(oh2), _out_dim(ow2)
    return {
        # Conv1 as a (C1, kh*kw*Cin) GEMM operand (K ordered kh, kw, cin).
        "w1": jnp.transpose(w1, (0, 2, 3, 1)).reshape(c1, -1).astype(MATMUL_DTYPE),
        # Conv2: taps stacked on the row axis, row = t*C2 + cout.
        "w2": jnp.transpose(w2, (2, 3, 0, 1)).reshape(k * k * c2, c1).astype(MATMUL_DTYPE),
        # Conv3: fully flattened (1, kh*kw*C2), column = t*C2 + cin.
        "w3": jnp.transpose(w3, (0, 2, 3, 1)).reshape(1, k * k * c2).astype(MATMUL_DTYPE),
        # One-hot column-selection matrices: in-kernel strided patch gather.
        "s2": _make_selection(batch, oh1, ow1, oh2, ow2),
        "s3": _make_selection(batch, oh2, ow2, oh3, ow3),
        # BatchNorm affine params as (C, 1) columns.
        "g1": params[0]["gamma"].reshape(-1, 1).astype(jnp.float32),
        "b1": params[0]["beta"].reshape(-1, 1).astype(jnp.float32),
        "g2": params[1]["gamma"].reshape(-1, 1).astype(jnp.float32),
        "b2": params[1]["beta"].reshape(-1, 1).astype(jnp.float32),
        # Only the final conv keeps its bias (BN-block biases cancel exactly).
        "b3": params[2]["b"].reshape(1, 1).astype(jnp.float32),
    }


# ---------------------------------------------------------------------------
# Forward pass: one pallas_call for the whole discriminator
# ---------------------------------------------------------------------------
def discriminator_forward(packed, x_nchw):
    n, c, h, w = x_nchw.shape
    k, s = KSIZE, STRIDE
    oh1, ow1 = _out_dim(h), _out_dim(w)

    # Layer-1 im2col, already in transposed (K, M) = (kh*kw*Cin, N*OH*OW) form.
    # TODO(synk): this first patch gather (pure data movement, ~20 KiB here)
    # stays in the XLA wrapper; layers 2 and 3 gather patches inside the kernel.
    x = jnp.transpose(x_nchw, (0, 2, 3, 1))                        # NHWC
    cols = [x[:, di:di + s * oh1:s, dj:dj + s * ow1:s, :]
            for di in range(k) for dj in range(k)]                 # (N,OH1,OW1,C)
    p1t = jnp.transpose(jnp.stack(cols, axis=0), (0, 4, 1, 2, 3))
    p1t = p1t.reshape(k * k * c, n * oh1 * ow1).astype(MATMUL_DTYPE)

    vmem = pl.BlockSpec(memory_space=pltpu.MemorySpace.VMEM)
    # TODO(synk): single-block kernel (no grid) is the right call at these toy
    # sizes; for large batches add an M-tile grid with two-pass BN stats,
    # dimension_semantics=("parallel",) and an explicit vmem_limit_bytes.
    out = pl.pallas_call(
        _disc_fused_kernel,
        out_shape=jax.ShapeDtypeStruct((1, n), jnp.float32),
        in_specs=[vmem] * 11,
        out_specs=vmem,
    )(p1t, packed["w1"], packed["w2"], packed["s2"], packed["w3"],
      packed["s3"], packed["g1"], packed["b1"], packed["g2"], packed["b2"],
      packed["b3"])

    return jnp.transpose(out)      # (N, 1): matches predict.view(len(x), -1)


# ---------------------------------------------------------------------------
# Parameter init (deterministic, PyTorch-shaped) and pure-JAX reference
# ---------------------------------------------------------------------------
def init_params(key, image_channel=1, hidden_dims=16):
    layer_dims = [(hidden_dims, image_channel),
                  (hidden_dims * 2, hidden_dims),
                  (1, hidden_dims * 2)]
    params = []
    for i, (co, ci) in enumerate(layer_dims):
        key, kw, kb = jax.random.split(key, 3)
        fan_in = ci * KSIZE * KSIZE
        bound = 1.0 / (fan_in ** 0.5)
        layer = {
            "w": jax.random.uniform(kw, (co, ci, KSIZE, KSIZE), jnp.float32,
                                    -bound, bound),
            "b": jax.random.uniform(kb, (co,), jnp.float32, -bound, bound),
        }
        if i < 2:   # BN affine params, PyTorch defaults (gamma=1, beta=0)
            layer["gamma"] = jnp.ones((co,), jnp.float32)
            layer["beta"] = jnp.zeros((co,), jnp.float32)
        params.append(layer)
    return params


def reference_forward(params, x_nchw):
    def conv(x, w, b):
        y = jax.lax.conv_general_dilated(
            x, w, window_strides=(STRIDE, STRIDE), padding="VALID",
            dimension_numbers=("NCHW", "OIHW", "NCHW"),
            precision=jax.lax.Precision.HIGHEST)
        return y + b.reshape(1, -1, 1, 1)

    def bn_lrelu(y, gamma, beta):
        mean = jnp.mean(y, axis=(0, 2, 3), keepdims=True)
        var = jnp.mean((y - mean) ** 2, axis=(0, 2, 3), keepdims=True)
        y = (y - mean) / jnp.sqrt(var + EPS)
        y = y * gamma.reshape(1, -1, 1, 1) + beta.reshape(1, -1, 1, 1)
        return jnp.where(y >= 0, y, NEG_SLOPE * y)

    y = bn_lrelu(conv(x_nchw, params[0]["w"], params[0]["b"]),
                 params[0]["gamma"], params[0]["beta"])
    y = bn_lrelu(conv(y, params[1]["w"], params[1]["b"]),
                 params[1]["gamma"], params[1]["beta"])
    y = conv(y, params[2]["w"], params[2]["b"])
    return y.reshape(x_nchw.shape[0], -1)


if __name__ == "__main__":
    key = jax.random.PRNGKey(0)
    key, kx, kp = jax.random.split(key, 3)

    # MNIST-like input: batch=2, channels=1, 28x28 (spatial: 28 -> 13 -> 5 -> 1).
    x = jax.random.normal(kx, (2, 1, 28, 28), jnp.float32)
    params = init_params(kp, image_channel=1, hidden_dims=16)
    packed = pack_params(params, batch=2, height=28, width=28)

    fwd = jax.jit(discriminator_forward)
    out = jax.block_until_ready(fwd(packed, x))
    ref = jax.block_until_ready(reference_forward(params, x))

    assert out.shape == (2, 1), out.shape
    err = float(jnp.max(jnp.abs(out - ref)))
    # bf16 MXU operands vs. a Precision.HIGHEST f32 reference: expect ~1e-2
    # scale drift through the 3 GEMMs + 2 batch-norms, well inside 5e-2.
    assert err < 5e-2, err
    print("KERNEL_OK")
</pallas_src>

<mosaic_0001>
module attributes {stable_mosaic.version = 11 : i64} {
  func.func @_disc_fused_kernel(%arg0: memref<16x338xbf16, #tpu.memory_space<vmem>>, %arg1: memref<16x16xbf16, #tpu.memory_space<vmem>>, %arg2: memref<512x16xbf16, #tpu.memory_space<vmem>>, %arg3: memref<16x338x50xbf16, #tpu.memory_space<vmem>>, %arg4: memref<1x512xbf16, #tpu.memory_space<vmem>>, %arg5: memref<16x50x2xbf16, #tpu.memory_space<vmem>>, %arg6: memref<16x1xf32, #tpu.memory_space<vmem>>, %arg7: memref<16x1xf32, #tpu.memory_space<vmem>>, %arg8: memref<32x1xf32, #tpu.memory_space<vmem>>, %arg9: memref<32x1xf32, #tpu.memory_space<vmem>>, %arg10: memref<1x1xf32, #tpu.memory_space<vmem>>, %arg11: memref<1x2xf32, #tpu.memory_space<vmem>>) attributes {dimension_semantics = [], scalar_prefetch = 0 : i64, scratch_operands = 0 : i64, tpu.core_type = #tpu.core_type<tc>} {
    %c0 = arith.constant 0 : index
    %c0_0 = arith.constant 0 : index
    %0 = vector.load %arg1[%c0, %c0_0] : memref<16x16xbf16, #tpu.memory_space<vmem>>, vector<16x16xbf16>
    %c0_1 = arith.constant 0 : index
    %c0_2 = arith.constant 0 : index
    %1 = vector.load %arg0[%c0_1, %c0_2] : memref<16x338xbf16, #tpu.memory_space<vmem>>, vector<16x338xbf16>
    %cst = arith.constant dense<0.000000e+00> : vector<16x338xf32>
    %2 = tpu.matmul %0, %1, %cst {dimension_numbers = #tpu.dot_dimension_numbers<[1], [0], [0], [1], [0, 0, 1, 1], [], []>} : vector<16x16xbf16>, vector<16x338xbf16>, vector<16x338xf32> -> vector<16x338xf32>
    %cst_3 = arith.constant dense<0.000000e+00> : vector<16xf32>
    %3 = vector.multi_reduction <add>, %2, %cst_3 [1] : vector<16x338xf32> to vector<16xf32>
    %4 = vector.shape_cast %3 : vector<16xf32> to vector<16x1xf32>
    %cst_4 = arith.constant 2.958580e-03 : f32
    %5 = vector.broadcast %cst_4 : f32 to vector<16x1xf32>
    %6 = arith.mulf %4, %5 : vector<16x1xf32>
    %7 = arith.mulf %2, %2 : vector<16x338xf32>
    %cst_5 = arith.constant dense<0.000000e+00> : vector<16xf32>
    %8 = vector.multi_reduction <add>, %7, %cst_5 [1] : vector<16x338xf32> to vector<16xf32>
    %9 = vector.shape_cast %8 : vector<16xf32> to vector<16x1xf32>
    %cst_6 = arith.constant 2.958580e-03 : f32
    %10 = vector.broadcast %cst_6 : f32 to vector<16x1xf32>
    %11 = arith.mulf %9, %10 : vector<16x1xf32>
    %12 = arith.mulf %6, %6 : vector<16x1xf32>
    %13 = arith.subf %11, %12 : vector<16x1xf32>
    %c0_7 = arith.constant 0 : index
    %c0_8 = arith.constant 0 : index
    %14 = vector.load %arg6[%c0_7, %c0_8] : memref<16x1xf32, #tpu.memory_space<vmem>>, vector<16x1xf32>
    %cst_9 = arith.constant 9.99999974E-6 : f32
    %15 = vector.broadcast %cst_9 : f32 to vector<16x1xf32>
    %16 = arith.addf %13, %15 : vector<16x1xf32>
    %17 = math.rsqrt %16 : vector<16x1xf32>
    %18 = arith.mulf %14, %17 : vector<16x1xf32>
    %c0_10 = arith.constant 0 : index
    %c0_11 = arith.constant 0 : index
    %19 = vector.load %arg7[%c0_10, %c0_11] : memref<16x1xf32, #tpu.memory_space<vmem>>, vector<16x1xf32>
    %20 = arith.mulf %6, %18 : vector<16x1xf32>
    %21 = arith.subf %19, %20 : vector<16x1xf32>
    %22 = vector.broadcast %18 : vector<16x1xf32> to vector<16x338xf32>
    %23 = arith.mulf %2, %22 : vector<16x338xf32>
    %24 = vector.broadcast %21 : vector<16x1xf32> to vector<16x338xf32>
    %25 = arith.addf %23, %24 : vector<16x338xf32>
    %cst_12 = arith.constant 0.000000e+00 : f32
    %26 = vector.broadcast %cst_12 : f32 to vector<16x338xf32>
    %27 = arith.cmpf oge, %25, %26 : vector<16x338xf32>
    %cst_13 = arith.constant 2.000000e-01 : f32
    %28 = vector.broadcast %cst_13 : f32 to vector<16x338xf32>
    %29 = arith.mulf %28, %25 : vector<16x338xf32>
    %30 = arith.select %27, %25, %29 : vector<16x338xi1>, vector<16x338xf32>
    %31 = arith.truncf %30 : vector<16x338xf32> to vector<16x338xbf16>
    %c0_14 = arith.constant 0 : index
    %c0_15 = arith.constant 0 : index
    %32 = vector.load %arg2[%c0_14, %c0_15] : memref<512x16xbf16, #tpu.memory_space<vmem>>, vector<512x16xbf16>
    %cst_16 = arith.constant dense<0.000000e+00> : vector<512x338xf32>
    %33 = tpu.matmul %32, %31, %cst_16 {dimension_numbers = #tpu.dot_dimension_numbers<[1], [0], [0], [1], [0, 0, 1, 1], [], []>} : vector<512x16xbf16>, vector<16x338xbf16>, vector<512x338xf32> -> vector<512x338xf32>
    %34 = arith.truncf %33 : vector<512x338xf32> to vector<512x338xbf16>
    %cst_17 = arith.constant 0.000000e+00 : f32
    %35 = vector.broadcast %cst_17 : f32 to vector<32x50xf32>
    %36 = vector.extract_strided_slice %34 {offsets = [0, 0], sizes = [32, 338], strides = [1, 1]} : vector<512x338xbf16> to vector<32x338xbf16>
    %c0_18 = arith.constant 0 : index
    %c0_19 = arith.constant 0 : index
    %c0_20 = arith.constant 0 : index
    %37 = vector.load %arg3[%c0_18, %c0_19, %c0_20] : memref<16x338x50xbf16, #tpu.memory_space<vmem>>, vector<1x338x50xbf16>
    %38 = vector.shape_cast %37 : vector<1x338x50xbf16> to vector<338x50xbf16>
    %cst_21 = arith.constant dense<0.000000e+00> : vector<32x50xf32>
    %39 = tpu.matmul %36, %38, %cst_21 {dimension_numbers = #tpu.dot_dimension_numbers<[1], [0], [0], [1], [0, 0, 1, 1], [], []>} : vector<32x338xbf16>, vector<338x50xbf16>, vector<32x50xf32> -> vector<32x50xf32>
    %40 = arith.addf %35, %39 : vector<32x50xf32>
    %41 = vector.extract_strided_slice %34 {offsets = [32, 0], sizes = [32, 338], strides = [1, 1]} : vector<512x338xbf16> to vector<32x338xbf16>
    %c1 = arith.constant 1 : index
    %c0_22 = arith.constant 0 : index
    %c0_23 = arith.constant 0 : index
    %42 = vector.load %arg3[%c1, %c0_22, %c0_23] : memref<16x338x50xbf16, #tpu.memory_space<vmem>>, vector<1x338x50xbf16>
    %43 = vector.shape_cast %42 : vector<1x338x50xbf16> to vector<338x50xbf16>
    %cst_24 = arith.constant dense<0.000000e+00> : vector<32x50xf32>
    %44 = tpu.matmul %41, %43, %cst_24 {dimension_numbers = #tpu.dot_dimension_numbers<[1], [0], [0], [1], [0, 0, 1, 1], [], []>} : vector<32x338xbf16>, vector<338x50xbf16>, vector<32x50xf32> -> vector<32x50xf32>
    %45 = arith.addf %40, %44 : vector<32x50xf32>
    %46 = vector.extract_strided_slice %34 {offsets = [64, 0], sizes = [32, 338], strides = [1, 1]} : vector<512x338xbf16> to vector<32x338xbf16>
    %c2 = arith.constant 2 : index
    %c0_25 = arith.constant 0 : index
    %c0_26 = arith.constant 0 : index
    %47 = vector.load %arg3[%c2, %c0_25, %c0_26] : memref<16x338x50xbf16, #tpu.memory_space<vmem>>, vector<1x338x50xbf16>
    %48 = vector.shape_cast %47 : vector<1x338x50xbf16> to vector<338x50xbf16>
    %cst_27 = arith.constant dense<0.000000e+00> : vector<32x50xf32>
    %49 = tpu.matmul %46, %48, %cst_27 {dimension_numbers = #tpu.dot_dimension_numbers<[1], [0], [0], [1], [0, 0, 1, 1], [], []>} : vector<32x338xbf16>, vector<338x50xbf16>, vector<32x50xf32> -> vector<32x50xf32>
    %50 = arith.addf %45, %49 : vector<32x50xf32>
    %51 = vector.extract_strided_slice %34 {offsets = [96, 0], sizes = [32, 338], strides = [1, 1]} : vector<512x338xbf16> to vector<32x338xbf16>
    %c3 = arith.constant 3 : index
    %c0_28 = arith.constant 0 : index
    %c0_29 = arith.constant 0 : index
    %52 = vector.load %arg3[%c3, %c0_28, %c0_29] : memref<16x338x50xbf16, #tpu.memory_space<vmem>>, vector<1x338x50xbf16>
    %53 = vector.shape_cast %52 : vector<1x338x50xbf16> to vector<338x50xbf16>
    %cst_30 = arith.constant dense<0.000000e+00> : vector<32x50xf32>
    %54 = tpu.matmul %51, %53, %cst_30 {dimension_numbers = #tpu.dot_dimension_numbers<[1], [0], [0], [1], [0, 0, 1, 1], [], []>} : vector<32x338xbf16>, vector<338x50xbf16>, vector<32x50xf32> -> vector<32x50xf32>
    %55 = arith.addf %50, %54 : vector<32x50xf32>
    %56 = vector.extract_strided_slice %34 {offsets = [128, 0], sizes = [32, 338], strides = [1, 1]} : vector<512x338xbf16> to vector<32x338xbf16>
    %c4 = arith.constant 4 : index
    %c0_31 = arith.constant 0 : index
    %c0_32 = arith.constant 0 : index
    %57 = vector.load %arg3[%c4, %c0_31, %c0_32] : memref<16x338x50xbf16, #tpu.memory_space<vmem>>, vector<1x338x50xbf16>
    %58 = vector.shape_cast %57 : vector<1x338x50xbf16> to vector<338x50xbf16>
    %cst_33 = arith.constant dense<0.000000e+00> : vector<32x50xf32>
    %59 = tpu.matmul %56, %58, %cst_33 {dimension_numbers = #tpu.dot_dimension_numbers<[1], [0], [0], [1], [0, 0, 1, 1], [], []>} : vector<32x338xbf16>, vector<338x50xbf16>, vector<32x50xf32> -> vector<32x50xf32>
    %60 = arith.addf %55, %59 : vector<32x50xf32>
    %61 = vector.extract_strided_slice %34 {offsets = [160, 0], sizes = [32, 338], strides = [1, 1]} : vector<512x338xbf16> to vector<32x338xbf16>
    %c5 = arith.constant 5 : index
    %c0_34 = arith.constant 0 : index
    %c0_35 = arith.constant 0 : index
    %62 = vector.load %arg3[%c5, %c0_34, %c0_35] : memref<16x338x50xbf16, #tpu.memory_space<vmem>>, vector<1x338x50xbf16>
    %63 = vector.shape_cast %62 : vector<1x338x50xbf16> to vector<338x50xbf16>
    %cst_36 = arith.constant dense<0.000000e+00> : vector<32x50xf32>
    %64 = tpu.matmul %61, %63, %cst_36 {dimension_numbers = #tpu.dot_dimension_numbers<[1], [0], [0], [1], [0, 0, 1, 1], [], []>} : vector<32x338xbf16>, vector<338x50xbf16>, vector<32x50xf32> -> vector<32x50xf32>
    %65 = arith.addf %60, %64 : vector<32x50xf32>
    %66 = vector.extract_strided_slice %34 {offsets = [192, 0], sizes = [32, 338], strides = [1, 1]} : vector<512x338xbf16> to vector<32x338xbf16>
    %c6 = arith.constant 6 : index
    %c0_37 = arith.constant 0 : index
    %c0_38 = arith.constant 0 : index
    %67 = vector.load %arg3[%c6, %c0_37, %c0_38] : memref<16x338x50xbf16, #tpu.memory_space<vmem>>, vector<1x338x50xbf16>
    %68 = vector.shape_cast %67 : vector<1x338x50xbf16> to vector<338x50xbf16>
    %cst_39 = arith.constant dense<0.000000e+00> : vector<32x50xf32>
    %69 = tpu.matmul %66, %68, %cst_39 {dimension_numbers = #tpu.dot_dimension_numbers<[1], [0], [0], [1], [0, 0, 1, 1], [], []>} : vector<32x338xbf16>, vector<338x50xbf16>, vector<32x50xf32> -> vector<32x50xf32>
    %70 = arith.addf %65, %69 : vector<32x50xf32>
    %71 = vector.extract_strided_slice %34 {offsets = [224, 0], sizes = [32, 338], strides = [1, 1]} : vector<512x338xbf16> to vector<32x338xbf16>
    %c7 = arith.constant 7 : index
    %c0_40 = arith.constant 0 : index
    %c0_41 = arith.constant 0 : index
    %72 = vector.load %arg3[%c7, %c0_40, %c0_41] : memref<16x338x50xbf16, #tpu.memory_space<vmem>>, vector<1x338x50xbf16>
    %73 = vector.shape_cast %72 : vector<1x338x50xbf16> to vector<338x50xbf16>
    %cst_42 = arith.constant dense<0.000000e+00> : vector<32x50xf32>
    %74 = tpu.matmul %71, %73, %cst_42 {dimension_numbers = #tpu.dot_dimension_numbers<[1], [0], [0], [1], [0, 0, 1, 1], [], []>} : vector<32x338xbf16>, vector<338x50xbf16>, vector<32x50xf32> -> vector<32x50xf32>
    %75 = arith.addf %70, %74 : vector<32x50xf32>
    %76 = vector.extract_strided_slice %34 {offsets = [256, 0], sizes = [32, 338], strides = [1, 1]} : vector<512x338xbf16> to vector<32x338xbf16>
    %c8 = arith.constant 8 : index
    %c0_43 = arith.constant 0 : index
    %c0_44 = arith.constant 0 : index
    %77 = vector.load %arg3[%c8, %c0_43, %c0_44] : memref<16x338x50xbf16, #tpu.memory_space<vmem>>, vector<1x338x50xbf16>
    %78 = vector.shape_cast %77 : vector<1x338x50xbf16> to vector<338x50xbf16>
    %cst_45 = arith.constant dense<0.000000e+00> : vector<32x50xf32>
    %79 = tpu.matmul %76, %78, %cst_45 {dimension_numbers = #tpu.dot_dimension_numbers<[1], [0], [0], [1], [0, 0, 1, 1], [], []>} : vector<32x338xbf16>, vector<338x50xbf16>, vector<32x50xf32> -> vector<32x50xf32>
    %80 = arith.addf %75, %79 : vector<32x50xf32>
    %81 = vector.extract_strided_slice %34 {offsets = [288, 0], sizes = [32, 338], strides = [1, 1]} : vector<512x338xbf16> to vector<32x338xbf16>
    %c9 = arith.constant 9 : index
    %c0_46 = arith.constant 0 : index
    %c0_47 = arith.constant 0 : index
    %82 = vector.load %arg3[%c9, %c0_46, %c0_47] : memref<16x338x50xbf16, #tpu.memory_space<vmem>>, vector<1x338x50xbf16>
    %83 = vector.shape_cast %82 : vector<1x338x50xbf16> to vector<338x50xbf16>
    %cst_48 = arith.constant dense<0.000000e+00> : vector<32x50xf32>
    %84 = tpu.matmul %81, %83, %cst_48 {dimension_numbers = #tpu.dot_dimension_numbers<[1], [0], [0], [1], [0, 0, 1, 1], [], []>} : vector<32x338xbf16>, vector<338x50xbf16>, vector<32x50xf32> -> vector<32x50xf32>
    %85 = arith.addf %80, %84 : vector<32x50xf32>
    %86 = vector.extract_strided_slice %34 {offsets = [320, 0], sizes = [32, 338], strides = [1, 1]} : vector<512x338xbf16> to vector<32x338xbf16>
    %c10 = arith.constant 10 : index
    %c0_49 = arith.constant 0 : index
    %c0_50 = arith.constant 0 : index
    %87 = vector.load %arg3[%c10, %c0_49, %c0_50] : memref<16x338x50xbf16, #tpu.memory_space<vmem>>, vector<1x338x50xbf16>
    %88 = vector.shape_cast %87 : vector<1x338x50xbf16> to vector<338x50xbf16>
    %cst_51 = arith.constant dense<0.000000e+00> : vector<32x50xf32>
    %89 = tpu.matmul %86, %88, %cst_51 {dimension_numbers = #tpu.dot_dimension_numbers<[1], [0], [0], [1], [0, 0, 1, 1], [], []>} : vector<32x338xbf16>, vector<338x50xbf16>, vector<32x50xf32> -> vector<32x50xf32>
    %90 = arith.addf %85, %89 : vector<32x50xf32>
    %91 = vector.extract_strided_slice %34 {offsets = [352, 0], sizes = [32, 338], strides = [1, 1]} : vector<512x338xbf16> to vector<32x338xbf16>
    %c11 = arith.constant 11 : index
    %c0_52 = arith.constant 0 : index
    %c0_53 = arith.constant 0 : index
    %92 = vector.load %arg3[%c11, %c0_52, %c0_53] : memref<16x338x50xbf16, #tpu.memory_space<vmem>>, vector<1x338x50xbf16>
    %93 = vector.shape_cast %92 : vector<1x338x50xbf16> to vector<338x50xbf16>
    %cst_54 = arith.constant dense<0.000000e+00> : vector<32x50xf32>
    %94 = tpu.matmul %91, %93, %cst_54 {dimension_numbers = #tpu.dot_dimension_numbers<[1], [0], [0], [1], [0, 0, 1, 1], [], []>} : vector<32x338xbf16>, vector<338x50xbf16>, vector<32x50xf32> -> vector<32x50xf32>
    %95 = arith.addf %90, %94 : vector<32x50xf32>
    %96 = vector.extract_strided_slice %34 {offsets = [384, 0], sizes = [32, 338], strides = [1, 1]} : vector<512x338xbf16> to vector<32x338xbf16>
    %c12 = arith.constant 12 : index
    %c0_55 = arith.constant 0 : index
    %c0_56 = arith.constant 0 : index
    %97 = vector.load %arg3[%c12, %c0_55, %c0_56] : memref<16x338x50xbf16, #tpu.memory_space<vmem>>, vector<1x338x50xbf16>
    %98 = vector.shape_cast %97 : vector<1x338x50xbf16> to vector<338x50xbf16>
    %cst_57 = arith.constant dense<0.000000e+00> : vector<32x50xf32>
    %99 = tpu.matmul %96, %98, %cst_57 {dimension_numbers = #tpu.dot_dimension_numbers<[1], [0], [0], [1], [0, 0, 1, 1], [], []>} : vector<32x338xbf16>, vector<338x50xbf16>, vector<32x50xf32> -> vector<32x50xf32>
    %100 = arith.addf %95, %99 : vector<32x50xf32>
    %101 = vector.extract_strided_slice %34 {offsets = [416, 0], sizes = [32, 338], strides = [1, 1]} : vector<512x338xbf16> to vector<32x338xbf16>
    %c13 = arith.constant 13 : index
    %c0_58 = arith.constant 0 : index
    %c0_59 = arith.constant 0 : index
    %102 = vector.load %arg3[%c13, %c0_58, %c0_59] : memref<16x338x50xbf16, #tpu.memory_space<vmem>>, vector<1x338x50xbf16>
    %103 = vector.shape_cast %102 : vector<1x338x50xbf16> to vector<338x50xbf16>
    %cst_60 = arith.constant dense<0.000000e+00> : vector<32x50xf32>
    %104 = tpu.matmul %101, %103, %cst_60 {dimension_numbers = #tpu.dot_dimension_numbers<[1], [0], [0], [1], [0, 0, 1, 1], [], []>} : vector<32x338xbf16>, vector<338x50xbf16>, vector<32x50xf32> -> vector<32x50xf32>
    %105 = arith.addf %100, %104 : vector<32x50xf32>
    %106 = vector.extract_strided_slice %34 {offsets = [448, 0], sizes = [32, 338], strides = [1, 1]} : vector<512x338xbf16> to vector<32x338xbf16>
    %c14 = arith.constant 14 : index
    %c0_61 = arith.constant 0 : index
    %c0_62 = arith.constant 0 : index
    %107 = vector.load %arg3[%c14, %c0_61, %c0_62] : memref<16x338x50xbf16, #tpu.memory_space<vmem>>, vector<1x338x50xbf16>
    %108 = vector.shape_cast %107 : vector<1x338x50xbf16> to vector<338x50xbf16>
    %cst_63 = arith.constant dense<0.000000e+00> : vector<32x50xf32>
    %109 = tpu.matmul %106, %108, %cst_63 {dimension_numbers = #tpu.dot_dimension_numbers<[1], [0], [0], [1], [0, 0, 1, 1], [], []>} : vector<32x338xbf16>, vector<338x50xbf16>, vector<32x50xf32> -> vector<32x50xf32>
    %110 = arith.addf %105, %109 : vector<32x50xf32>
    %111 = vector.extract_strided_slice %34 {offsets = [480, 0], sizes = [32, 338], strides = [1, 1]} : vector<512x338xbf16> to vector<32x338xbf16>
    %c15 = arith.constant 15 : index
    %c0_64 = arith.constant 0 : index
    %c0_65 = arith.constant 0 : index
    %112 = vector.load %arg3[%c15, %c0_64, %c0_65] : memref<16x338x50xbf16, #tpu.memory_space<vmem>>, vector<1x338x50xbf16>
    %113 = vector.shape_cast %112 : vector<1x338x50xbf16> to vector<338x50xbf16>
    %cst_66 = arith.constant dense<0.000000e+00> : vector<32x50xf32>
    %114 = tpu.matmul %111, %113, %cst_66 {dimension_numbers = #tpu.dot_dimension_numbers<[1], [0], [0], [1], [0, 0, 1, 1], [], []>} : vector<32x338xbf16>, vector<338x50xbf16>, vector<32x50xf32> -> vector<32x50xf32>
    %115 = arith.addf %110, %114 : vector<32x50xf32>
    %cst_67 = arith.constant dense<0.000000e+00> : vector<32xf32>
    %116 = vector.multi_reduction <add>, %115, %cst_67 [1] : vector<32x50xf32> to vector<32xf32>
    %117 = vector.shape_cast %116 : vector<32xf32> to vector<32x1xf32>
    %cst_68 = arith.constant 2.000000e-02 : f32
    %118 = vector.broadcast %cst_68 : f32 to vector<32x1xf32>
    %119 = arith.mulf %117, %118 : vector<32x1xf32>
    %120 = arith.mulf %115, %115 : vector<32x50xf32>
    %cst_69 = arith.constant dense<0.000000e+00> : vector<32xf32>
    %121 = vector.multi_reduction <add>, %120, %cst_69 [1] : vector<32x50xf32> to vector<32xf32>
    %122 = vector.shape_cast %121 : vector<32xf32> to vector<32x1xf32>
    %cst_70 = arith.constant 2.000000e-02 : f32
    %123 = vector.broadcast %cst_70 : f32 to vector<32x1xf32>
    %124 = arith.mulf %122, %123 : vector<32x1xf32>
    %125 = arith.mulf %119, %119 : vector<32x1xf32>
    %126 = arith.subf %124, %125 : vector<32x1xf32>
    %c0_71 = arith.constant 0 : index
    %c0_72 = arith.constant 0 : index
    %127 = vector.load %arg8[%c0_71, %c0_72] : memref<32x1xf32, #tpu.memory_space<vmem>>, vector<32x1xf32>
    %cst_73 = arith.constant 9.99999974E-6 : f32
    %128 = vector.broadcast %cst_73 : f32 to vector<32x1xf32>
    %129 = arith.addf %126, %128 : vector<32x1xf32>
    %130 = math.rsqrt %129 : vector<32x1xf32>
    %131 = arith.mulf %127, %130 : vector<32x1xf32>
    %c0_74 = arith.constant 0 : index
    %c0_75 = arith.constant 0 : index
    %132 = vector.load %arg9[%c0_74, %c0_75] : memref<32x1xf32, #tpu.memory_space<vmem>>, vector<32x1xf32>
    %133 = arith.mulf %119, %131 : vector<32x1xf32>
    %134 = arith.subf %132, %133 : vector<32x1xf32>
    %135 = vector.broadcast %131 : vector<32x1xf32> to vector<32x50xf32>
    %136 = arith.mulf %115, %135 : vector<32x50xf32>
    %137 = vector.broadcast %134 : vector<32x1xf32> to vector<32x50xf32>
    %138 = arith.addf %136, %137 : vector<32x50xf32>
    %cst_76 = arith.constant 0.000000e+00 : f32
    %139 = vector.broadcast %cst_76 : f32 to vector<32x50xf32>
    %140 = arith.cmpf oge, %138, %139 : vector<32x50xf32>
    %cst_77 = arith.constant 2.000000e-01 : f32
    %141 = vector.broadcast %cst_77 : f32 to vector<32x50xf32>
    %142 = arith.mulf %141, %138 : vector<32x50xf32>
    %143 = arith.select %140, %138, %142 : vector<32x50xi1>, vector<32x50xf32>
    %144 = arith.truncf %143 : vector<32x50xf32> to vector<32x50xbf16>
    %c0_78 = arith.constant 0 : index
    %c0_79 = arith.constant 0 : index
    %c0_80 = arith.constant 0 : index
    %145 = vector.load %arg5[%c0_78, %c0_79, %c0_80] : memref<16x50x2xbf16, #tpu.memory_space<vmem>>, vector<1x50x2xbf16>
    %146 = vector.shape_cast %145 : vector<1x50x2xbf16> to vector<50x2xbf16>
    %cst_81 = arith.constant dense<0.000000e+00> : vector<32x2xf32>
    %147 = tpu.matmul %144, %146, %cst_81 {dimension_numbers = #tpu.dot_dimension_numbers<[1], [0], [0], [1], [0, 0, 1, 1], [], []>} : vector<32x50xbf16>, vector<50x2xbf16>, vector<32x2xf32> -> vector<32x2xf32>
    %148 = arith.truncf %147 : vector<32x2xf32> to vector<32x2xbf16>
    %c1_82 = arith.constant 1 : index
    %c0_83 = arith.constant 0 : index
    %c0_84 = arith.constant 0 : index
    %149 = vector.load %arg5[%c1_82, %c0_83, %c0_84] : memref<16x50x2xbf16, #tpu.memory_space<vmem>>, vector<1x50x2xbf16>
    %150 = vector.shape_cast %149 : vector<1x50x2xbf16> to vector<50x2xbf16>
    %cst_85 = arith.constant dense<0.000000e+00> : vector<32x2xf32>
    %151 = tpu.matmul %144, %150, %cst_85 {dimension_numbers = #tpu.dot_dimension_numbers<[1], [0], [0], [1], [0, 0, 1, 1], [], []>} : vector<32x50xbf16>, vector<50x2xbf16>, vector<32x2xf32> -> vector<32x2xf32>
    %152 = arith.truncf %151 : vector<32x2xf32> to vector<32x2xbf16>
    %c2_86 = arith.constant 2 : index
    %c0_87 = arith.constant 0 : index
    %c0_88 = arith.constant 0 : index
    %153 = vector.load %arg5[%c2_86, %c0_87, %c0_88] : memref<16x50x2xbf16, #tpu.memory_space<vmem>>, vector<1x50x2xbf16>
    %154 = vector.shape_cast %153 : vector<1x50x2xbf16> to vector<50x2xbf16>
    %cst_89 = arith.constant dense<0.000000e+00> : vector<32x2xf32>
    %155 = tpu.matmul %144, %154, %cst_89 {dimension_numbers = #tpu.dot_dimension_numbers<[1], [0], [0], [1], [0, 0, 1, 1], [], []>} : vector<32x50xbf16>, vector<50x2xbf16>, vector<32x2xf32> -> vector<32x2xf32>
    %156 = arith.truncf %155 : vector<32x2xf32> to vector<32x2xbf16>
    %c3_90 = arith.constant 3 : index
    %c0_91 = arith.constant 0 : index
    %c0_92 = arith.constant 0 : index
    %157 = vector.load %arg5[%c3_90, %c0_91, %c0_92] : memref<16x50x2xbf16, #tpu.memory_space<vmem>>, vector<1x50x2xbf16>
    %158 = vector.shape_cast %157 : vector<1x50x2xbf16> to vector<50x2xbf16>
    %cst_93 = arith.constant dense<0.000000e+00> : vector<32x2xf32>
    %159 = tpu.matmul %144, %158, %cst_93 {dimension_numbers = #tpu.dot_dimension_numbers<[1], [0], [0], [1], [0, 0, 1, 1], [], []>} : vector<32x50xbf16>, vector<50x2xbf16>, vector<32x2xf32> -> vector<32x2xf32>
    %160 = arith.truncf %159 : vector<32x2xf32> to vector<32x2xbf16>
    %c4_94 = arith.constant 4 : index
    %c0_95 = arith.constant 0 : index
    %c0_96 = arith.constant 0 : index
    %161 = vector.load %arg5[%c4_94, %c0_95, %c0_96] : memref<16x50x2xbf16, #tpu.memory_space<vmem>>, vector<1x50x2xbf16>
    %162 = vector.shape_cast %161 : vector<1x50x2xbf16> to vector<50x2xbf16>
    %cst_97 = arith.constant dense<0.000000e+00> : vector<32x2xf32>
    %163 = tpu.matmul %144, %162, %cst_97 {dimension_numbers = #tpu.dot_dimension_numbers<[1], [0], [0], [1], [0, 0, 1, 1], [], []>} : vector<32x50xbf16>, vector<50x2xbf16>, vector<32x2xf32> -> vector<32x2xf32>
    %164 = arith.truncf %163 : vector<32x2xf32> to vector<32x2xbf16>
    %c5_98 = arith.constant 5 : index
    %c0_99 = arith.constant 0 : index
    %c0_100 = arith.constant 0 : index
    %165 = vector.load %arg5[%c5_98, %c0_99, %c0_100] : memref<16x50x2xbf16, #tpu.memory_space<vmem>>, vector<1x50x2xbf16>
    %166 = vector.shape_cast %165 : vector<1x50x2xbf16> to vector<50x2xbf16>
    %cst_101 = arith.constant dense<0.000000e+00> : vector<32x2xf32>
    %167 = tpu.matmul %144, %166, %cst_101 {dimension_numbers = #tpu.dot_dimension_numbers<[1], [0], [0], [1], [0, 0, 1, 1], [], []>} : vector<32x50xbf16>, vector<50x2xbf16>, vector<32x2xf32> -> vector<32x2xf32>
    %168 = arith.truncf %167 : vector<32x2xf32> to vector<32x2xbf16>
    %c6_102 = arith.constant 6 : index
    %c0_103 = arith.constant 0 : index
    %c0_104 = arith.constant 0 : index
    %169 = vector.load %arg5[%c6_102, %c0_103, %c0_104] : memref<16x50x2xbf16, #tpu.memory_space<vmem>>, vector<1x50x2xbf16>
    %170 = vector.shape_cast %169 : vector<1x50x2xbf16> to vector<50x2xbf16>
    %cst_105 = arith.constant dense<0.000000e+00> : vector<32x2xf32>
    %171 = tpu.matmul %144, %170, %cst_105 {dimension_numbers = #tpu.dot_dimension_numbers<[1], [0], [0], [1], [0, 0, 1, 1], [], []>} : vector<32x50xbf16>, vector<50x2xbf16>, vector<32x2xf32> -> vector<32x2xf32>
    %172 = arith.truncf %171 : vector<32x2xf32> to vector<32x2xbf16>
    %c7_106 = arith.constant 7 : index
    %c0_107 = arith.constant 0 : index
    %c0_108 = arith.constant 0 : index
    %173 = vector.load %arg5[%c7_106, %c0_107, %c0_108] : memref<16x50x2xbf16, #tpu.memory_space<vmem>>, vector<1x50x2xbf16>
    %174 = vector.shape_cast %173 : vector<1x50x2xbf16> to vector<50x2xbf16>
    %cst_109 = arith.constant dense<0.000000e+00> : vector<32x2xf32>
    %175 = tpu.matmul %144, %174, %cst_109 {dimension_numbers = #tpu.dot_dimension_numbers<[1], [0], [0], [1], [0, 0, 1, 1], [], []>} : vector<32x50xbf16>, vector<50x2xbf16>, vector<32x2xf32> -> vector<32x2xf32>
    %176 = arith.truncf %175 : vector<32x2xf32> to vector<32x2xbf16>
    %c8_110 = arith.constant 8 : index
    %c0_111 = arith.constant 0 : index
    %c0_112 = arith.constant 0 : index
    %177 = vector.load %arg5[%c8_110, %c0_111, %c0_112] : memref<16x50x2xbf16, #tpu.memory_space<vmem>>, vector<1x50x2xbf16>
    %178 = vector.shape_cast %177 : vector<1x50x2xbf16> to vector<50x2xbf16>
    %cst_113 = arith.constant dense<0.000000e+00> : vector<32x2xf32>
    %179 = tpu.matmul %144, %178, %cst_113 {dimension_numbers = #tpu.dot_dimension_numbers<[1], [0], [0], [1], [0, 0, 1, 1], [], []>} : vector<32x50xbf16>, vector<50x2xbf16>, vector<32x2xf32> -> vector<32x2xf32>
    %180 = arith.truncf %179 : vector<32x2xf32> to vector<32x2xbf16>
    %c9_114 = arith.constant 9 : index
    %c0_115 = arith.constant 0 : index
    %c0_116 = arith.constant 0 : index
    %181 = vector.load %arg5[%c9_114, %c0_115, %c0_116] : memref<16x50x2xbf16, #tpu.memory_space<vmem>>, vector<1x50x2xbf16>
    %182 = vector.shape_cast %181 : vector<1x50x2xbf16> to vector<50x2xbf16>
    %cst_117 = arith.constant dense<0.000000e+00> : vector<32x2xf32>
    %183 = tpu.matmul %144, %182, %cst_117 {dimension_numbers = #tpu.dot_dimension_numbers<[1], [0], [0], [1], [0, 0, 1, 1], [], []>} : vector<32x50xbf16>, vector<50x2xbf16>, vector<32x2xf32> -> vector<32x2xf32>
    %184 = arith.truncf %183 : vector<32x2xf32> to vector<32x2xbf16>
    %c10_118 = arith.constant 10 : index
    %c0_119 = arith.constant 0 : index
    %c0_120 = arith.constant 0 : index
    %185 = vector.load %arg5[%c10_118, %c0_119, %c0_120] : memref<16x50x2xbf16, #tpu.memory_space<vmem>>, vector<1x50x2xbf16>
    %186 = vector.shape_cast %185 : vector<1x50x2xbf16> to vector<50x2xbf16>
    %cst_121 = arith.constant dense<0.000000e+00> : vector<32x2xf32>
    %187 = tpu.matmul %144, %186, %cst_121 {dimension_numbers = #tpu.dot_dimension_numbers<[1], [0], [0], [1], [0, 0, 1, 1], [], []>} : vector<32x50xbf16>, vector<50x2xbf16>, vector<32x2xf32> -> vector<32x2xf32>
    %188 = arith.truncf %187 : vector<32x2xf32> to vector<32x2xbf16>
    %c11_122 = arith.constant 11 : index
    %c0_123 = arith.constant 0 : index
    %c0_124 = arith.constant 0 : index
    %189 = vector.load %arg5[%c11_122, %c0_123, %c0_124] : memref<16x50x2xbf16, #tpu.memory_space<vmem>>, vector<1x50x2xbf16>
    %190 = vector.shape_cast %189 : vector<1x50x2xbf16> to vector<50x2xbf16>
    %cst_125 = arith.constant dense<0.000000e+00> : vector<32x2xf32>
    %191 = tpu.matmul %144, %190, %cst_125 {dimension_numbers = #tpu.dot_dimension_numbers<[1], [0], [0], [1], [0, 0, 1, 1], [], []>} : vector<32x50xbf16>, vector<50x2xbf16>, vector<32x2xf32> -> vector<32x2xf32>
    %192 = arith.truncf %191 : vector<32x2xf32> to vector<32x2xbf16>
    %c12_126 = arith.constant 12 : index
    %c0_127 = arith.constant 0 : index
    %c0_128 = arith.constant 0 : index
    %193 = vector.load %arg5[%c12_126, %c0_127, %c0_128] : memref<16x50x2xbf16, #tpu.memory_space<vmem>>, vector<1x50x2xbf16>
    %194 = vector.shape_cast %193 : vector<1x50x2xbf16> to vector<50x2xbf16>
    %cst_129 = arith.constant dense<0.000000e+00> : vector<32x2xf32>
    %195 = tpu.matmul %144, %194, %cst_129 {dimension_numbers = #tpu.dot_dimension_numbers<[1], [0], [0], [1], [0, 0, 1, 1], [], []>} : vector<32x50xbf16>, vector<50x2xbf16>, vector<32x2xf32> -> vector<32x2xf32>
    %196 = arith.truncf %195 : vector<32x2xf32> to vector<32x2xbf16>
    %c13_130 = arith.constant 13 : index
    %c0_131 = arith.constant 0 : index
    %c0_132 = arith.constant 0 : index
    %197 = vector.load %arg5[%c13_130, %c0_131, %c0_132] : memref<16x50x2xbf16, #tpu.memory_space<vmem>>, vector<1x50x2xbf16>
    %198 = vector.shape_cast %197 : vector<1x50x2xbf16> to vector<50x2xbf16>
    %cst_133 = arith.constant dense<0.000000e+00> : vector<32x2xf32>
    %199 = tpu.matmul %144, %198, %cst_133 {dimension_numbers = #tpu.dot_dimension_numbers<[1], [0], [0], [1], [0, 0, 1, 1], [], []>} : vector<32x50xbf16>, vector<50x2xbf16>, vector<32x2xf32> -> vector<32x2xf32>
    %200 = arith.truncf %199 : vector<32x2xf32> to vector<32x2xbf16>
    %c14_134 = arith.constant 14 : index
    %c0_135 = arith.constant 0 : index
    %c0_136 = arith.constant 0 : index
    %201 = vector.load %arg5[%c14_134, %c0_135, %c0_136] : memref<16x50x2xbf16, #tpu.memory_space<vmem>>, vector<1x50x2xbf16>
    %202 = vector.shape_cast %201 : vector<1x50x2xbf16> to vector<50x2xbf16>
    %cst_137 = arith.constant dense<0.000000e+00> : vector<32x2xf32>
    %203 = tpu.matmul %144, %202, %cst_137 {dimension_numbers = #tpu.dot_dimension_numbers<[1], [0], [0], [1], [0, 0, 1, 1], [], []>} : vector<32x50xbf16>, vector<50x2xbf16>, vector<32x2xf32> -> vector<32x2xf32>
    %204 = arith.truncf %203 : vector<32x2xf32> to vector<32x2xbf16>
    %c15_138 = arith.constant 15 : index
    %c0_139 = arith.constant 0 : index
    %c0_140 = arith.constant 0 : index
    %205 = vector.load %arg5[%c15_138, %c0_139, %c0_140] : memref<16x50x2xbf16, #tpu.memory_space<vmem>>, vector<1x50x2xbf16>
    %206 = vector.shape_cast %205 : vector<1x50x2xbf16> to vector<50x2xbf16>
    %cst_141 = arith.constant dense<0.000000e+00> : vector<32x2xf32>
    %207 = tpu.matmul %144, %206, %cst_141 {dimension_numbers = #tpu.dot_dimension_numbers<[1], [0], [0], [1], [0, 0, 1, 1], [], []>} : vector<32x50xbf16>, vector<50x2xbf16>, vector<32x2xf32> -> vector<32x2xf32>
    %208 = arith.truncf %207 : vector<32x2xf32> to vector<32x2xbf16>
    %209 = tpu.concatenate %148, %152, %156, %160, %164, %168, %172, %176, %180, %184, %188, %192, %196, %200, %204, %208 in 0 : vector<32x2xbf16>, vector<32x2xbf16>, vector<32x2xbf16>, vector<32x2xbf16>, vector<32x2xbf16>, vector<32x2xbf16>, vector<32x2xbf16>, vector<32x2xbf16>, vector<32x2xbf16>, vector<32x2xbf16>, vector<32x2xbf16>, vector<32x2xbf16>, vector<32x2xbf16>, vector<32x2xbf16>, vector<32x2xbf16>, vector<32x2xbf16> -> vector<512x2xbf16>
    %c0_142 = arith.constant 0 : index
    %c0_143 = arith.constant 0 : index
    %210 = vector.load %arg4[%c0_142, %c0_143] : memref<1x512xbf16, #tpu.memory_space<vmem>>, vector<1x512xbf16>
    %cst_144 = arith.constant dense<0.000000e+00> : vector<1x2xf32>
    %211 = tpu.matmul %210, %209, %cst_144 {dimension_numbers = #tpu.dot_dimension_numbers<[1], [0], [0], [1], [0, 0, 1, 1], [], []>} : vector<1x512xbf16>, vector<512x2xbf16>, vector<1x2xf32> -> vector<1x2xf32>
    %c0_145 = arith.constant 0 : index
    %c0_146 = arith.constant 0 : index
    %212 = vector.load %arg10[%c0_145, %c0_146] : memref<1x1xf32, #tpu.memory_space<vmem>>, vector<1x1xf32>
    %213 = vector.broadcast %212 : vector<1x1xf32> to vector<1x2xf32>
    %214 = arith.addf %211, %213 : vector<1x2xf32>
    %c0_147 = arith.constant 0 : index
    %c0_148 = arith.constant 0 : index
    %215 = vector.load %arg11[%c0_147, %c0_148] : memref<1x2xf32, #tpu.memory_space<vmem>>, vector<1x2xf32>
    tpu.vector_store %arg11[%c0_147, %c0_148], %214 {strides = array<i32>} : memref<1x2xf32, #tpu.memory_space<vmem>>, vector<1x2xf32>,
    return
  }
}

</mosaic_0001>

<bundles_post_ra>
// kernel: discriminator_forward.1
= control target key start
LH: loop header
LB: loop body
LE: loop exit
PB: predicated region body
PF: predicated region fallthrough
CT: control target
= control target key end

     0   :  { %s13460_s0 = inlined_call_operand.vmem [shape: bf16[16,338], index: 0, kind: input, shape index: {}]   ;;  %s13461_s1 = inlined_call_operand.vmem [shape: bf16[16,16], index: 1, kind: input, shape index: {}]   ;;  %s13462_s2 = inlined_call_operand.vmem [shape: bf16[512,16], index: 2, kind: input, shape index: {}]   ;;  %s13463_s3 = inlined_call_operand.vmem [shape: bf16[16,338,50], index: 3, kind: input, shape index: {}]   ;;  %s13464_s4 = inlined_call_operand.vmem [shape: bf16[1,512], index: 4, kind: input, shape index: {}]   ;;  %s13465_s5 = inlined_call_operand.vmem [shape: bf16[16,50,2], index: 5, kind: input, shape index: {}]   ;;  %s13466_s6 = inlined_call_operand.vmem [shape: f32[16,1], index: 6, kind: input, shape index: {}]   ;;  %s13467_s7 = inlined_call_operand.vmem [shape: f32[16,1], index: 7, kind: input, shape index: {}]   ;;  %s13468_s8 = inlined_call_operand.vmem [shape: f32[32,1], index: 8, kind: input, shape index: {}]   ;;  %s13469_s9 = inlined_call_operand.vmem [shape: f32[32,1], index: 9, kind: input, shape index: {}]   ;;  %s13470_s10 = inlined_call_operand.<no memory space> [shape: f32[1,1], index: 10, kind: input, shape index: {}]   ;;  %s13471_s11 = inlined_call_operand.hbm [shape: f32[1,2], index: 11, kind: output, shape index: {}]  }
   0x1   :  { %v16_v0 = vstv %s13470_s10 }
   0x2   :  { %17 = vst [vmem:[#allocation2] sm:$0x1] %v16_v0 }
   0x3   :  { %v10224_v1 = vld [vmem:[%s13460_s0 + $0x4] ss:$12 sps:$4 sm:$0xff]   ;;  %v10713_v2 = vmov 0.0   ;;  %v10226_v3 = vld [vmem:[%s13460_s0 + $0x8] ss:$12 sps:$4 sm:$0xff]   ;;  %vm10714_vm0 = vmmov 0  }
   0x4   :  { %9541 = vmatprep.subr.bf16.mxu1 %v10713_v2  ;;  %9543 = vmatprep.mubr.msk.bf16.mxu1 %vm10714_vm0, %v10713_v2  ;;  %v10227_v4 = vld [vmem:[%s13460_s0] ss:$12 sps:$4 sm:$0xff]   ;;  %v10715_v6 = vmov 0   ;;  %vm69_vm1 = vcmask 130048   ;;  %vm158_vm2 = vcmask 670720  }
   0x5   :  { %73 = vmatprep.subr.bf16.mxu0 %v10224_v1  ;;  %v10228_v5 = vld [vmem:[%s13461_s1] sm:$0xff]   ;;  %9542 = vmatpush3.bf16.msra.mxu1 %v10226_v3 }
   0x6   :  { %105 = vmatprep.mubr.bf16.mxu0 %v10715_v6  ;;  %74 = vmatpush1.bf16.msra.mxu0 %v10227_v4 }
   0x7   :  { %10222 = vset.pattern.permute.xlu0 %v10715_v6  ;;  %10223 = vset.pattern.permute.xlu1 %v10715_v6 }
   0x8   :  { %9544 = vmatmul.mubr.msk.bf16.vlgmr.msra.gmra.mrb[0].mxu1 %vm69_vm1, %v10228_v5 }
   0x9   :  { %7461 = vmatmul.mubr.msk.bf16.vlgmr.msra.gmra.mrb[0].mxu0 %vm69_vm1, %v10228_v5 }
   0xa   :  { %611 = vmatprep.mubr.bf16.mxu0 %v10715_v6 }
  0xdb   :  { %v10799_v7 = vpop.f32.mrb[0].mxu1 }
  0xdc   :  { %v10801_v8 = vpop.f32.mrb[0].mxu0  ;;  %v9545_v9 = vpop.f32.mrb[1].mxu1  ;;  %v159_v10 = vsel %vm158_vm2, %v10799_v7, 0.0  ;;  %v172_v11 = vmul.f32 %v10799_v7, %v10799_v7 }
  0xdd   :  { %v10807_v12 = vpop.f32.mrb[1].mxu0  ;;  %v10809_v13 = vpop.f32.mrb[2].mxu1  ;;  %v170_v14 = vmul.f32 %v10801_v8, %v10801_v8 }
  0xde   :  { %v175_v15 = vmul.f32 %v10809_v13, %v10809_v13  ;;  %v10815_v16 = vpop.f32.mrb[2].mxu0  ;;  %v9546_v17 = vpop.f32.mrb[3].mxu1  ;;  %v157_v18 = vadd.f32 %v10807_v12, %v10801_v8  ;;  %v171_v19 = vmul.f32 %v10807_v12, %v10807_v12  ;;  %v177_v21 = vsel %vm158_vm2, %v172_v11, 0.0 }
  0xdf   :  { %v113_v20 = vpop.f32.mrb[3].mxu0  ;;  %v173_v22 = vmul.f32 %v10815_v16, %v10815_v16  ;;  %v164_v27 = vsel %vm158_vm2, %v10809_v13, 0.0 }
  0xe0   :  { %v160_v23 = vadd.f32 %v159_v10, %v157_v18  ;;  %v176_v24 = vadd.f32 %v171_v19, %v170_v14  ;;  %v163_v25 = vadd.f32 %v113_v20, %v10815_v16  ;;  %v174_v26 = vmul.f32 %v113_v20, %v113_v20 }
  0xe1   :  { %v182_v28 = vsel %vm158_vm2, %v175_v15, 0.0 }
  0xe2   :  { %161 = vadd.xlane.f32.xlu0 %v160_v23  ;;  %v178_v29 = vadd.f32 %v177_v21, %v176_v24  ;;  %v165_v30 = vadd.f32 %v164_v27, %v163_v25  ;;  %v181_v31 = vadd.f32 %v174_v26, %v173_v22 }
  0xe4   :  { %179 = vadd.xlane.f32.xlu1 %v178_v29  ;;  %v183_v32 = vadd.f32 %v182_v28, %v181_v31 }
  0xe6   :  { %166 = vadd.xlane.f32.xlu0 %v165_v30 }
  0xe8   :  { %184 = vadd.xlane.f32.xlu1 %v183_v32 }
  0xe9   :  { %18 = vsyncpa [#allocation4], 0  ;;  %v192_v47 = vld [vmem:[%s13466_s6] sm:$0xff]  ;;  %v193_v50 = vld [vmem:[%s13466_s6 + $0x8] sm:$0xff]  ;;  %vm1539_vm9 = vcmask 1040384   ;;  %vm5853_vm10 = vcmask 408576  }
  0xea   :  { %v200_v54 = vld [vmem:[%s13467_s7] sm:$0xff]  ;;  %v201_v57 = vld [vmem:[%s13467_s7 + $0x8] sm:$0xff]  ;;  %vm7441_vm15 = vcmask 8192  }
  0xeb   :  { %v10229_v59 = vld [vmem:[%s13462_s2] sm:$0xff]   ;;  %v10244_v29 = vld [vmem:[%s13463_s3 + $0xec] sm:$0xff]  }
  0xec   :  { %9549 = vmatprep.mubr.msk.bf16.mxu1 %vm69_vm1, %v10229_v59  ;;  %v10240_v27 = vld [vmem:[%s13463_s3 + $0x244] sm:$0xff]   ;;  %v10245_v32 = vld [vmem:[%s13463_s3 + $0xac] sm:$0xff]  }
  0xed   :  { %v10242_v30 = vld [vmem:[%s13463_s3 + $0x204] sm:$0xff]  }
  0xee   :  { %v10230_v31 = vld [vmem:[%s13462_s2 + $0x8] sm:$0xff]  }
 0x16f   :  { %v162_v33 = vpop.xlane.xlu0 %161 }
 0x170   :  { %v168_v34 = vmul.f32 0.00295858, %v162_v33  ;;  %v10250_v33 = vld [vmem:[%s13463_s3 + $0x24c] sm:$0xff]  }
 0x171   :  { %v180_v35 = vpop.xlane.xlu1 %179 }
 0x172   :  { %v188_v36 = vmul.f32 %v168_v34, %v168_v34  ;;  %v186_v37 = vmul.f32 0.00295858, %v180_v35  ;;  %v10248_v35 = vld [vmem:[%s13463_s3 + $0xf4] sm:$0xff]  }
 0x173   :  { %v167_v38 = vpop.xlane.xlu0 %166 }
 0x174   :  { %v190_v39 = vsub.f32 %v186_v37, %v188_v36  ;;  %v169_v40 = vmul.f32 0.00295858, %v167_v38  ;;  %v10252_v36 = vld [vmem:[%s13463_s3 + $0x20c] sm:$0xff]   ;;  %v10249_v37 = vld [vmem:[%s13463_s3 + $0xb4] sm:$0xff]   ;;  %v10254_v38 = vld [vmem:[%s13463_s3 + $0xfc] sm:$0xff]  }
 0x175   :  { %v185_v41 = vpop.xlane.xlu1 %184 }
 0x176   :  { %v194_v42 = vadd.f32 1e-05, %v190_v39  ;;  %v189_v43 = vmul.f32 %v169_v40, %v169_v40  ;;  %v187_v44 = vmul.f32 0.00295858, %v185_v41  ;;  %v10232_v39 = vld [vmem:[%s13462_s2 + $0x18] sm:$0xff]   ;;  %v10233_v41 = vld [vmem:[%s13462_s2 + $0x20] sm:$0xff]  }
 0x178   :  { %10677 = vrsqrt.f32 %v194_v42  ;;  %v191_v45 = vsub.f32 %v187_v44, %v189_v43  ;;  %v10234_v42 = vld [vmem:[%s13462_s2 + $0x28] sm:$0xff]   ;;  %v10235_v43 = vld [vmem:[%s13462_s2 + $0x30] sm:$0xff]  }
 0x179   :  { %v10258_v44 = vld [vmem:[%s13463_s3 + $0x104] sm:$0xff]  }
 0x17a   :  { %v195_v46 = vadd.f32 1e-05, %v191_v45  ;;  %v10259_v45 = vld [vmem:[%s13463_s3 + $0xc4] sm:$0xff]  }
 0x17c   :  { %10679 = vrsqrt.f32 %v195_v46  ;;  %v10260_v46 = vld [vmem:[%s13463_s3 + $0x254] sm:$0xff]  }
 0x182   :  { %v10678_v48 = vpop.eup %10677 }
 0x183   :  { %v198_v49 = vmul.f32 %v10678_v48, %v192_v47  ;;  %v10236_v47 = vld [vmem:[%s13462_s2 + $0x38] sm:$0xff]   ;;  %v10237_v48 = vld [vmem:[%s13462_s2 + $0x40] sm:$0xff]  }
 0x185   :  { %208 = vperm.xlu0 %10222, %v198_v49   ;;  %v202_v53 = vmul.f32 %v198_v49, %v168_v34  ;;  %v10231_v34 = vld [vmem:[%s13462_s2 + $0x10] sm:$0xff]  }
 0x186   :  { %v10680_v51 = vpop.eup %10679  ;;  %v10262_v49 = vld [vmem:[%s13463_s3 + $0x214] sm:$0xff]  }
 0x187   :  { %v199_v52 = vmul.f32 %v10680_v51, %v193_v50  ;;  %v204_v55 = vsub.f32 %v200_v54, %v202_v53  ;;  %v10238_v50 = vld [vmem:[%s13462_s2 + $0x48] sm:$0xff]   ;;  %v10239_v51 = vld [vmem:[%s13462_s2 + $0x50] sm:$0xff]   ;;  %v10241_v54 = vld [vmem:[%s13462_s2 + $0x58] sm:$0xff]  }
 0x188   :  { %v10265_v53 = vld [vmem:[%s13463_s3 + $0xcc] sm:$0xff]  }
 0x189   :  { %213 = vperm.xlu1 %10223, %v199_v52   ;;  %v203_v56 = vmul.f32 %v199_v52, %v169_v40  ;;  %v10255_v40 = vld [vmem:[%s13463_s3 + $0xbc] sm:$0xff]   ;;  %v10264_v52 = vld [vmem:[%s13463_s3 + $0x10c] sm:$0xff]  }
 0x18b   :  { %v205_v58 = vsub.f32 %v201_v57, %v203_v56  ;;  %v10960_v56 = vld [vmem:[%s13462_s2 + $0x68] sm:$0xff]   ;;  %v10966_v57 = vld [vmem:[%s13462_s2 + $0x70] sm:$0xff]  }
 0x18d   :  { %224 = vperm.xlu1 %10223, %v204_v55   ;;  %v10243_v55 = vld [vmem:[%s13462_s2 + $0x60] sm:$0xff]  }
 0x191   :  { %229 = vperm.xlu1 %10223, %v205_v58   ;;  %v10268_v58 = vld [vmem:[%s13463_s3 + $0x114] sm:$0xff]  }
 0x204   :  { %v209_v60 = vpop.permute.xlu0 %208 }
 0x205   :  { %v216_v62 = vmul.f32 %v209_v60, %v10801_v8  ;;  %v217_v63 = vmul.f32 %v209_v60, %v10807_v12  ;;  %v218_v0 = vmul.f32 %v209_v60, %v10799_v7  ;;  %v10270_v60 = vld [vmem:[%s13463_s3 + $0x25c] sm:$0xff]  }
 0x208   :  { %v214_v61 = vpop.permute.xlu1 %213 }
 0x209   :  { %v219_v5 = vmul.f32 %v214_v61, %v10815_v16  ;;  %v220_v9 = vmul.f32 %v214_v61, %v113_v20  ;;  %v221_v10 = vmul.f32 %v214_v61, %v10809_v13  ;;  %v10985_v61 = vld [vmem:[%s13462_s2 + $0x78] sm:$0xff]  }
 0x20c   :  { %v225_v1 = vpop.permute.xlu1 %224 }
 0x20d   :  { %v232_v2 = vadd.f32 %v225_v1, %v216_v62  ;;  %v233_v3 = vadd.f32 %v225_v1, %v217_v63  ;;  %v234_v4 = vadd.f32 %v225_v1, %v218_v0  ;;  %v10991_v62 = vld [vmem:[%s13462_s2 + $0x80] sm:$0xff]   ;;  %v11004_v0 = vld [vmem:[%s13462_s2 + $0x88] sm:$0xff]   ;;  %v11010_v1 = vld [vmem:[%s13462_s2 + $0x90] sm:$0xff]  }
 0x20e   :  { %v10272_v63 = vld [vmem:[%s13463_s3 + $0x21c] sm:$0xff]  }
 0x20f   :  { %v244_v11 = vmul.f32 0.2, %v232_v2  ;;  %v245_v15 = vmul.f32 0.2, %v233_v3  ;;  %vm238_vm3 = vcmp.ge.f32.partialorder %v232_v2, 0.0  ;;  %vm239_vm4 = vcmp.ge.f32.partialorder %v233_v3, 0.0 }
 0x210   :  { %v230_v14 = vpop.permute.xlu1 %229  ;;  %v246_v8 = vmul.f32 0.2, %v234_v4  ;;  %vm240_vm5 = vcmp.ge.f32.partialorder %v234_v4, 0.0 }
 0x211   :  { %v235_v17 = vadd.f32 %v230_v14, %v219_v5  ;;  %v236_v18 = vadd.f32 %v230_v14, %v220_v9  ;;  %v237_v19 = vadd.f32 %v230_v14, %v221_v10  ;;  %v250_v16 = vsel %vm238_vm3, %v232_v2, %v244_v11  ;;  %v10275_v2 = vld [vmem:[%s13463_s3 + $0x11c] sm:$0xff]   ;;  %v11042_v9 = vld [vmem:[%s13462_s2 + $0xa8] sm:$0xff]   ;;  %v11048_v10 = vld [vmem:[%s13462_s2 + $0xb0] sm:$0xff]  }
 0x212   :  { %v251_v22 = vsel %vm239_vm4, %v233_v3, %v245_v15  ;;  %v252_v24 = vsel %vm240_vm5, %v234_v4, %v246_v8  ;;  %v10276_v3 = vld [vmem:[%s13463_s3 + $0xdc] sm:$0xff]   ;;  %v10281_v15 = vld [vmem:[%s13463_s3 + $0x124] sm:$0xff]  }
 0x213   :  { %vm241_vm6 = vcmp.ge.f32.partialorder %v235_v17, 0.0  ;;  %v247_v7 = vmul.f32 0.2, %v235_v17  ;;  %v248_v12 = vmul.f32 0.2, %v236_v18  ;;  %vm242_vm7 = vcmp.ge.f32.partialorder %v236_v18, 0.0 }
 0x214   :  { %v249_v21 = vmul.f32 0.2, %v237_v19  ;;  %vm243_vm8 = vcmp.ge.f32.partialorder %v237_v19, 0.0  ;;  %v11026_v4 = vld [vmem:[%s13462_s2 + $0x98] sm:$0xff]   ;;  %v11032_v5 = vld [vmem:[%s13462_s2 + $0xa0] sm:$0xff]  }
 0x215   :  { %v253_v20 = vsel %vm241_vm6, %v235_v17, %v247_v7  ;;  %v254_v13 = vsel %vm242_vm7, %v236_v18, %v248_v12  ;;  %v11058_v11 = vld [vmem:[%s13462_s2 + $0xb8] sm:$0xff]   ;;  %v11063_v14 = vld [vmem:[%s13462_s2 + $0xc0] sm:$0xff]   ;;  %v11077_v17 = vld [vmem:[%s13462_s2 + $0xc8] sm:$0xff]  }
 0x216   :  { %v257_v23 = vpack.c.bf16 %v254_v13, %v251_v22  ;;  %v255_v25 = vsel %vm243_vm8, %v237_v19, %v249_v21  ;;  %v256_v26 = vpack.c.bf16 %v253_v20, %v250_v16  ;;  %v11082_v18 = vld [vmem:[%s13462_s2 + $0xd0] sm:$0xff]   ;;  %v10282_v19 = vld [vmem:[%s13463_s3 + $0xe4] sm:$0xff]   ;;  %v11102_v12 = vld [vmem:[%s13462_s2 + $0xd8] sm:$0xff]  }
 0x217   :  { %v258_v28 = vpack.c.bf16 %v255_v25, %v252_v24  ;;  %v10284_v8 = vld [vmem:[%s13463_s3 + $0x264] sm:$0xff]   ;;  %v11114_v16 = vld [vmem:[%s13463_s3 + $0x12c] sm:$0xff]   ;;  %v11142_v13 = vld [vmem:[%s13462_s2 + $0xf8] sm:$0xff]  }
 0x218   :  { %579 = vmatprep.subr.bf16.mxu0 %v257_v23  ;;  %v10286_v7 = vld [vmem:[%s13463_s3 + $0x224] sm:$0xff]   ;;  %v11130_v22 = vld [vmem:[%s13462_s2 + $0xf0] sm:$0xff]  }
 0x219   :  { %9547 = vmatprep.subr.bf16.mxu1 %v258_v28  ;;  %580 = vmatpush1.bf16.msra.mxu0 %v256_v26  ;;  %v11107_v21 = vld [vmem:[%s13462_s2 + $0xe0] sm:$0xff]   ;;  %v11125_v20 = vld [vmem:[%s13462_s2 + $0xe8] sm:$0xff]   ;;  %v10296_v25 = vld [vmem:[%s13463_s3 + $0x274] sm:$0xff]  }
 0x21a   :  { %9548 = vmatpush3.bf16.msra.mxu1 %v258_v28  ;;  %8933 = vmatprep.subr.bf16.mxu0 %v10240_v27  ;;  %v10293_v23 = vld [vmem:[%s13463_s3 + $0x26c] sm:$0xff]   ;;  %v10298_v26 = vld [vmem:[%s13463_s3 + $0x234] sm:$0xff]   ;;  %v10300_v27 = vld [vmem:[%s13463_s3 + $0x27c] sm:$0xff]  }
 0x21b   :  { %8825 = vmatprep.subr.bf16.mxu1 %v10244_v29  ;;  %v10294_v24 = vld [vmem:[%s13463_s3 + $0x22c] sm:$0xff]   ;;  %v10302_v28 = vld [vmem:[%s13463_s3 + $0x23c] sm:$0xff]  }
 0x21c   :  { %7495 = vmatmul.mubr.msk.bf16.vlgmr.msra.gmra.mrb[4].mxu0 %vm69_vm1, %v10229_v59  ;;  %v10269_v59 = vld [vmem:[%s13463_s3 + $0xd4] sm:$0xff]  }
 0x21d   :  { %621 = vmatprep.mubr.bf16.mxu0 %v10715_v6  ;;  %9550 = vmatmul.mubr.msk.bf16.vlgmr.msra.gmra.mrb[4].mxu1 %vm69_vm1, %v10230_v31  ;;  %v10304_v29 = vld [vmem:[%s13463_s3 + $0x2f0] sm:$0xff]  }
 0x21e   :  { %9553 = vmatprep.mubr.msk.bf16.mxu1 %vm69_vm1, %v10231_v34  ;;  %8934 = vmatpush3.bf16.msra.mxu0 %v10242_v30 }
 0x21f   :  { %8826 = vmatpush3.bf16.msra.mxu1 %v10245_v32  ;;  %8935 = vmatprep.subr.bf16.mxu0 %v10250_v33 }
 0x220   :  { %8827 = vmatprep.subr.bf16.mxu1 %v10248_v35  ;;  %v10329_v35 = vld [vmem:[%s13463_s3 + $0x2e0] sm:$0xff]  }
 0x222   :  { %8936 = vmatpush3.bf16.msra.mxu0 %v10252_v36 }
 0x223   :  { %8828 = vmatpush3.bf16.msra.mxu1 %v10249_v37  ;;  %8937 = vmatprep.subr.bf16.mxu0 %v10260_v46 }
 0x224   :  { %7496 = vmatmul.mubr.msk.bf16.gmra.mrb[8].mxu0 %vm69_vm1, %v10230_v31  ;;  %8829 = vmatprep.subr.bf16.mxu1 %v10254_v38 }
 0x225   :  { %631 = vmatprep.mubr.bf16.mxu0 %v10715_v6  ;;  %9554 = vmatmul.mubr.msk.bf16.gmra.mrb[8].mxu1 %vm69_vm1, %v10232_v39 }
 0x226   :  { %9557 = vmatprep.mubr.msk.bf16.mxu1 %vm69_vm1, %v10233_v41  ;;  %8938 = vmatpush3.bf16.msra.mxu0 %v10262_v49 }
 0x227   :  { %8830 = vmatpush3.bf16.msra.mxu1 %v10255_v40  ;;  %8939 = vmatprep.subr.bf16.mxu0 %v10270_v60 }
 0x228   :  { %8831 = vmatprep.subr.bf16.mxu1 %v10258_v44 }
 0x22a   :  { %8940 = vmatpush3.bf16.msra.mxu0 %v10272_v63  ;;  %v10330_v63 = vld [vmem:[%s13463_s3 + $0x88] sm:$0xff]  }
 0x22b   :  { %8832 = vmatpush3.bf16.msra.mxu1 %v10259_v45  ;;  %8941 = vmatprep.subr.bf16.mxu0 %v10284_v8 }
 0x22c   :  { %7497 = vmatmul.mubr.msk.bf16.gmra.mrb[12].mxu0 %vm69_vm1, %v10231_v34  ;;  %8833 = vmatprep.subr.bf16.mxu1 %v10264_v52 }
 0x22d   :  { %641 = vmatprep.mubr.bf16.mxu0 %v10715_v6  ;;  %9558 = vmatmul.mubr.msk.bf16.gmra.mrb[12].mxu1 %vm69_vm1, %v10234_v42 }
 0x22e   :  { %9561 = vmatprep.mubr.msk.bf16.mxu1 %vm69_vm1, %v10235_v43  ;;  %8942 = vmatpush3.bf16.msra.mxu0 %v10286_v7  ;;  %v10290_v7 = vld [vmem:[%s13463_s3 + $0x144] sm:$0xff]  }
 0x22f   :  { %8834 = vmatpush3.bf16.msra.mxu1 %v10265_v53  ;;  %8943 = vmatprep.subr.bf16.mxu0 %v10293_v23 }
 0x230   :  { %8835 = vmatprep.subr.bf16.mxu1 %v10268_v58 }
 0x232   :  { %8944 = vmatpush3.bf16.msra.mxu0 %v10294_v24 }
 0x233   :  { %8836 = vmatpush3.bf16.msra.mxu1 %v10269_v59  ;;  %8945 = vmatprep.subr.bf16.mxu0 %v10296_v25 }
 0x234   :  { %7498 = vmatmul.mubr.msk.bf16.gmra.mrb[16].mxu0 %vm69_vm1, %v10232_v39  ;;  %8837 = vmatprep.subr.bf16.mxu1 %v10275_v2 }
 0x235   :  { %651 = vmatprep.mubr.bf16.mxu0 %v10715_v6  ;;  %9562 = vmatmul.mubr.msk.bf16.gmra.mrb[16].mxu1 %vm69_vm1, %v10236_v47 }
 0x236   :  { %9565 = vmatprep.mubr.msk.bf16.mxu1 %vm69_vm1, %v10237_v48  ;;  %8946 = vmatpush3.bf16.msra.mxu0 %v10298_v26 }
 0x237   :  { %8838 = vmatpush3.bf16.msra.mxu1 %v10276_v3  ;;  %8947 = vmatprep.subr.bf16.mxu0 %v10300_v27 }
 0x238   :  { %8839 = vmatprep.subr.bf16.mxu1 %v10281_v15 }
 0x23a   :  { %8948 = vmatpush3.bf16.msra.mxu0 %v10302_v28 }
 0x23b   :  { %8840 = vmatpush3.bf16.msra.mxu1 %v10282_v19  ;;  %8969 = vmatprep.subr.bf16.mxu0 %v10304_v29 }
 0x23c   :  { %7499 = vmatmul.mubr.msk.bf16.gmra.mrb[20].mxu0 %vm69_vm1, %v10233_v41  ;;  %9613 = vmatprep.subr.bf16.mxu1 %v11114_v16 }
 0x23d   :  { %661 = vmatprep.mubr.bf16.mxu0 %v10715_v6  ;;  %9566 = vmatmul.mubr.msk.bf16.gmra.mrb[20].mxu1 %vm69_vm1, %v10238_v50 }
 0x23e   :  { %9569 = vmatprep.mubr.msk.bf16.mxu1 %vm69_vm1, %v10239_v51 }
 0x244   :  { %7500 = vmatmul.mubr.msk.bf16.gmra.mrb[24].mxu0 %vm69_vm1, %v10234_v42 }
 0x245   :  { %671 = vmatprep.mubr.bf16.mxu0 %v10715_v6  ;;  %9570 = vmatmul.mubr.msk.bf16.gmra.mrb[24].mxu1 %vm69_vm1, %v10241_v54 }
 0x246   :  { %9573 = vmatprep.mubr.msk.bf16.mxu1 %vm69_vm1, %v10243_v55 }
 0x24c   :  { %7501 = vmatmul.mubr.msk.bf16.gmra.mrb[28].mxu0 %vm69_vm1, %v10235_v43 }
 0x24d   :  { %681 = vmatprep.mubr.bf16.mxu0 %v10715_v6  ;;  %9574 = vmatmul.mubr.msk.bf16.gmra.mrb[28].mxu1 %vm69_vm1, %v10960_v56 }
 0x24e   :  { %9577 = vmatprep.mubr.msk.bf16.mxu1 %vm69_vm1, %v10966_v57 }
 0x254   :  { %7502 = vmatmul.mubr.msk.bf16.gmra.mrb[32].mxu0 %vm69_vm1, %v10236_v47  ;;  %v10332_v47 = vld [vmem:[%s13463_s3 + $0x2e8] sm:$0xff]  }
 0x255   :  { %691 = vmatprep.mubr.bf16.mxu0 %v10715_v6  ;;  %9578 = vmatmul.mubr.msk.bf16.gmra.mrb[32].mxu1 %vm69_vm1, %v10985_v61 }
 0x256   :  { %9581 = vmatprep.mubr.msk.bf16.mxu1 %vm69_vm1, %v10991_v62 }
 0x25c   :  { %7503 = vmatmul.mubr.msk.bf16.gmra.mrb[36].mxu0 %vm69_vm1, %v10237_v48 }
 0x25d   :  { %701 = vmatprep.mubr.bf16.mxu0 %v10715_v6  ;;  %9582 = vmatmul.mubr.msk.bf16.gmra.mrb[36].mxu1 %vm69_vm1, %v11004_v0 }
 0x25e   :  { %9585 = vmatprep.mubr.msk.bf16.mxu1 %vm69_vm1, %v11010_v1 }
 0x264   :  { %7504 = vmatmul.mubr.msk.bf16.gmra.mrb[40].mxu0 %vm69_vm1, %v10238_v50 }
 0x265   :  { %711 = vmatprep.mubr.bf16.mxu0 %v10715_v6  ;;  %9586 = vmatmul.mubr.msk.bf16.gmra.mrb[40].mxu1 %vm69_vm1, %v11026_v4 }
 0x266   :  { %9589 = vmatprep.mubr.msk.bf16.mxu1 %vm69_vm1, %v11032_v5 }
 0x26c   :  { %7505 = vmatmul.mubr.msk.bf16.gmra.mrb[44].mxu0 %vm69_vm1, %v10239_v51 }
 0x26d   :  { %721 = vmatprep.mubr.bf16.mxu0 %v10715_v6  ;;  %9590 = vmatmul.mubr.msk.bf16.gmra.mrb[44].mxu1 %vm69_vm1, %v11042_v9 }
 0x26e   :  { %9593 = vmatprep.mubr.msk.bf16.mxu1 %vm69_vm1, %v11048_v10 }
 0x274   :  { %7506 = vmatmul.mubr.msk.bf16.gmra.mrb[48].mxu0 %vm69_vm1, %v10241_v54 }
 0x275   :  { %731 = vmatprep.mubr.bf16.mxu0 %v10715_v6  ;;  %9594 = vmatmul.mubr.msk.bf16.gmra.mrb[48].mxu1 %vm69_vm1, %v11058_v11 }
 0x276   :  { %9597 = vmatprep.mubr.msk.bf16.mxu1 %vm69_vm1, %v11063_v14 }
 0x27c   :  { %7507 = vmatmul.mubr.msk.bf16.gmra.mrb[52].mxu0 %vm69_vm1, %v10243_v55 }
 0x27d   :  { %741 = vmatprep.mubr.bf16.mxu0 %v10715_v6  ;;  %9598 = vmatmul.mubr.msk.bf16.gmra.mrb[52].mxu1 %vm69_vm1, %v11077_v17 }
 0x27e   :  { %9601 = vmatprep.mubr.msk.bf16.mxu1 %vm69_vm1, %v11082_v18 }
 0x284   :  { %7508 = vmatmul.mubr.msk.bf16.gmra.mrb[56].mxu0 %vm69_vm1, %v10960_v56 }
 0x285   :  { %751 = vmatprep.mubr.bf16.mxu0 %v10715_v6  ;;  %9602 = vmatmul.mubr.msk.bf16.gmra.mrb[56].mxu1 %vm69_vm1, %v11102_v12 }
 0x286   :  { %9605 = vmatprep.mubr.msk.bf16.mxu1 %vm69_vm1, %v11107_v21 }
 0x28c   :  { %7509 = vmatmul.mubr.msk.bf16.gmra.mrb[60].mxu0 %vm69_vm1, %v10966_v57 }
 0x28d   :  { %761 = vmatprep.mubr.bf16.mxu0 %v10715_v6  ;;  %9606 = vmatmul.mubr.msk.bf16.gmra.mrb[60].mxu1 %vm69_vm1, %v11125_v20 }
 0x28e   :  { %9609 = vmatprep.mubr.msk.bf16.mxu1 %vm69_vm1, %v11130_v22 }
 0x294   :  { %7510 = vmatmul.mubr.msk.bf16.gmra.mrb[64].mxu0 %vm69_vm1, %v10985_v61 }
 0x295   :  { %771 = vmatprep.mubr.bf16.mxu0 %v10715_v6  ;;  %9610 = vmatmul.mubr.msk.bf16.gmra.mrb[64].mxu1 %vm69_vm1, %v11142_v13 }
 0x29c   :  { %7511 = vmatmul.mubr.msk.bf16.gmra.mrb[68].mxu0 %vm69_vm1, %v10991_v62 }
 0x29d   :  { %781 = vmatprep.mubr.bf16.mxu0 %v10715_v6 }
 0x2a4   :  { %7512 = vmatmul.mubr.msk.bf16.gmra.mrb[72].mxu0 %vm69_vm1, %v11004_v0 }
 0x2a5   :  { %791 = vmatprep.mubr.bf16.mxu0 %v10715_v6 }
 0x2ac   :  { %7513 = vmatmul.mubr.msk.bf16.gmra.mrb[76].mxu0 %vm69_vm1, %v11010_v1  ;;  %v10288_v1 = vld [vmem:[%s13463_s3 + $0x134] sm:$0xff]  }
 0x2ad   :  { %801 = vmatprep.mubr.bf16.mxu0 %v10715_v6 }
 0x2b4   :  { %7514 = vmatmul.mubr.msk.bf16.gmra.mrb[80].mxu0 %vm69_vm1, %v11026_v4  ;;  %v10289_v4 = vld [vmem:[%s13463_s3 + $0x13c] sm:$0xff]  }
 0x2b5   :  { %811 = vmatprep.mubr.bf16.mxu0 %v10715_v6 }
 0x2bc   :  { %7515 = vmatmul.mubr.msk.bf16.gmra.mrb[84].mxu0 %vm69_vm1, %v11032_v5 }
 0x2bd   :  { %821 = vmatprep.mubr.bf16.mxu0 %v10715_v6 }
 0x2c4   :  { %7516 = vmatmul.mubr.msk.bf16.gmra.mrb[88].mxu0 %vm69_vm1, %v11042_v9 }
 0x2c5   :  { %831 = vmatprep.mubr.bf16.mxu0 %v10715_v6 }
 0x2cc   :  { %7517 = vmatmul.mubr.msk.bf16.gmra.mrb[92].mxu0 %vm69_vm1, %v11048_v10 }
 0x2cd   :  { %841 = vmatprep.mubr.bf16.mxu0 %v10715_v6 }
 0x2d4   :  { %7518 = vmatmul.mubr.msk.bf16.gmra.mrb[96].mxu0 %vm69_vm1, %v11058_v11 }
 0x2d5   :  { %851 = vmatprep.mubr.bf16.mxu0 %v10715_v6 }
 0x2dc   :  { %7519 = vmatmul.mubr.msk.bf16.gmra.mrb[100].mxu0 %vm69_vm1, %v11063_v14 }
 0x2dd   :  { %861 = vmatprep.mubr.bf16.mxu0 %v10715_v6 }
 0x2e4   :  { %7520 = vmatmul.mubr.msk.bf16.gmra.mrb[104].mxu0 %vm69_vm1, %v11077_v17 }
 0x2e5   :  { %871 = vmatprep.mubr.bf16.mxu0 %v10715_v6 }
 0x2ec   :  { %7521 = vmatmul.mubr.msk.bf16.gmra.mrb[108].mxu0 %vm69_vm1, %v11082_v18 }
 0x2ed   :  { %881 = vmatprep.mubr.bf16.mxu0 %v10715_v6 }
 0x2ef   :  { %v11203_v30 = vpop.f32.mrb[4].mxu0 }
 0x2f0   :  { %v11205_v31 = vpop.f32.mrb[5].mxu0  ;;  %v11207_v32 = vpop.f32.mrb[4].mxu1 }
 0x2f1   :  { %v11209_v33 = vpop.f32.mrb[6].mxu0  ;;  %v11211_v34 = vpop.f32.mrb[5].mxu1 }
 0x2f2   :  { %v11215_v36 = vpop.f32.mrb[7].mxu0  ;;  %v11217_v37 = vpop.f32.mrb[6].mxu1 }
 0x2f3   :  { %v1222_v38 = vpack.c.bf16 %v11215_v36, %v11205_v31  ;;  %v11223_v40 = vpop.f32.mrb[7].mxu1 }
 0x2f4   :  { %7522 = vmatmul.mubr.msk.bf16.gmra.mrb[112].mxu0 %vm69_vm1, %v11102_v12 }
 0x2f5   :  { %891 = vmatprep.mubr.bf16.mxu0 %v10715_v6 }
 0x2f7   :  { %v11230_v42 = vpop.f32.mrb[8].mxu0 }
 0x2f8   :  { %v11232_v43 = vpop.f32.mrb[9].mxu0  ;;  %v11234_v44 = vpop.f32.mrb[8].mxu1 }
 0x2f9   :  { %v11236_v45 = vpop.f32.mrb[10].mxu0  ;;  %v982_v46 = vpop.f32.mrb[9].mxu1 }
 0x2fa   :  { %v11240_v48 = vpop.f32.mrb[11].mxu0  ;;  %v11242_v49 = vpop.f32.mrb[10].mxu1 }
 0x2fb   :  { %v1232_v51 = vpack.c.bf16 %v11242_v49, %v11234_v44  ;;  %v985_v52 = vpop.f32.mrb[11].mxu1 }
 0x2fc   :  { %7523 = vmatmul.mubr.msk.bf16.gmra.mrb[116].mxu0 %vm69_vm1, %v11107_v21  ;;  %v1229_v53 = vpack.c.bf16 %v985_v52, %v982_v46  ;;  %v10292_v46 = vld [vmem:[%s13463_s3 + $0x154] ss:$0 sps:$4 sm:$0x11]  }
 0x2fd   :  { %901 = vmatprep.mubr.bf16.mxu0 %v10715_v6 }
 0x2ff   :  { %v633_v54 = vpop.f32.mrb[12].mxu0 }
 0x300   :  { %v635_v55 = vpop.f32.mrb[13].mxu0  ;;  %v11251_v56 = vpop.f32.mrb[12].mxu1 }
 0x301   :  { %v637_v57 = vpop.f32.mrb[14].mxu0  ;;  %v11253_v58 = vpop.f32.mrb[13].mxu1 }
 0x302   :  { %v1227_v59 = vpack.c.bf16 %v637_v57, %v633_v54  ;;  %v639_v60 = vpop.f32.mrb[15].mxu0  ;;  %v11255_v61 = vpop.f32.mrb[14].mxu1  ;;  %v1541_v54 = vsel %vm1539_vm9, %v10292_v46, 0  ;;  %v10295_v57 = vld [vmem:[%s13463_s3 + $0x40] sm:$0xff]  }
 0x303   :  { %v1228_v62 = vpack.c.bf16 %v639_v60, %v635_v55  ;;  %v11259_v0 = vpop.f32.mrb[15].mxu1 }
 0x304   :  { %7524 = vmatmul.mubr.msk.bf16.gmra.mrb[120].mxu0 %vm69_vm1, %v11125_v20 }
 0x305   :  { %1575 = vmatprep.mubr.bf16.mxu1 %v1228_v62  ;;  %911 = vmatprep.mubr.bf16.mxu0 %v10715_v6  ;;  %v10322_v62 = vld [vmem:[%s13463_s3 + $0x2d0] sm:$0xff]  }
 0x306   :  { %1576 = vmatmul.mubr.bf16.vlgmr.msra.gmra.mrb[68].mxu1 %v1227_v59 }
 0x307   :  { %9614 = vmatpush3.bf16.msra.mxu1 %v11114_v16  ;;  %v643_v3 = vpop.f32.mrb[16].mxu0  ;;  %v10291_v16 = vld [vmem:[%s13463_s3 + $0x14c] sm:$0xff]  }
 0x308   :  { %9615 = vmatprep.subr.bf16.mxu1 %v10288_v1  ;;  %v645_v5 = vpop.f32.mrb[17].mxu0  ;;  %v11273_v9 = vpop.f32.mrb[16].mxu1 }
 0x309   :  { %v647_v10 = vpop.f32.mrb[18].mxu0  ;;  %v11275_v11 = vpop.f32.mrb[17].mxu1 }
 0x30a   :  { %v1230_v14 = vpack.c.bf16 %v647_v10, %v643_v3  ;;  %v649_v15 = vpop.f32.mrb[19].mxu0  ;;  %v11277_v17 = vpop.f32.mrb[18].mxu1  ;;  %v10311_v10 = vld [vmem:[%s13463_s3 + $0x60] sm:$0xff]  }
 0x30b   :  { %9616 = vmatpush3.bf16.msra.mxu1 %v10288_v1  ;;  %v1231_v18 = vpack.c.bf16 %v649_v15, %v645_v5  ;;  %v11281_v8 = vpop.f32.mrb[19].mxu1  ;;  %v10297_v5 = vld [vmem:[%s13463_s3] sm:$0xff]   ;;  %v10299_v15 = vld [vmem:[%s13463_s3 + $0x48] sm:$0xff]  }
 0x30c   :  { %9617 = vmatprep.subr.bf16.mxu1 %v10289_v4  ;;  %7525 = vmatmul.mubr.msk.bf16.gmra.mrb[124].mxu0 %vm69_vm1, %v11130_v22 }
 0x30d   :  { %1583 = vmatprep.mubr.bf16.mxu1 %v1231_v18  ;;  %921 = vmatprep.mubr.bf16.mxu0 %v10715_v6 }
 0x30e   :  { %1584 = vmatmul.mubr.bf16.gmra.mrb[72].mxu1 %v1230_v14 }
 0x30f   :  { %9618 = vmatpush3.bf16.msra.mxu1 %v10289_v4  ;;  %v11291_v21 = vpop.f32.mrb[20].mxu0  ;;  %9625 = vmatprep.mubr.msk.bf16.mxu1 %vm158_vm2, %v1229_v53 }
 0x310   :  { %9619 = vmatprep.subr.bf16.mxu1 %v10290_v7  ;;  %v11297_v20 = vpop.f32.mrb[21].mxu0  ;;  %v11299_v22 = vpop.f32.mrb[20].mxu1 }
 0x311   :  { %v11301_v23 = vpop.f32.mrb[22].mxu0  ;;  %v11303_v24 = vpop.f32.mrb[21].mxu1 }
 0x312   :  { %v11307_v25 = vpop.f32.mrb[23].mxu0  ;;  %v11309_v26 = vpop.f32.mrb[22].mxu1 }
 0x313   :  { %9620 = vmatpush3.bf16.msra.mxu1 %v10290_v7  ;;  %v11315_v29 = vpop.f32.mrb[23].mxu1 }
 0x314   :  { %9621 = vmatprep.subr.bf16.mxu1 %v10291_v16  ;;  %7526 = vmatmul.mubr.msk.bf16.gmra.mrb[128].mxu0 %vm69_vm1, %v11142_v13 }
 0x317   :  { %9622 = vmatpush3.bf16.msra.mxu1 %v10291_v16  ;;  %v11324_v53 = vpop.f32.mrb[24].mxu0  ;;  %v10301_v16 = vld [vmem:[%s13463_s3 + $0x8] sm:$0xff]  }
 0x318   :  { %10185 = vmatprep.subr.msk.bf16.mxu1 %vm1539_vm9, %v10292_v46  ;;  %v11328_v55 = vpop.f32.mrb[25].mxu0  ;;  %v11333_v59 = vpop.f32.mrb[24].mxu1 }
 0x319   :  { %v11335_v13 = vpop.f32.mrb[26].mxu0  ;;  %v11337_v60 = vpop.f32.mrb[25].mxu1 }
 0x31a   :  { %v11341_v1 = vpop.f32.mrb[27].mxu0  ;;  %v11343_v3 = vpop.f32.mrb[26].mxu1 }
 0x31b   :  { %9624 = vmatpush3.bf16.msra.mxu1 %v1541_v54  ;;  %v11352_v14 = vpop.f32.mrb[27].mxu1  ;;  %v10303_v54 = vld [vmem:[%s13463_s3 + $0x50] sm:$0xff]  }
 0x31c   :  { %8861 = vmatprep.subr.bf16.mxu1 %v10295_v57 }
 0x31e   :  { %9626 = vmatmul.mubr.msk.bf16.vlgmr.msra.gmra.mrb[76].mxu1 %vm158_vm2, %v1232_v51 }
 0x31f   :  { %8862 = vmatpush3.bf16.msra.mxu1 %v10297_v5  ;;  %1811 = vmatprep.mubr.bf16.mxu1 %v1222_v38  ;;  %v673_v7 = vpop.f32.mrb[28].mxu0  ;;  %v10305_v38 = vld [vmem:[%s13463_s3 + $0x10] sm:$0xff]  }
 0x320   :  { %v675_v46 = vpop.f32.mrb[29].mxu0  ;;  %8863 = vmatprep.subr.bf16.mxu1 %v10299_v15  ;;  %v11372_v57 = vpop.f32.mrb[28].mxu1  ;;  %v10306_v15 = vld [vmem:[%s13463_s3 + $0x2b0] sm:$0xff]  }
 0x321   :  { %v677_v44 = vpop.f32.mrb[30].mxu0  ;;  %v11374_v49 = vpop.f32.mrb[29].mxu1 }
 0x322   :  { %v1239_v51 = vpack.c.bf16 %v677_v44, %v673_v7  ;;  %v679_v5 = vpop.f32.mrb[31].mxu0  ;;  %v11376_v31 = vpop.f32.mrb[30].mxu1  ;;  %v10307_v7 = vld [vmem:[%s13463_s3 + $0x58] sm:$0xff]  }
 0x323   :  { %v1240_v36 = vpack.c.bf16 %v679_v5, %v675_v46  ;;  %8864 = vmatpush3.bf16.msra.mxu1 %v10301_v16  ;;  %v11386_v18 = vpop.f32.mrb[31].mxu1  ;;  %v10308_v16 = vld [vmem:[%s13463_s3 + $0x2f8] sm:$0xff]  }
 0x324   :  { %8865 = vmatprep.subr.bf16.mxu1 %v10303_v54  ;;  %v10309_v44 = vld [vmem:[%s13463_s3 + $0x18] sm:$0xff]  }
 0x325   :  { %2375 = vmatprep.mubr.bf16.mxu0 %v1240_v36  ;;  %v10310_v54 = vld [vmem:[%s13463_s3 + $0x2b8] sm:$0xff]  }
 0x326   :  { %2376 = vmatmul.mubr.bf16.vlgmr.msra.gmra.mrb[132].mxu0 %v1239_v51  ;;  %v10312_v51 = vld [vmem:[%s13463_s3 + $0x300] sm:$0xff]  }
 0x327   :  { %8866 = vmatpush3.bf16.msra.mxu1 %v10305_v38  ;;  %8970 = vmatpush3.bf16.msra.mxu0 %v10306_v15  ;;  %v683_v5 = vpop.f32.mrb[32].mxu0 }
 0x328   :  { %8867 = vmatprep.subr.bf16.mxu1 %v10307_v7  ;;  %8971 = vmatprep.subr.bf16.mxu0 %v10308_v16  ;;  %v685_v36 = vpop.f32.mrb[33].mxu0  ;;  %v11408_v38 = vpop.f32.mrb[32].mxu1  ;;  %v10313_v7 = vld [vmem:[%s13463_s3 + $0x20] sm:$0xff]  }
 0x329   :  { %v687_v15 = vpop.f32.mrb[34].mxu0  ;;  %v11410_v46 = vpop.f32.mrb[33].mxu1  ;;  %v10314_v16 = vld [vmem:[%s13463_s3 + $0x2c0] sm:$0xff]  }
 0x32a   :  { %v1242_v28 = vpack.c.bf16 %v687_v15, %v683_v5  ;;  %v689_v52 = vpop.f32.mrb[35].mxu0  ;;  %v11412_v19 = vpop.f32.mrb[34].mxu1  ;;  %v10321_v5 = vld [vmem:[%s13463_s3 + $0x30] sm:$0xff]  }
 0x32b   :  { %8868 = vmatpush3.bf16.msra.mxu1 %v10309_v44  ;;  %8972 = vmatpush3.bf16.msra.mxu0 %v10310_v54  ;;  %v1243_v12 = vpack.c.bf16 %v689_v52, %v685_v36  ;;  %v11422_v2 = vpop.f32.mrb[35].mxu1  ;;  %v10315_v44 = vld [vmem:[%s13463_s3 + $0x68] sm:$0xff]   ;;  %v10319_v36 = vld [vmem:[%s13463_s3 + $0x70] sm:$0xff]  }
 0x32c   :  { %8869 = vmatprep.subr.bf16.mxu1 %v10311_v10  ;;  %8973 = vmatprep.subr.bf16.mxu0 %v10312_v51  ;;  %v10316_v54 = vld [vmem:[%s13463_s3 + $0x308] sm:$0xff]  }
 0x32d   :  { %2383 = vmatprep.mubr.bf16.mxu0 %v1243_v12  ;;  %v10317_v52 = vld [vmem:[%s13463_s3 + $0x28] sm:$0xff]   ;;  %v10320_v12 = vld [vmem:[%s13463_s3 + $0x310] sm:$0xff]  }
 0x32e   :  { %2384 = vmatmul.mubr.bf16.gmra.mrb[136].mxu0 %v1242_v28  ;;  %v10318_v10 = vld [vmem:[%s13463_s3 + $0x2c8] sm:$0xff]  }
 0x32f   :  { %8870 = vmatpush3.bf16.msra.mxu1 %v10313_v7  ;;  %8974 = vmatpush3.bf16.msra.mxu0 %v10314_v16  ;;  %v11438_v51 = vpop.f32.mrb[36].mxu0 }
 0x330   :  { %8871 = vmatprep.subr.bf16.mxu1 %v10315_v44  ;;  %8975 = vmatprep.subr.bf16.mxu0 %v10316_v54  ;;  %v695_v28 = vpop.f32.mrb[37].mxu0  ;;  %v11446_v15 = vpop.f32.mrb[36].mxu1 }
 0x331   :  { %13511 = vst [vmem:[#allocation6_spill] sm:$0xff] %v11446_v15  ;;  %v11448_v7 = vpop.f32.mrb[38].mxu0  ;;  %v11450_v16 = vpop.f32.mrb[37].mxu1  ;;  %v10364_v15 = vld [vmem:[%s13463_s3 + $0x408] sm:$0xff]  }
 0x332   :  { %v699_v44 = vpop.f32.mrb[39].mxu0  ;;  %v11454_v54 = vpop.f32.mrb[38].mxu1 }
 0x333   :  { %8872 = vmatpush3.bf16.msra.mxu1 %v10317_v52  ;;  %8976 = vmatpush3.bf16.msra.mxu0 %v10318_v10  ;;  %v1246_v4 = vpack.c.bf16 %v699_v44, %v695_v28  ;;  %v11464_v27 = vpop.f32.mrb[39].mxu1  ;;  %v10323_v52 = vld [vmem:[%s13463_s3 + $0x78] sm:$0xff]   ;;  %v10327_v44 = vld [vmem:[%s13463_s3 + $0x80] sm:$0xff]  }
 0x334   :  { %8873 = vmatprep.subr.bf16.mxu1 %v10319_v36  ;;  %8977 = vmatprep.subr.bf16.mxu0 %v10320_v12  ;;  %v10324_v10 = vld [vmem:[%s13463_s3 + $0x318] sm:$0xff]  }
 0x335   :  { %2659 = vmatprep.mubr.bf16.mxu0 %v1246_v4  ;;  %v10325_v28 = vld [vmem:[%s13463_s3 + $0x38] sm:$0xff]  }
 0x336   :  { %v10326_v36 = vld [vmem:[%s13463_s3 + $0x2d8] sm:$0xff]  }
 0x337   :  { %8874 = vmatpush3.bf16.msra.mxu1 %v10321_v5  ;;  %8978 = vmatpush3.bf16.msra.mxu0 %v10322_v62  ;;  %v11480_v12 = vpop.f32.mrb[40].mxu0  ;;  %v10328_v62 = vld [vmem:[%s13463_s3 + $0x320] sm:$0xff]  }
 0x338   :  { %8875 = vmatprep.subr.bf16.mxu1 %v10323_v52  ;;  %8979 = vmatprep.subr.bf16.mxu0 %v10324_v10  ;;  %v705_v4 = vpop.f32.mrb[41].mxu0  ;;  %v11488_v5 = vpop.f32.mrb[40].mxu1 }
 0x339   :  { %13512 = vst [vmem:[#allocation7_spill] sm:$0xff] %v11488_v5  ;;  %v11490_v6 = vpop.f32.mrb[42].mxu0  ;;  %v11492_v39 = vpop.f32.mrb[41].mxu1 }
 0x33a   :  { %13513 = vst [vmem:[#allocation8_spill] sm:$0xff] %v11492_v39  ;;  %v709_v52 = vpop.f32.mrb[43].mxu0  ;;  %v11496_v10 = vpop.f32.mrb[42].mxu1  ;;  %v10336_v39 = vld [vmem:[%s13463_s3 + $0x98] sm:$0xff]  }
 0x33b   :  { %13514 = vst [vmem:[#allocation9_spill] sm:$0xff] %v11496_v10  ;;  %8876 = vmatpush3.bf16.msra.mxu1 %v10325_v28  ;;  %8980 = vmatpush3.bf16.msra.mxu0 %v10326_v36  ;;  %v1249_v41 = vpack.c.bf16 %v709_v52, %v705_v4  ;;  %v11500_v50 = vpop.f32.mrb[43].mxu1  ;;  %v10331_v36 = vld [vmem:[%s13463_s3 + $0x328] sm:$0xff]   ;;  %v13516_v4 = vpack.c.bf16 %v11209_v33, %v11203_v30  ;;  %v10333_v28 = vld [vmem:[%s13463_s3 + $0x90] sm:$0xff]   ;;  %v10334_v33 = vld [vmem:[%s13463_s3 + $0x39c] sm:$0xff]  }
 0x33c   :  { %13515 = vst [vmem:[#allocation10_spill] sm:$0xff] %v11500_v50  ;;  %9629 = vmatprep.subr.bf16.mxu1 %v10327_v44  ;;  %8981 = vmatprep.subr.bf16.mxu0 %v10328_v62  ;;  %v13517_v62 = vpack.c.bf16 %v11240_v48, %v11232_v43 }
 0x33e   :  { %1812 = vmatmul.mubr.bf16.vlgmr.msra.gmra.mrb[80].mxu1 %v13516_v4 }
 0x33f   :  { %1819 = vmatprep.mubr.bf16.mxu1 %v13517_v62  ;;  %9630 = vmatpush3.bf16.msra.mxu1 %v10327_v44  ;;  %v11519_v52 = vpop.f32.mrb[44].mxu0 }
 0x340   :  { %8982 = vmatpush3.bf16.msra.mxu0 %v10329_v35  ;;  %9631 = vmatprep.subr.bf16.mxu1 %v10330_v63  ;;  %v715_v5 = vpop.f32.mrb[45].mxu0  ;;  %v11527_v30 = vpop.f32.mrb[44].mxu1 }
 0x341   :  { %13518 = vst [vmem:[#allocation11_spill] sm:$0xff] %v11527_v30  ;;  %8983 = vmatprep.subr.bf16.mxu0 %v10331_v36  ;;  %v11532_v43 = vpop.f32.mrb[46].mxu0  ;;  %v11534_v35 = vpop.f32.mrb[45].mxu1  ;;  %v10348_v30 = vld [vmem:[%s13463_s3 + $0x37c] sm:$0xff]  }
 0x342   :  { %13519 = vst [vmem:[#allocation12_spill] sm:$0xff] %v11534_v35  ;;  %v719_v44 = vpop.f32.mrb[47].mxu0  ;;  %v11538_v4 = vpop.f32.mrb[46].mxu1 }
 0x343   :  { %13520 = vst [vmem:[#allocation13_spill] sm:$0xff] %v11538_v4  ;;  %9632 = vmatpush3.bf16.msra.mxu1 %v10330_v63  ;;  %v1252_v62 = vpack.c.bf16 %v719_v44, %v715_v5  ;;  %v11542_v36 = vpop.f32.mrb[47].mxu1  ;;  %v10335_v63 = vld [vmem:[%s13463_s3 + $0x35c] sm:$0xff]   ;;  %v13522_v5 = vpack.c.bf16 %v11236_v45, %v11230_v42  ;;  %v13523_v44 = vpack.c.bf16 %v11223_v40, %v11211_v34  ;;  %v10338_v34 = vld [vmem:[%s13463_s3 + $0x364] sm:$0xff]  }
 0x344   :  { %13521 = vst [vmem:[#allocation14_spill] sm:$0xff] %v11542_v36  ;;  %8984 = vmatpush3.bf16.msra.mxu0 %v10332_v47  ;;  %9633 = vmatprep.subr.bf16.mxu1 %v10333_v28  ;;  %v10337_v47 = vld [vmem:[%s13463_s3 + $0x3a4] sm:$0xff]  }
 0x345   :  { %9005 = vmatprep.subr.bf16.mxu0 %v10334_v33  ;;  %v13524_v33 = vpack.c.bf16 %v11448_v7, %v11438_v51  ;;  %v10339_v42 = vld [vmem:[%s13463_s3 + $0xa0] sm:$0xff]   ;;  %v10340_v51 = vld [vmem:[%s13463_s3 + $0x3ac] sm:$0xff]   ;;  %v13529_v7 = vpack.c.bf16 %v11490_v6, %v11480_v12 }
 0x346   :  { %1820 = vmatmul.mubr.bf16.gmra.mrb[84].mxu1 %v13522_v5  ;;  %v10346_v6 = vld [vmem:[%s13463_s3 + $0x3bc] sm:$0xff]  }
 0x347   :  { %9634 = vmatpush3.bf16.msra.mxu1 %v10333_v28  ;;  %9641 = vmatprep.mubr.msk.bf16.mxu1 %vm158_vm2, %v13523_v44  ;;  %v11562_v10 = vpop.f32.mrb[48].mxu0  ;;  %v10349_v12 = vld [vmem:[%s13463_s3 + $0x1a0] sm:$0xff]  }
 0x348   :  { %2660 = vmatmul.mubr.bf16.vlgmr.msra.gmra.mrb[140].mxu0 %v13524_v33  ;;  %9635 = vmatprep.subr.bf16.mxu1 %v10336_v39  ;;  %v11570_v45 = vpop.f32.mrb[49].mxu0  ;;  %v11572_v5 = vpop.f32.mrb[48].mxu1  ;;  %v10343_v33 = vld [vmem:[%s13463_s3 + $0x3b4] sm:$0xff]  }
 0x349   :  { %13525 = vst [vmem:[#allocation15_spill] sm:$0xff] %v11572_v5  ;;  %9006 = vmatpush3.bf16.msra.mxu0 %v10335_v63  ;;  %2667 = vmatprep.mubr.bf16.mxu0 %v1249_v41  ;;  %v11577_v40 = vpop.f32.mrb[50].mxu0  ;;  %v11579_v28 = vpop.f32.mrb[49].mxu1 }
 0x34a   :  { %13526 = vst [vmem:[#allocation16_spill] sm:$0xff] %v11579_v28  ;;  %9007 = vmatprep.subr.bf16.mxu0 %v10337_v47  ;;  %v11586_v44 = vpop.f32.mrb[51].mxu0  ;;  %v11588_v63 = vpop.f32.mrb[50].mxu1  ;;  %v10342_v47 = vld [vmem:[%s13463_s3 + $0xa8] ss:$0 sps:$4 sm:$0x11]   ;;  %v13534_v28 = vpack.c.bf16 %v11217_v37, %v11207_v32 }
 0x34b   :  { %13527 = vst [vmem:[#allocation17_spill] sm:$0xff] %v11588_v63  ;;  %9636 = vmatpush3.bf16.msra.mxu1 %v10336_v39  ;;  %v11594_v50 = vpop.f32.mrb[51].mxu1  ;;  %v10341_v39 = vld [vmem:[%s13463_s3 + $0x36c] sm:$0xff]   ;;  %v1777_v48 = vsel %vm1539_vm9, %v10342_v47, 0 }
 0x34c   :  { %13528 = vst [vmem:[#allocation18_spill] sm:$0xff] %v11594_v50  ;;  %9637 = vmatprep.subr.bf16.mxu1 %v10339_v42  ;;  %v10353_v32 = vld [vmem:[%s13463_s3 + $0x1a8] sm:$0xff]  }
 0x34d   :  { %9008 = vmatpush3.bf16.msra.mxu0 %v10338_v34  ;;  %v10345_v34 = vld [vmem:[%s13463_s3 + $0x198] sm:$0xff]  }
 0x34e   :  { %9009 = vmatprep.subr.bf16.mxu0 %v10340_v51 }
 0x34f   :  { %9638 = vmatpush3.bf16.msra.mxu1 %v10339_v42  ;;  %v11607_v41 = vpop.f32.mrb[52].mxu0  ;;  %v10344_v42 = vld [vmem:[%s13463_s3 + $0x374] sm:$0xff]  }
 0x350   :  { %10186 = vmatprep.subr.msk.bf16.mxu1 %vm1539_vm9, %v10342_v47  ;;  %2668 = vmatmul.mubr.bf16.gmra.mrb[144].mxu0 %v13529_v7  ;;  %v11617_v51 = vpop.f32.mrb[53].mxu0  ;;  %v11619_v5 = vpop.f32.mrb[52].mxu1 }
 0x351   :  { %13530 = vst [vmem:[#allocation19_spill] sm:$0xff] %v11619_v5  ;;  %9010 = vmatpush3.bf16.msra.mxu0 %v10341_v39  ;;  %2943 = vmatprep.mubr.bf16.mxu0 %v1252_v62  ;;  %v11624_v63 = vpop.f32.mrb[54].mxu0  ;;  %v11626_v47 = vpop.f32.mrb[53].mxu1  ;;  %v10347_v62 = vld [vmem:[%s13463_s3 + $0x158] sm:$0xff]  }
 0x352   :  { %13531 = vst [vmem:[#allocation20_spill] sm:$0xff] %v11626_v47  ;;  %9011 = vmatprep.subr.bf16.mxu0 %v10343_v33  ;;  %v11633_v7 = vpop.f32.mrb[55].mxu0  ;;  %v11635_v39 = vpop.f32.mrb[54].mxu1  ;;  %v10351_v33 = vld [vmem:[%s13463_s3 + $0x160] sm:$0xff]  }
 0x353   :  { %13532 = vst [vmem:[#allocation21_spill] sm:$0xff] %v11635_v39  ;;  %9640 = vmatpush3.bf16.msra.mxu1 %v1777_v48  ;;  %v11644_v50 = vpop.f32.mrb[55].mxu1 }
 0x354   :  { %13533 = vst [vmem:[#allocation22_spill] sm:$0xff] %v11644_v50  ;;  %8897 = vmatprep.subr.bf16.mxu1 %v10345_v34  ;;  %v10350_v34 = vld [vmem:[%s13463_s3 + $0x3c4] sm:$0xff]   ;;  %v10356_v50 = vld [vmem:[%s13463_s3 + $0x38c] sm:$0xff]  }
 0x355   :  { %9012 = vmatpush3.bf16.msra.mxu0 %v10344_v42  ;;  %v13535_v42 = vpack.c.bf16 %v11307_v25, %v11297_v20  ;;  %v10354_v25 = vld [vmem:[%s13463_s3 + $0x3cc] sm:$0xff]  }
 0x356   :  { %9642 = vmatmul.mubr.msk.bf16.vlgmr.msra.gmra.mrb[76].mxu1 %vm158_vm2, %v13534_v28  ;;  %9013 = vmatprep.subr.bf16.mxu0 %v10346_v6  ;;  %v10352_v6 = vld [vmem:[%s13463_s3 + $0x384] sm:$0xff]  }
 0x357   :  { %8898 = vmatpush3.bf16.msra.mxu1 %v10347_v62  ;;  %2091 = vmatprep.mubr.bf16.mxu1 %v13535_v42  ;;  %v11667_v48 = vpop.f32.mrb[56].mxu0 }
 0x358   :  { %8899 = vmatprep.subr.bf16.mxu1 %v10349_v12  ;;  %v11672_v37 = vpop.f32.mrb[57].mxu0  ;;  %v11674_v28 = vpop.f32.mrb[56].mxu1  ;;  %v10357_v12 = vld [vmem:[%s13463_s3 + $0x1b0] sm:$0xff]  }
 0x359   :  { %13536 = vst [vmem:[#allocation23_spill] sm:$0xff] %v11674_v28  ;;  %9014 = vmatpush3.bf16.msra.mxu0 %v10348_v30  ;;  %v11679_v62 = vpop.f32.mrb[58].mxu0  ;;  %v11681_v20 = vpop.f32.mrb[57].mxu1  ;;  %v10355_v30 = vld [vmem:[%s13463_s3 + $0x168] sm:$0xff]  }
 0x35a   :  { %13537 = vst [vmem:[#allocation24_spill] sm:$0xff] %v11681_v20  ;;  %9015 = vmatprep.subr.bf16.mxu0 %v10350_v34  ;;  %v11688_v42 = vpop.f32.mrb[59].mxu0  ;;  %v11690_v5 = vpop.f32.mrb[58].mxu1  ;;  %v10358_v34 = vld [vmem:[%s13463_s3 + $0x3d4] sm:$0xff]   ;;  %v10365_v20 = vld [vmem:[%s13463_s3 + $0x1c0] sm:$0xff]  }
 0x35b   :  { %13538 = vst [vmem:[#allocation25_spill] sm:$0xff] %v11690_v5  ;;  %8900 = vmatpush3.bf16.msra.mxu1 %v10351_v33  ;;  %v11699_v47 = vpop.f32.mrb[59].mxu1 }
 0x35c   :  { %13539 = vst [vmem:[#allocation26_spill] sm:$0xff] %v11699_v47  ;;  %8901 = vmatprep.subr.bf16.mxu1 %v10353_v32  ;;  %v10359_v32 = vld [vmem:[%s13463_s3 + $0x170] sm:$0xff]  }
 0x35d   :  { %9016 = vmatpush3.bf16.msra.mxu0 %v10352_v6  ;;  %v10361_v6 = vld [vmem:[%s13463_s3 + $0x1b8] sm:$0xff]  }
 0x35e   :  { %9017 = vmatprep.subr.bf16.mxu0 %v10354_v25  ;;  %v10360_v25 = vld [vmem:[%s13463_s3 + $0x394] sm:$0xff]  }
 0x35f   :  { %8902 = vmatpush3.bf16.msra.mxu1 %v10355_v30  ;;  %v11715_v39 = vpop.f32.mrb[60].mxu0 }
 0x360   :  { %8903 = vmatprep.subr.bf16.mxu1 %v10357_v12  ;;  %v11720_v33 = vpop.f32.mrb[61].mxu0  ;;  %v11722_v28 = vpop.f32.mrb[60].mxu1  ;;  %v10362_v12 = vld [vmem:[%s13463_s3 + $0x448] sm:$0xff]  }
 0x361   :  { %13540 = vst [vmem:[#allocation27_spill] sm:$0xff] %v11722_v28  ;;  %9018 = vmatpush3.bf16.msra.mxu0 %v10356_v50  ;;  %v11727_v30 = vpop.f32.mrb[62].mxu0  ;;  %v11729_v5 = vpop.f32.mrb[61].mxu1  ;;  %v10363_v50 = vld [vmem:[%s13463_s3 + $0x178] sm:$0xff]  }
 0x362   :  { %13541 = vst [vmem:[#allocation28_spill] sm:$0xff] %v11729_v5  ;;  %9019 = vmatprep.subr.bf16.mxu0 %v10358_v34  ;;  %v11736_v47 = vpop.f32.mrb[63].mxu0  ;;  %v11738_v4 = vpop.f32.mrb[62].mxu1  ;;  %v10366_v34 = vld [vmem:[%s13463_s3 + $0x450] sm:$0xff]  }
 0x363   :  { %13542 = vst [vmem:[#allocation29_spill] sm:$0xff] %v11738_v4  ;;  %8904 = vmatpush3.bf16.msra.mxu1 %v10359_v32  ;;  %v11747_v36 = vpop.f32.mrb[63].mxu1  ;;  %v13544_v32 = vpack.c.bf16 %v11532_v43, %v11519_v52  ;;  %v13546_v4 = vpack.c.bf16 %v11586_v44, %v11570_v45  ;;  %v10374_v44 = vld [vmem:[%s13463_s3 + $0x460] sm:$0xff]  }
 0x364   :  { %13543 = vst [vmem:[#allocation30_spill] sm:$0xff] %v11747_v36  ;;  %8905 = vmatprep.subr.bf16.mxu1 %v10361_v6  ;;  %v10367_v6 = vld [vmem:[%s13463_s3 + $0x180] sm:$0xff]   ;;  %v10372_v36 = vld [vmem:[%s13463_s3 + $0x418] sm:$0xff]  }
 0x365   :  { %9020 = vmatpush3.bf16.msra.mxu0 %v10360_v25  ;;  %v10369_v25 = vld [vmem:[%s13463_s3 + $0x1c8] sm:$0xff]  }
 0x366   :  { %9041 = vmatprep.subr.bf16.mxu0 %v10362_v12 }
 0x367   :  { %8906 = vmatpush3.bf16.msra.mxu1 %v10363_v50  ;;  %v11763_v35 = vpop.f32.mrb[64].mxu0  ;;  %v10368_v50 = vld [vmem:[%s13463_s3 + $0x410] sm:$0xff]  }
 0x368   :  { %2944 = vmatmul.mubr.bf16.vlgmr.msra.gmra.mrb[148].mxu0 %v13544_v32  ;;  %8907 = vmatprep.subr.bf16.mxu1 %v10365_v20  ;;  %v11771_v12 = vpop.f32.mrb[65].mxu0  ;;  %v11773_v28 = vpop.f32.mrb[64].mxu1  ;;  %v10370_v20 = vld [vmem:[%s13463_s3 + $0x458] sm:$0xff]  }
 0x369   :  { %13545 = vst [vmem:[#allocation31_spill] sm:$0xff] %v11773_v28  ;;  %9042 = vmatpush3.bf16.msra.mxu0 %v10364_v15  ;;  %2951 = vmatprep.mubr.bf16.mxu0 %v13546_v4  ;;  %v11781_v52 = vpop.f32.mrb[66].mxu0  ;;  %v11783_v43 = vpop.f32.mrb[65].mxu1  ;;  %v10371_v4 = vld [vmem:[%s13463_s3 + $0x188] sm:$0xff]   ;;  %v10373_v15 = vld [vmem:[%s13463_s3 + $0x1d0] sm:$0xff]   ;;  %v13551_v28 = vpack.c.bf16 %v11633_v7, %v11617_v51  ;;  %v10380_v51 = vld [vmem:[%s13463_s3 + $0x1e0] sm:$0xff]  }
 0x36a   :  { %13547 = vst [vmem:[#allocation32_spill] sm:$0xff] %v11783_v43  ;;  %9043 = vmatprep.subr.bf16.mxu0 %v10366_v34  ;;  %v11790_v32 = vpop.f32.mrb[67].mxu0  ;;  %v11792_v5 = vpop.f32.mrb[66].mxu1  ;;  %v10379_v7 = vld [vmem:[%s13463_s3 + $0x428] sm:$0xff]   ;;  %v10416_v43 = vld [vmem:[%s13463_s3 + $0x338] sm:$0xff]  }
 0x36b   :  { %13548 = vst [vmem:[#allocation33_spill] sm:$0xff] %v11792_v5  ;;  %8908 = vmatpush3.bf16.msra.mxu1 %v10367_v6  ;;  %v11801_v34 = vpop.f32.mrb[67].mxu1  ;;  %v13550_v6 = vpack.c.bf16 %v11577_v40, %v11562_v10  ;;  %v10378_v5 = vld [vmem:[%s13463_s3 + $0x468] sm:$0xff]  }
 0x36c   :  { %13549 = vst [vmem:[#allocation34_spill] sm:$0xff] %v11801_v34  ;;  %8909 = vmatprep.subr.bf16.mxu1 %v10369_v25  ;;  %v10375_v25 = vld [vmem:[%s13463_s3 + $0x190] sm:$0xff]   ;;  %v13562_v34 = vpack.c.bf16 %v11277_v17, %v11273_v9  ;;  %v10419_v9 = vld [vmem:[%s13463_s3 + $0x340] sm:$0xff]  }
 0x36d   :  { %9044 = vmatpush3.bf16.msra.mxu0 %v10368_v50  ;;  %v10377_v50 = vld [vmem:[%s13463_s3 + $0x1d8] sm:$0xff]  }
 0x36e   :  { %9045 = vmatprep.subr.bf16.mxu0 %v10370_v20 }
 0x36f   :  { %8910 = vmatpush3.bf16.msra.mxu1 %v10371_v4  ;;  %v11817_v45 = vpop.f32.mrb[68].mxu0  ;;  %v10376_v4 = vld [vmem:[%s13463_s3 + $0x420] sm:$0xff]  }
 0x370   :  { %8911 = vmatprep.subr.bf16.mxu1 %v10373_v15  ;;  %2952 = vmatmul.mubr.bf16.gmra.mrb[152].mxu0 %v13550_v6  ;;  %v11825_v20 = vpop.f32.mrb[69].mxu0  ;;  %v13553_v6 = vpack.c.bf16 %v11341_v1, %v11328_v55  ;;  %v10384_v55 = vld [vmem:[%s13463_s3 + $0x478] sm:$0xff]  }
 0x371   :  { %9046 = vmatpush3.bf16.msra.mxu0 %v10372_v36  ;;  %3227 = vmatprep.mubr.bf16.mxu0 %v13551_v28  ;;  %v11833_v15 = vpop.f32.mrb[70].mxu0  ;;  %v13552_v28 = vpack.c.bf16 %v11301_v23, %v11291_v21  ;;  %v10382_v21 = vld [vmem:[%s13463_s3 + $0x430] sm:$0xff]   ;;  %v10389_v1 = vld [vmem:[%s13463_s3 + $0x1f8] sm:$0xff]  }
 0x372   :  { %9047 = vmatprep.subr.bf16.mxu0 %v10374_v44  ;;  %v11840_v40 = vpop.f32.mrb[71].mxu0  ;;  %v10381_v44 = vld [vmem:[%s13463_s3 + $0x470] sm:$0xff]  }
 0x373   :  { %8912 = vmatpush3.bf16.msra.mxu1 %v10375_v25 }
 0x374   :  { %9645 = vmatprep.subr.bf16.mxu1 %v10377_v50 }
 0x375   :  { %9048 = vmatpush3.bf16.msra.mxu0 %v10376_v4  ;;  %v10383_v4 = vld [vmem:[%s13463_s3 + $0x1e8] sm:$0xff]  }
 0x376   :  { %2092 = vmatmul.mubr.bf16.vlgmr.msra.gmra.mrb[88].mxu1 %v13552_v28  ;;  %9049 = vmatprep.subr.bf16.mxu0 %v10378_v5  ;;  %v10385_v28 = vld [vmem:[%s13463_s3 + $0x438] sm:$0xff]  }
 0x377   :  { %2099 = vmatprep.mubr.bf16.mxu1 %v13553_v6  ;;  %9646 = vmatpush3.bf16.msra.mxu1 %v10377_v50  ;;  %v11859_v25 = vpop.f32.mrb[72].mxu0  ;;  %v13555_v6 = vpack.c.bf16 %v11259_v0, %v11253_v58  ;;  %v10390_v58 = vld [vmem:[%s13463_s3 + $0x4f4] sm:$0xff]   ;;  %v13556_v0 = vpack.c.bf16 %v11624_v63, %v11607_v41  ;;  %v13557_v50 = vpack.c.bf16 %v11688_v42, %v11672_v37  ;;  %v10396_v41 = vld [vmem:[%s13463_s3 + $0x504] sm:$0xff]   ;;  %v10398_v37 = vld [vmem:[%s13463_s3 + $0x28c] sm:$0xff]  }
 0x378   :  { %9647 = vmatprep.subr.bf16.mxu1 %v10380_v51  ;;  %v11864_v10 = vpop.f32.mrb[73].mxu0  ;;  %v10397_v42 = vld [vmem:[%s13463_s3 + $0x4c4] sm:$0xff]  }
 0x379   :  { %9050 = vmatpush3.bf16.msra.mxu0 %v10379_v7  ;;  %v11869_v23 = vpop.f32.mrb[74].mxu0  ;;  %v10386_v7 = vld [vmem:[%s13463_s3 + $0x1f0] sm:$0xff]  }
 0x37a   :  { %9051 = vmatprep.subr.bf16.mxu0 %v10381_v44  ;;  %v11876_v5 = vpop.f32.mrb[75].mxu0  ;;  %v13554_v44 = vpack.c.bf16 %v11335_v13, %v11324_v53  ;;  %v10388_v13 = vld [vmem:[%s13463_s3 + $0x440] sm:$0xff]  }
 0x37b   :  { %9648 = vmatpush3.bf16.msra.mxu1 %v10380_v51  ;;  %v10387_v51 = vld [vmem:[%s13463_s3 + $0x480] sm:$0xff]  }
 0x37c   :  { %9649 = vmatprep.subr.bf16.mxu1 %v10383_v4 }
 0x37d   :  { %9052 = vmatpush3.bf16.msra.mxu0 %v10382_v21 }
 0x37e   :  { %2100 = vmatmul.mubr.bf16.gmra.mrb[92].mxu1 %v13554_v44  ;;  %9053 = vmatprep.subr.bf16.mxu0 %v10384_v55  ;;  %v10392_v44 = vld [vmem:[%s13463_s3 + $0x200] ss:$0 sps:$4 sm:$0x11]  }
 0x37f   :  { %9650 = vmatpush3.bf16.msra.mxu1 %v10383_v4  ;;  %9657 = vmatprep.mubr.msk.bf16.mxu1 %vm158_vm2, %v13555_v6  ;;  %v11896_v21 = vpop.f32.mrb[76].mxu0  ;;  %v10393_v6 = vld [vmem:[%s13463_s3 + $0x4fc] sm:$0xff]  }
 0x380   :  { %9651 = vmatprep.subr.bf16.mxu1 %v10386_v7  ;;  %v11901_v53 = vpop.f32.mrb[77].mxu0 }
 0x381   :  { %9054 = vmatpush3.bf16.msra.mxu0 %v10385_v28  ;;  %v11906_v4 = vpop.f32.mrb[78].mxu0  ;;  %v10395_v28 = vld [vmem:[%s13463_s3 + $0x284] sm:$0xff]  }
 0x382   :  { %9055 = vmatprep.subr.bf16.mxu0 %v10387_v51  ;;  %v11913_v55 = vpop.f32.mrb[79].mxu0  ;;  %v10391_v51 = vld [vmem:[%s13463_s3 + $0x4b4] sm:$0xff]  }
 0x383   :  { %9652 = vmatpush3.bf16.msra.mxu1 %v10386_v7 }
 0x384   :  { %9653 = vmatprep.subr.bf16.mxu1 %v10389_v1 }
 0x385   :  { %9056 = vmatpush3.bf16.msra.mxu0 %v10388_v13  ;;  %v2057_v13 = vsel %vm1539_vm9, %v10392_v44, 0 }
 0x386   :  { %9077 = vmatprep.subr.bf16.mxu0 %v10390_v58 }
 0x387   :  { %9654 = vmatpush3.bf16.msra.mxu1 %v10389_v1  ;;  %v11926_v7 = vpop.f32.mrb[80].mxu0  ;;  %v10394_v1 = vld [vmem:[%s13463_s3 + $0x4bc] sm:$0xff]  }
 0x388   :  { %3228 = vmatmul.mubr.bf16.vlgmr.msra.gmra.mrb[156].mxu0 %v13556_v0  ;;  %10187 = vmatprep.subr.msk.bf16.mxu1 %vm1539_vm9, %v10392_v44  ;;  %v11936_v58 = vpop.f32.mrb[81].mxu0  ;;  %v13560_v0 = vpack.c.bf16 %v11679_v62, %v11667_v48  ;;  %v10402_v48 = vld [vmem:[%s13463_s3 + $0x514] sm:$0xff]  }
 0x389   :  { %9078 = vmatpush3.bf16.msra.mxu0 %v10391_v51  ;;  %3235 = vmatprep.mubr.bf16.mxu0 %v13557_v50  ;;  %v11944_v63 = vpop.f32.mrb[82].mxu0  ;;  %v13558_v50 = vpack.c.bf16 %v11255_v61, %v11251_v56  ;;  %v10401_v56 = vld [vmem:[%s13463_s3 + $0x294] sm:$0xff]   ;;  %v10410_v51 = vld [vmem:[%s13463_s3 + $0x2ac] ss:$0 sps:$4 sm:$0x11]  }
 0x38a   :  { %9079 = vmatprep.subr.bf16.mxu0 %v10393_v6  ;;  %v11951_v44 = vpop.f32.mrb[83].mxu0  ;;  %v10399_v6 = vld [vmem:[%s13463_s3 + $0x50c] sm:$0xff]  }
 0x38b   :  { %9656 = vmatpush3.bf16.msra.mxu1 %v2057_v13  ;;  %v13559_v13 = vpack.c.bf16 %v11281_v8, %v11275_v11  ;;  %v10400_v11 = vld [vmem:[%s13463_s3 + $0x4cc] sm:$0xff]   ;;  %v13561_v8 = vpack.c.bf16 %v11736_v47, %v11720_v33  ;;  %v10404_v47 = vld [vmem:[%s13463_s3 + $0x29c] sm:$0xff]   ;;  %v10403_v33 = vld [vmem:[%s13463_s3 + $0x4d4] sm:$0xff]  }
 0x38c   :  { %9661 = vmatprep.subr.bf16.mxu1 %v10395_v28 }
 0x38d   :  { %9080 = vmatpush3.bf16.msra.mxu0 %v10394_v1 }
 0x38e   :  { %9658 = vmatmul.mubr.msk.bf16.vlgmr.msra.gmra.mrb[76].mxu1 %vm158_vm2, %v13558_v50  ;;  %9081 = vmatprep.subr.bf16.mxu0 %v10396_v41  ;;  %v10407_v50 = vld [vmem:[%s13463_s3 + $0x2a4] sm:$0xff]  }
 0x38f   :  { %9662 = vmatpush3.bf16.msra.mxu1 %v10395_v28  ;;  %9673 = vmatprep.mubr.msk.bf16.mxu1 %vm158_vm2, %v13559_v13  ;;  %v11972_v1 = vpop.f32.mrb[84].mxu0  ;;  %v10406_v13 = vld [vmem:[%s13463_s3 + $0x4dc] sm:$0xff]  }
 0x390   :  { %3236 = vmatmul.mubr.bf16.gmra.mrb[160].mxu0 %v13560_v0  ;;  %9663 = vmatprep.subr.bf16.mxu1 %v10398_v37  ;;  %v11980_v61 = vpop.f32.mrb[85].mxu0 }
 0x391   :  { %9082 = vmatpush3.bf16.msra.mxu0 %v10397_v42  ;;  %3511 = vmatprep.mubr.bf16.mxu0 %v13561_v8  ;;  %v11988_v28 = vpop.f32.mrb[86].mxu0  ;;  %v10405_v42 = vld [vmem:[%s13463_s3 + $0x51c] sm:$0xff]   ;;  %v10411_v8 = vld [vmem:[%s13463_s3 + $0x52c] sm:$0xff]  }
 0x392   :  { %9083 = vmatprep.subr.bf16.mxu0 %v10399_v6  ;;  %v11995_v41 = vpop.f32.mrb[87].mxu0 }
 0x393   :  { %9664 = vmatpush3.bf16.msra.mxu1 %v10398_v37 }
 0x394   :  { %9665 = vmatprep.subr.bf16.mxu1 %v10401_v56 }
 0x395   :  { %9084 = vmatpush3.bf16.msra.mxu0 %v10400_v11 }
 0x396   :  { %9085 = vmatprep.subr.bf16.mxu0 %v10402_v48 }
 0x397   :  { %9666 = vmatpush3.bf16.msra.mxu1 %v10401_v56  ;;  %v12008_v37 = vpop.f32.mrb[88].mxu0  ;;  %v10408_v56 = vld [vmem:[%s13463_s3 + $0x524] sm:$0xff]  }
 0x398   :  { %9667 = vmatprep.subr.bf16.mxu1 %v10404_v47  ;;  %v12013_v6 = vpop.f32.mrb[89].mxu0 }
 0x399   :  { %9086 = vmatpush3.bf16.msra.mxu0 %v10403_v33  ;;  %v12018_v11 = vpop.f32.mrb[90].mxu0  ;;  %v2341_v33 = vsel %vm1539_vm9, %v10410_v51, 0 }
 0x39a   :  { %9087 = vmatprep.subr.bf16.mxu0 %v10405_v42  ;;  %v12025_v48 = vpop.f32.mrb[91].mxu0  ;;  %v10409_v42 = vld [vmem:[%s13463_s3 + $0x4e4] sm:$0xff]  }
 0x39b   :  { %9668 = vmatpush3.bf16.msra.mxu1 %v10404_v47 }
 0x39c   :  { %9669 = vmatprep.subr.bf16.mxu1 %v10407_v50 }
 0x39d   :  { %9088 = vmatpush3.bf16.msra.mxu0 %v10406_v13  ;;  %v10413_v13 = vld [vmem:[%s13463_s3 + $0x330] sm:$0xff]  }
 0x39e   :  { %9089 = vmatprep.subr.bf16.mxu0 %v10408_v56  ;;  %v10412_v56 = vld [vmem:[%s13463_s3 + $0x4ec] sm:$0xff]  }
 0x39f   :  { %9670 = vmatpush3.bf16.msra.mxu1 %v10407_v50  ;;  %v12038_v47 = vpop.f32.mrb[92].mxu0  ;;  %v10414_v50 = vld [vmem:[%s13463_s3 + $0x5a0] sm:$0xff]  }
 0x3a0   :  { %10188 = vmatprep.subr.msk.bf16.mxu1 %vm1539_vm9, %v10410_v51  ;;  %v12045_v62 = vpop.f32.mrb[93].mxu0  ;;  %v13563_v51 = vpack.c.bf16 %v11315_v29, %v11303_v24  ;;  %v10418_v24 = vld [vmem:[%s13463_s3 + $0x568] sm:$0xff]   ;;  %v13565_v29 = vpack.c.bf16 %v11790_v32, %v11771_v12  ;;  %v10421_v32 = vld [vmem:[%s13463_s3 + $0x570] sm:$0xff]  }
 0x3a1   :  { %9090 = vmatpush3.bf16.msra.mxu0 %v10409_v42  ;;  %v12050_v0 = vpop.f32.mrb[94].mxu0  ;;  %v13564_v42 = vpack.c.bf16 %v11727_v30, %v11715_v39  ;;  %v10420_v39 = vld [vmem:[%s13463_s3 + $0x5b0] sm:$0xff]   ;;  %v10422_v12 = vld [vmem:[%s13463_s3 + $0x348] sm:$0xff]  }
 0x3a2   :  { %9091 = vmatprep.subr.bf16.mxu0 %v10411_v8  ;;  %v12057_v36 = vpop.f32.mrb[95].mxu0  ;;  %v10415_v8 = vld [vmem:[%s13463_s3 + $0x560] sm:$0xff]  }
 0x3a3   :  { %9672 = vmatpush3.bf16.msra.mxu1 %v2341_v33  ;;  %v10417_v33 = vld [vmem:[%s13463_s3 + $0x5a8] sm:$0xff]  }
 0x3a4   :  { %9677 = vmatprep.subr.bf16.mxu1 %v10413_v13  ;;  %v10434_v30 = vld [vmem:[%s13463_s3 + $0x3e4] sm:$0xff]  }
 0x3a5   :  { %9092 = vmatpush3.bf16.msra.mxu0 %v10412_v56 }
 0x3a6   :  { %9674 = vmatmul.mubr.msk.bf16.vlgmr.msra.gmra.mrb[76].mxu1 %vm158_vm2, %v13562_v34  ;;  %9113 = vmatprep.subr.bf16.mxu0 %v10414_v50  ;;  %v13568_v50 = vpack.c.bf16 %v11309_v26, %v11299_v22  ;;  %v10437_v22 = vld [vmem:[%s13463_s3 + $0x3ec] sm:$0xff]  }
 0x3a7   :  { %9678 = vmatpush3.bf16.msra.mxu1 %v10413_v13  ;;  %9689 = vmatprep.mubr.msk.bf16.mxu1 %vm158_vm2, %v13563_v51  ;;  %v12078_v56 = vpop.f32.mrb[96].mxu0  ;;  %v10423_v51 = vld [vmem:[%s13463_s3 + $0x5b8] sm:$0xff]  }
 0x3a8   :  { %3512 = vmatmul.mubr.bf16.vlgmr.msra.gmra.mrb[164].mxu0 %v13564_v42  ;;  %9679 = vmatprep.subr.bf16.mxu1 %v10416_v43  ;;  %v12086_v17 = vpop.f32.mrb[97].mxu0  ;;  %v13566_v42 = vpack.c.bf16 %v11781_v52, %v11763_v35  ;;  %v10426_v35 = vld [vmem:[%s13463_s3 + $0x5c0] sm:$0xff]  }
 0x3a9   :  { %9114 = vmatpush3.bf16.msra.mxu0 %v10415_v8  ;;  %3519 = vmatprep.mubr.bf16.mxu0 %v13565_v29  ;;  %v12094_v34 = vpop.f32.mrb[98].mxu0  ;;  %v10425_v8 = vld [vmem:[%s13463_s3 + $0x350] sm:$0xff]  }
 0x3aa   :  { %9115 = vmatprep.subr.bf16.mxu0 %v10417_v33  ;;  %v12101_v13 = vpop.f32.mrb[99].mxu0 }
 0x3ab   :  { %9680 = vmatpush3.bf16.msra.mxu1 %v10416_v43 }
 0x3ac   :  { %9681 = vmatprep.subr.bf16.mxu1 %v10419_v9 }
 0x3ad   :  { %9116 = vmatpush3.bf16.msra.mxu0 %v10418_v24  ;;  %v10424_v24 = vld [vmem:[%s13463_s3 + $0x578] sm:$0xff]  }
 0x3ae   :  { %9117 = vmatprep.subr.bf16.mxu0 %v10420_v39 }
 0x3af   :  { %9682 = vmatpush3.bf16.msra.mxu1 %v10419_v9  ;;  %v12114_v43 = vpop.f32.mrb[100].mxu0  ;;  %v13567_v9 = vpack.c.bf16 %v11840_v40, %v11825_v20  ;;  %v10428_v20 = vld [vmem:[%s13463_s3 + $0x358] ss:$0 sps:$4 sm:$0x11]   ;;  %v10427_v40 = vld [vmem:[%s13463_s3 + $0x580] sm:$0xff]  }
 0x3b0   :  { %3520 = vmatmul.mubr.bf16.gmra.mrb[168].mxu0 %v13566_v42  ;;  %9683 = vmatprep.subr.bf16.mxu1 %v10422_v12  ;;  %v12122_v33 = vpop.f32.mrb[101].mxu0  ;;  %v2625_v42 = vsel %vm1539_vm9, %v10428_v20, 0 }
 0x3b1   :  { %9118 = vmatpush3.bf16.msra.mxu0 %v10421_v32  ;;  %3795 = vmatprep.mubr.bf16.mxu0 %v13567_v9  ;;  %v12130_v29 = vpop.f32.mrb[102].mxu0 }
 0x3b2   :  { %9119 = vmatprep.subr.bf16.mxu0 %v10423_v51  ;;  %v12137_v39 = vpop.f32.mrb[103].mxu0  ;;  %v10429_v51 = vld [vmem:[%s13463_s3 + $0x5c8] sm:$0xff]  }
 0x3b3   :  { %9684 = vmatpush3.bf16.msra.mxu1 %v10422_v12 }
 0x3b4   :  { %9685 = vmatprep.subr.bf16.mxu1 %v10425_v8 }
 0x3b5   :  { %9120 = vmatpush3.bf16.msra.mxu0 %v10424_v24  ;;  %v10431_v24 = vld [vmem:[%s13463_s3 + $0x3dc] sm:$0xff]  }
 0x3b6   :  { %9121 = vmatprep.subr.bf16.mxu0 %v10426_v35  ;;  %v10430_v35 = vld [vmem:[%s13463_s3 + $0x588] sm:$0xff]  }
 0x3b7   :  { %9686 = vmatpush3.bf16.msra.mxu1 %v10425_v8  ;;  %v12150_v12 = vpop.f32.mrb[104].mxu0  ;;  %v10432_v8 = vld [vmem:[%s13463_s3 + $0x5d0] sm:$0xff]  }
 0x3b8   :  { %10189 = vmatprep.subr.msk.bf16.mxu1 %vm1539_vm9, %v10428_v20  ;;  %v12157_v9 = vpop.f32.mrb[105].mxu0  ;;  %v13569_v20 = vpack.c.bf16 %v11352_v14, %v11337_v60  ;;  %v10438_v60 = vld [vmem:[%s13463_s3 + $0x6f8] sm:$0xff]   ;;  %v10441_v14 = vld [vmem:[%s13463_s3 + $0x700] sm:$0xff]  }
 0x3b9   :  { %9122 = vmatpush3.bf16.msra.mxu0 %v10427_v40  ;;  %v12162_v52 = vpop.f32.mrb[106].mxu0 }
 0x3ba   :  { %9123 = vmatprep.subr.bf16.mxu0 %v10429_v51  ;;  %v12169_v32 = vpop.f32.mrb[107].mxu0  ;;  %v10433_v51 = vld [vmem:[%s13463_s3 + $0x590] sm:$0xff]  }
 0x3bb   :  { %9688 = vmatpush3.bf16.msra.mxu1 %v2625_v42  ;;  %v10435_v42 = vld [vmem:[%s13463_s3 + $0x5d8] sm:$0xff]  }
 0x3bc   :  { %9693 = vmatprep.subr.bf16.mxu1 %v10431_v24 }
 0x3bd   :  { %9124 = vmatpush3.bf16.msra.mxu0 %v10430_v35 }
 0x3be   :  { %9690 = vmatmul.mubr.msk.bf16.vlgmr.msra.gmra.mrb[76].mxu1 %vm158_vm2, %v13568_v50  ;;  %9125 = vmatprep.subr.bf16.mxu0 %v10432_v8  ;;  %v10436_v50 = vld [vmem:[%s13463_s3 + $0x598] sm:$0xff]  }
 0x3bf   :  { %9694 = vmatpush3.bf16.msra.mxu1 %v10431_v24  ;;  %9705 = vmatprep.mubr.msk.bf16.mxu1 %vm158_vm2, %v13569_v20  ;;  %v12190_v35 = vpop.f32.mrb[108].mxu0  ;;  %v13571_v20 = vpack.c.bf16 %v11833_v15, %v11817_v45  ;;  %v10444_v45 = vld [vmem:[%s13463_s3 + $0x708] sm:$0xff]  }
 0x3c0   :  { %13570 = vst [vmem:[#allocation35_spill] sm:$0xff] %v12190_v35  ;;  %9695 = vmatprep.subr.bf16.mxu1 %v10434_v30  ;;  %v12195_v26 = vpop.f32.mrb[109].mxu0  ;;  %v10449_v15 = vld [vmem:[%s13463_s3 + $0x488] sm:$0xff]  }
 0x3c1   :  { %9126 = vmatpush3.bf16.msra.mxu0 %v10433_v51  ;;  %v12200_v24 = vpop.f32.mrb[110].mxu0  ;;  %v10440_v51 = vld [vmem:[%s13463_s3 + $0x3f4] sm:$0xff]  }
 0x3c2   :  { %9127 = vmatprep.subr.bf16.mxu0 %v10435_v42  ;;  %v12207_v8 = vpop.f32.mrb[111].mxu0  ;;  %v10439_v42 = vld [vmem:[%s13463_s3 + $0x6b8] sm:$0xff]  }
 0x3c3   :  { %9696 = vmatpush3.bf16.msra.mxu1 %v10434_v30 }
 0x3c4   :  { %9697 = vmatprep.subr.bf16.mxu1 %v10437_v22 }
 0x3c5   :  { %9128 = vmatpush3.bf16.msra.mxu0 %v10436_v50  ;;  %v10443_v50 = vld [vmem:[%s13463_s3 + $0x3fc] sm:$0xff]  }
 0x3c6   :  { %9185 = vmatprep.subr.bf16.mxu0 %v10438_v60  ;;  %v10442_v60 = vld [vmem:[%s13463_s3 + $0x6c0] sm:$0xff]  }
 0x3c7   :  { %9698 = vmatpush3.bf16.msra.mxu1 %v10437_v22  ;;  %v12220_v30 = vpop.f32.mrb[112].mxu0  ;;  %v13572_v22 = vpack.c.bf16 %v11876_v5, %v11864_v10  ;;  %v10446_v10 = vld [vmem:[%s13463_s3 + $0x404] ss:$0 sps:$4 sm:$0x11]   ;;  %v10445_v5 = vld [vmem:[%s13463_s3 + $0x6c8] sm:$0xff]  }
 0x3c8   :  { %3796 = vmatmul.mubr.bf16.vlgmr.msra.gmra.mrb[172].mxu0 %v13571_v20  ;;  %9699 = vmatprep.subr.bf16.mxu1 %v10440_v51  ;;  %v12228_v40 = vpop.f32.mrb[113].mxu0 }
 0x3c9   :  { %9186 = vmatpush3.bf16.msra.mxu0 %v10439_v42  ;;  %3803 = vmatprep.mubr.bf16.mxu0 %v13572_v22  ;;  %v12236_v35 = vpop.f32.mrb[114].mxu0  ;;  %v13574_v22 = vpack.c.bf16 %v11869_v23, %v11859_v25  ;;  %v13576_v42 = vpack.c.bf16 %v11995_v41, %v11980_v61  ;;  %v10450_v23 = vld [vmem:[%s13463_s3 + $0x718] sm:$0xff]   ;;  %v10452_v61 = vld [vmem:[%s13463_s3 + $0x490] sm:$0xff]  }
 0x3ca   :  { %9187 = vmatprep.subr.bf16.mxu0 %v10441_v14  ;;  %v12243_v20 = vpop.f32.mrb[115].mxu0  ;;  %v10447_v14 = vld [vmem:[%s13463_s3 + $0x710] sm:$0xff]   ;;  %v10451_v41 = vld [vmem:[%s13463_s3 + $0x6d8] sm:$0xff]  }
 0x3cb   :  { %9700 = vmatpush3.bf16.msra.mxu1 %v10440_v51 }
 0x3cc   :  { %9701 = vmatprep.subr.bf16.mxu1 %v10443_v50 }
 0x3cd   :  { %9188 = vmatpush3.bf16.msra.mxu0 %v10442_v60  ;;  %v2909_v60 = vsel %vm1539_vm9, %v10446_v10, 0 }
 0x3ce   :  { %9189 = vmatprep.subr.bf16.mxu0 %v10444_v45 }
 0x3cf   :  { %9702 = vmatpush3.bf16.msra.mxu1 %v10443_v50  ;;  %v12256_v51 = vpop.f32.mrb[116].mxu0  ;;  %v10448_v50 = vld [vmem:[%s13463_s3 + $0x6d0] sm:$0xff]  }
 0x3d0   :  { %13573 = vst [vmem:[#allocation36_spill] sm:$0xff] %v12256_v51  ;;  %3804 = vmatmul.mubr.bf16.gmra.mrb[176].mxu0 %v13574_v22  ;;  %10190 = vmatprep.subr.msk.bf16.mxu1 %vm1539_vm9, %v10446_v10  ;;  %v12266_v45 = vpop.f32.mrb[117].mxu0 }
 0x3d1   :  { %13575 = vst [vmem:[#allocation37_spill] sm:$0xff] %v12266_v45  ;;  %9190 = vmatpush3.bf16.msra.mxu0 %v10445_v5  ;;  %4363 = vmatprep.mubr.bf16.mxu0 %v13576_v42  ;;  %v12274_v25 = vpop.f32.mrb[118].mxu0  ;;  %v13579_v42 = vpack.c.bf16 %v11343_v3, %v11333_v59  ;;  %v10455_v59 = vld [vmem:[%s13463_s3 + $0x498] sm:$0xff]  }
 0x3d2   :  { %13577 = vst [vmem:[#allocation38_spill] sm:$0xff] %v12274_v25  ;;  %9191 = vmatprep.subr.bf16.mxu0 %v10447_v14  ;;  %v12281_v22 = vpop.f32.mrb[119].mxu0  ;;  %v10453_v14 = vld [vmem:[%s13463_s3 + $0x720] sm:$0xff]  }
 0x3d3   :  { %13578 = vst [vmem:[#allocation39_spill] sm:$0xff] %v12281_v22  ;;  %9704 = vmatpush3.bf16.msra.mxu1 %v2909_v60  ;;  %v13580_v60 = vpack.c.bf16 %v11386_v18, %v11374_v49  ;;  %v10456_v49 = vld [vmem:[%s13463_s3 + $0x728] sm:$0xff]  }
 0x3d4   :  { %9709 = vmatprep.subr.bf16.mxu1 %v10449_v15 }
 0x3d5   :  { %9192 = vmatpush3.bf16.msra.mxu0 %v10448_v50 }
 0x3d6   :  { %9706 = vmatmul.mubr.msk.bf16.vlgmr.msra.gmra.mrb[76].mxu1 %vm158_vm2, %v13579_v42  ;;  %9193 = vmatprep.subr.bf16.mxu0 %v10450_v23 }
 0x3d7   :  { %9710 = vmatpush3.bf16.msra.mxu1 %v10449_v15  ;;  %9721 = vmatprep.mubr.msk.bf16.mxu1 %vm158_vm2, %v13580_v60  ;;  %v12302_v50 = vpop.f32.mrb[120].mxu0  ;;  %v10454_v15 = vld [vmem:[%s13463_s3 + $0x6e0] sm:$0xff]   ;;  %v10457_v60 = vld [vmem:[%s13463_s3 + $0x6e8] sm:$0xff]  }
 0x3d8   :  { %13581 = vst [vmem:[#allocation40_spill] sm:$0xff] %v12302_v50  ;;  %9711 = vmatprep.subr.bf16.mxu1 %v10452_v61  ;;  %v12307_v3 = vpop.f32.mrb[121].mxu0  ;;  %v10463_v50 = vld [vmem:[%s13463_s3 + $0x764] sm:$0xff]  }
 0x3d9   :  { %13582 = vst [vmem:[#allocation41_spill] sm:$0xff] %v12307_v3  ;;  %9194 = vmatpush3.bf16.msra.mxu0 %v10451_v41  ;;  %v8841_v23 = vpop.f32.mrb[68].mxu1  ;;  %v12312_v42 = vpop.f32.mrb[122].mxu0 }
 0x3da   :  { %13583 = vst [vmem:[#allocation42_spill] sm:$0xff] %v12312_v42  ;;  %9195 = vmatprep.subr.bf16.mxu0 %v10453_v14  ;;  %v8842_v18 = vpop.f32.mrb[69].mxu1  ;;  %v12319_v10 = vpop.f32.mrb[123].mxu0  ;;  %v10458_v14 = vld [vmem:[%s13463_s3 + $0x4a0] sm:$0xff]  }
 0x3db   :  { %13584 = vst [vmem:[#allocation43_spill] sm:$0xff] %v12319_v10  ;;  %v12321_v5 = vadd.f32 %v8842_v18, %v8841_v23  ;;  %9712 = vmatpush3.bf16.msra.mxu1 %v10452_v61  ;;  %v8844_v41 = vpop.f32.mrb[70].mxu1  ;;  %v10459_v61 = vld [vmem:[%s13463_s3 + $0x730] sm:$0xff]   ;;  %v10461_v18 = vld [vmem:[%s13463_s3 + $0x4a8] sm:$0xff]  }
 0x3dc   :  { %v8845_v25 = vpop.f32.mrb[71].mxu1  ;;  %9713 = vmatprep.subr.bf16.mxu1 %v10455_v59 }
 0x3dd   :  { %9196 = vmatpush3.bf16.msra.mxu0 %v10454_v15  ;;  %v12328_v45 = vadd.f32 %v8845_v25, %v8844_v41  ;;  %v10460_v25 = vld [vmem:[%s13463_s3 + $0x6f0] sm:$0xff]  }
 0x3de   :  { %9197 = vmatprep.subr.bf16.mxu0 %v10456_v49 }
 0x3df   :  { %9714 = vmatpush3.bf16.msra.mxu1 %v10455_v59  ;;  %v12336_v23 = vpop.f32.mrb[124].mxu0  ;;  %v10462_v59 = vld [vmem:[%s13463_s3 + $0x7a4] sm:$0xff]  }
 0x3e0   :  { %13585 = vst [vmem:[#allocation44_spill] sm:$0xff] %v12336_v23  ;;  %9715 = vmatprep.subr.bf16.mxu1 %v10458_v14  ;;  %v12341_v15 = vpop.f32.mrb[125].mxu0 }
 0x3e1   :  { %9198 = vmatpush3.bf16.msra.mxu0 %v10457_v60  ;;  %v8847_v49 = vpop.f32.mrb[72].mxu1  ;;  %v12346_v41 = vpop.f32.mrb[126].mxu0 }
 0x3e2   :  { %9199 = vmatprep.subr.bf16.mxu0 %v10459_v61  ;;  %v8848_v51 = vpop.f32.mrb[73].mxu1  ;;  %v12353_v42 = vpop.f32.mrb[127].mxu0  ;;  %v10464_v61 = vld [vmem:[%s13463_s3 + $0x4b0] ss:$0 sps:$4 sm:$0x11]  }
 0x3e3   :  { %9716 = vmatpush3.bf16.msra.mxu1 %v10458_v14  ;;  %v12355_v60 = vadd.f32 %v8848_v51, %v8847_v49  ;;  %v8850_v3 = vpop.f32.mrb[74].mxu1  ;;  %v1312_v10 = vpack.c.bf16 %v12353_v42, %v12341_v15  ;;  %v10465_v51 = vld [vmem:[%s13463_s3 + $0x7ac] sm:$0xff]   ;;  %v13586_v49 = vpack.c.bf16 %v11988_v28, %v11972_v1  ;;  %v10468_v28 = vld [vmem:[%s13463_s3 + $0x7b4] sm:$0xff]   ;;  %v10581_v42 = vld [vmem:[%s13463_s3 + $0xa7c] sm:$0xff]  }
 0x3e4   :  { %9717 = vmatprep.subr.bf16.mxu1 %v10461_v18  ;;  %v8851_v22 = vpop.f32.mrb[75].mxu1  ;;  %v10583_v15 = vld [vmem:[%s13463_s3 + $0x804] sm:$0xff]  }
 0x3e5   :  { %9200 = vmatpush3.bf16.msra.mxu0 %v10460_v25  ;;  %v12365_v23 = vadd.f32 %v8851_v22, %v8850_v3  ;;  %v3193_v25 = vsel %vm1539_vm9, %v10464_v61, 0  ;;  %v10467_v22 = vld [vmem:[%s13463_s3 + $0x534] sm:$0xff]  }
 0x3e6   :  { %9221 = vmatprep.subr.bf16.mxu0 %v10462_v59  ;;  %v13587_v59 = vpack.c.bf16 %v12025_v48, %v12013_v6  ;;  %v10470_v6 = vld [vmem:[%s13463_s3 + $0x53c] sm:$0xff]   ;;  %v10469_v48 = vld [vmem:[%s13463_s3 + $0x774] sm:$0xff]  }
 0x3e7   :  { %9718 = vmatpush3.bf16.msra.mxu1 %v10461_v18  ;;  %v12370_v14 = vpop.f32.mrb[128].mxu0  ;;  %v10466_v18 = vld [vmem:[%s13463_s3 + $0x76c] sm:$0xff]  }
 0x3e8   :  { %4364 = vmatmul.mubr.bf16.vlgmr.msra.gmra.mrb[180].mxu0 %v13586_v49  ;;  %10191 = vmatprep.subr.msk.bf16.mxu1 %vm1539_vm9, %v10464_v61  ;;  %v12380_v3 = vpop.f32.mrb[129].mxu0 }
 0x3e9   :  { %9222 = vmatpush3.bf16.msra.mxu0 %v10463_v50  ;;  %4371 = vmatprep.mubr.bf16.mxu0 %v13587_v59  ;;  %v12388_v1 = vpop.f32.mrb[130].mxu0  ;;  %v13589_v59 = vpack.c.bf16 %v11422_v2, %v11410_v46  ;;  %v10474_v2 = vld [vmem:[%s13463_s3 + $0x7c4] sm:$0xff]   ;;  %v10476_v46 = vld [vmem:[%s13463_s3 + $0x54c] sm:$0xff]  }
 0x3ea   :  { %9223 = vmatprep.subr.bf16.mxu0 %v10465_v51  ;;  %v1314_v61 = vpack.c.bf16 %v12388_v1, %v12370_v14  ;;  %v12395_v49 = vpop.f32.mrb[131].mxu0  ;;  %v13588_v51 = vpack.c.bf16 %v11376_v31, %v11372_v57  ;;  %v13590_v57 = vpack.c.bf16 %v12018_v11, %v12008_v37  ;;  %v10472_v31 = vld [vmem:[%s13463_s3 + $0x77c] sm:$0xff]   ;;  %v10475_v37 = vld [vmem:[%s13463_s3 + $0x784] sm:$0xff]   ;;  %v10478_v11 = vld [vmem:[%s13463_s3 + $0x78c] sm:$0xff]  }
 0x3eb   :  { %9720 = vmatpush3.bf16.msra.mxu1 %v3193_v25  ;;  %v1315_v50 = vpack.c.bf16 %v12395_v49, %v12380_v3  ;;  %v10471_v25 = vld [vmem:[%s13463_s3 + $0x7bc] sm:$0xff]   ;;  %v10594_v3 = vld [vmem:[%s13463_s3 + $0x8b8] ss:$0 sps:$4 sm:$0x11]  }
 0x3ec   :  { %9725 = vmatprep.subr.bf16.mxu1 %v10467_v22  ;;  %v4897_v49 = vsel %vm1539_vm9, %v10594_v3, 0  ;;  %v10595_v14 = vld [vmem:[%s13463_s3 + $0x93c] sm:$0xff]  }
 0x3ed   :  { %9224 = vmatpush3.bf16.msra.mxu0 %v10466_v18  ;;  %v10473_v18 = vld [vmem:[%s13463_s3 + $0x544] sm:$0xff]  }
 0x3ee   :  { %9722 = vmatmul.mubr.msk.bf16.vlgmr.msra.gmra.mrb[76].mxu1 %vm158_vm2, %v13588_v51  ;;  %9225 = vmatprep.subr.bf16.mxu0 %v10468_v28 }
 0x3ef   :  { %9726 = vmatpush3.bf16.msra.mxu1 %v10467_v22  ;;  %9737 = vmatprep.mubr.msk.bf16.mxu1 %vm158_vm2, %v13589_v59  ;;  %v13591_v22 = vpack.c.bf16 %v12057_v36, %v12045_v62  ;;  %v10477_v36 = vld [vmem:[%s13463_s3 + $0x7cc] sm:$0xff]   ;;  %v10479_v62 = vld [vmem:[%s13463_s3 + $0x554] sm:$0xff]   ;;  %v10482_v59 = vld [vmem:[%s13463_s3 + $0x55c] ss:$0 sps:$4 sm:$0x11]  }
 0x3f0   :  { %9727 = vmatprep.subr.bf16.mxu1 %v10470_v6  ;;  %4372 = vmatmul.mubr.bf16.gmra.mrb[184].mxu0 %v13590_v57  ;;  %v10481_v57 = vld [vmem:[%s13463_s3 + $0x794] sm:$0xff]  }
 0x3f1   :  { %9226 = vmatpush3.bf16.msra.mxu0 %v10469_v48  ;;  %4647 = vmatprep.mubr.bf16.mxu0 %v13591_v22  ;;  %v10483_v22 = vld [vmem:[%s13463_s3 + $0x7dc] sm:$0xff]  }
 0x3f2   :  { %9227 = vmatprep.subr.bf16.mxu0 %v10471_v25 }
 0x3f3   :  { %9728 = vmatpush3.bf16.msra.mxu1 %v10470_v6  ;;  %v10480_v6 = vld [vmem:[%s13463_s3 + $0x7d4] sm:$0xff]  }
 0x3f4   :  { %9729 = vmatprep.subr.bf16.mxu1 %v10473_v18 }
 0x3f5   :  { %9228 = vmatpush3.bf16.msra.mxu0 %v10472_v31 }
 0x3f6   :  { %9229 = vmatprep.subr.bf16.mxu0 %v10474_v2  ;;  %v3477_v2 = vsel %vm1539_vm9, %v10482_v59, 0 }
 0x3f7   :  { %9730 = vmatpush3.bf16.msra.mxu1 %v10473_v18 }
 0x3f8   :  { %9731 = vmatprep.subr.bf16.mxu1 %v10476_v46 }
 0x3f9   :  { %9230 = vmatpush3.bf16.msra.mxu0 %v10475_v37  ;;  %v8949_v28 = vpop.f32.mrb[132].mxu0  ;;  %v10484_v37 = vld [vmem:[%s13463_s3 + $0x79c] sm:$0xff]  }
 0x3fa   :  { %9231 = vmatprep.subr.bf16.mxu0 %v10477_v36  ;;  %v8950_v48 = vpop.f32.mrb[133].mxu0 }
 0x3fb   :  { %9732 = vmatpush3.bf16.msra.mxu1 %v10476_v46  ;;  %v12449_v51 = vadd.f32 %v8950_v48, %v8949_v28  ;;  %v8952_v25 = vpop.f32.mrb[134].mxu0  ;;  %v10485_v46 = vld [vmem:[%s13463_s3 + $0x5e0] sm:$0xff]   ;;  %v10488_v48 = vld [vmem:[%s13463_s3 + $0x5e8] sm:$0xff]  }
 0x3fc   :  { %9733 = vmatprep.subr.bf16.mxu1 %v10479_v62  ;;  %v8953_v18 = vpop.f32.mrb[135].mxu0 }
 0x3fd   :  { %9232 = vmatpush3.bf16.msra.mxu0 %v10478_v11  ;;  %v12457_v31 = vadd.f32 %v8953_v18, %v8952_v25  ;;  %v10486_v11 = vld [vmem:[%s13463_s3 + $0x850] sm:$0xff]  }
 0x3fe   :  { %9233 = vmatprep.subr.bf16.mxu0 %v10480_v6 }
 0x3ff   :  { %9734 = vmatpush3.bf16.msra.mxu1 %v10479_v62 }
 0x400   :  { %10192 = vmatprep.subr.msk.bf16.mxu1 %vm1539_vm9, %v10482_v59  ;;  %v10487_v59 = vld [vmem:[%s13463_s3 + $0x810] sm:$0xff]  }
 0x401   :  { %9234 = vmatpush3.bf16.msra.mxu0 %v10481_v57  ;;  %v8955_v36 = vpop.f32.mrb[136].mxu0  ;;  %v13592_v57 = vpack.c.bf16 %v11412_v19, %v11408_v38  ;;  %v10491_v19 = vld [vmem:[%s13463_s3 + $0x5f0] sm:$0xff]   ;;  %v10490_v38 = vld [vmem:[%s13463_s3 + $0x818] sm:$0xff]  }
 0x402   :  { %9235 = vmatprep.subr.bf16.mxu0 %v10483_v22  ;;  %v8956_v62 = vpop.f32.mrb[137].mxu0  ;;  %v10489_v22 = vld [vmem:[%s13463_s3 + $0x858] sm:$0xff]  }
 0x403   :  { %9736 = vmatpush3.bf16.msra.mxu1 %v3477_v2  ;;  %v12473_v28 = vadd.f32 %v8956_v62, %v8955_v36  ;;  %v8958_v6 = vpop.f32.mrb[138].mxu0  ;;  %v13593_v2 = vpack.c.bf16 %v11464_v27, %v11450_v16  ;;  %v10492_v27 = vld [vmem:[%s13463_s3 + $0x860] sm:$0xff]   ;;  %v10494_v16 = vld [vmem:[%s13463_s3 + $0x5f8] sm:$0xff]   ;;  %v13597_v62 = vpack.c.bf16 %v12137_v39, %v12122_v33  ;;  %v10499_v39 = vld [vmem:[%s13463_s3 + $0x830] sm:$0xff]  }
 0x404   :  { %9741 = vmatprep.subr.bf16.mxu1 %v10485_v46  ;;  %v8959_v25 = vpop.f32.mrb[139].mxu0 }
 0x405   :  { %9236 = vmatpush3.bf16.msra.mxu0 %v10484_v37  ;;  %v12481_v18 = vadd.f32 %v8959_v25, %v8958_v6  ;;  %v13594_v37 = vpack.c.bf16 %v12050_v0, %v12038_v47  ;;  %v10493_v0 = vld [vmem:[%s13463_s3 + $0x820] sm:$0xff]   ;;  %v10495_v47 = vld [vmem:[%s13463_s3 + $0x868] sm:$0xff]  }
 0x406   :  { %9738 = vmatmul.mubr.msk.bf16.vlgmr.msra.gmra.mrb[76].mxu1 %vm158_vm2, %v13592_v57  ;;  %9257 = vmatprep.subr.bf16.mxu0 %v10486_v11  ;;  %v10496_v11 = vld [vmem:[%s13463_s3 + $0x828] sm:$0xff]  }
 0x407   :  { %9742 = vmatpush3.bf16.msra.mxu1 %v10485_v46  ;;  %9753 = vmatprep.mubr.msk.bf16.mxu1 %vm158_vm2, %v13593_v2  ;;  %v13595_v46 = vpack.c.bf16 %v12101_v13, %v12086_v17  ;;  %v13596_v17 = vpack.c.bf16 %v12094_v34, %v12078_v56  ;;  %v10497_v13 = vld [vmem:[%s13463_s3 + $0x600] sm:$0xff]   ;;  %v10498_v56 = vld [vmem:[%s13463_s3 + $0x870] sm:$0xff]  }
 0x408   :  { %4648 = vmatmul.mubr.bf16.vlgmr.msra.gmra.mrb[188].mxu0 %v13594_v37  ;;  %9743 = vmatprep.subr.bf16.mxu1 %v10488_v48  ;;  %v10503_v37 = vld [vmem:[%s13463_s3 + $0x64c] sm:$0xff]  }
 0x409   :  { %9258 = vmatpush3.bf16.msra.mxu0 %v10487_v59  ;;  %4655 = vmatprep.mubr.bf16.mxu0 %v13595_v46  ;;  %v10500_v59 = vld [vmem:[%s13463_s3 + $0x608] ss:$0 sps:$4 sm:$0x11]  }
 0x40a   :  { %9259 = vmatprep.subr.bf16.mxu0 %v10489_v22  ;;  %v10501_v22 = vld [vmem:[%s13463_s3 + $0x878] sm:$0xff]  }
 0x40b   :  { %9744 = vmatpush3.bf16.msra.mxu1 %v10488_v48 }
 0x40c   :  { %9745 = vmatprep.subr.bf16.mxu1 %v10491_v19 }
 0x40d   :  { %9260 = vmatpush3.bf16.msra.mxu0 %v10490_v38  ;;  %v10502_v38 = vld [vmem:[%s13463_s3 + $0x838] sm:$0xff]  }
 0x40e   :  { %9261 = vmatprep.subr.bf16.mxu0 %v10492_v27 }
 0x40f   :  { %9746 = vmatpush3.bf16.msra.mxu1 %v10491_v19 }
 0x410   :  { %4656 = vmatmul.mubr.bf16.gmra.mrb[192].mxu0 %v13596_v17  ;;  %9747 = vmatprep.subr.bf16.mxu1 %v10494_v16 }
 0x411   :  { %9262 = vmatpush3.bf16.msra.mxu0 %v10493_v0  ;;  %v8877_v36 = vpop.f32.mrb[80].mxu1  ;;  %4931 = vmatprep.mubr.bf16.mxu0 %v13597_v62  ;;  %v10505_v0 = vld [vmem:[%s13463_s3 + $0x60c] sm:$0xff]  }
 0x412   :  { %v8878_v6 = vpop.f32.mrb[81].mxu1  ;;  %9263 = vmatprep.subr.bf16.mxu0 %v10495_v47 }
 0x413   :  { %v8879_v34 = vadd.f32 %v8878_v6, %v8877_v36  ;;  %v8880_v48 = vpop.f32.mrb[82].mxu1  ;;  %9748 = vmatpush3.bf16.msra.mxu1 %v10494_v16  ;;  %v10506_v6 = vld [vmem:[%s13463_s3 + $0x840] sm:$0xff]  }
 0x414   :  { %v8881_v25 = vpop.f32.mrb[83].mxu1  ;;  %9749 = vmatprep.subr.bf16.mxu1 %v10497_v13 }
 0x415   :  { %v12537_v57 = vadd.f32 %v8879_v34, %v12321_v5  ;;  %9264 = vmatpush3.bf16.msra.mxu0 %v10496_v11  ;;  %v8882_v33 = vadd.f32 %v8881_v25, %v8880_v48  ;;  %v3761_v5 = vsel %vm1539_vm9, %v10500_v59, 0  ;;  %v13598_v48 = vld [vmem:[#allocation6_spill] sm:$0xff] }
 0x416   :  { %9265 = vmatprep.subr.bf16.mxu0 %v10498_v56  ;;  %v13599_v25 = vpack.c.bf16 %v11454_v54, %v13598_v48  ;;  %v10509_v54 = vld [vmem:[%s13463_s3 + $0x614] sm:$0xff]  }
 0x417   :  { %v12546_v2 = vadd.f32 %v8882_v33, %v12328_v45  ;;  %9750 = vmatpush3.bf16.msra.mxu1 %v10497_v13  ;;  %v10504_v45 = vld [vmem:[%s13463_s3 + $0x880] sm:$0xff]   ;;  %v10507_v13 = vld [vmem:[%s13463_s3 + $0x654] sm:$0xff]  }
 0x418   :  { %10193 = vmatprep.subr.msk.bf16.mxu1 %vm1539_vm9, %v10500_v59  ;;  %v10525_v48 = vld [vmem:[%s13463_s3 + $0x634] sm:$0xff]  }
 0x419   :  { %9266 = vmatpush3.bf16.msra.mxu0 %v10499_v39  ;;  %v8883_v19 = vpop.f32.mrb[84].mxu1  ;;  %v13600_v39 = vpack.c.bf16 %v11913_v55, %v11901_v53  ;;  %v10512_v53 = vld [vmem:[%s13463_s3 + $0x8fc] sm:$0xff]  }
 0x41a   :  { %v8884_v46 = vpop.f32.mrb[85].mxu1  ;;  %9267 = vmatprep.subr.bf16.mxu0 %v10501_v22  ;;  %v10513_v55 = vld [vmem:[%s13463_s3 + $0x61c] sm:$0xff]  }
 0x41b   :  { %v8885_v27 = vadd.f32 %v8884_v46, %v8883_v19  ;;  %v8886_v16 = vpop.f32.mrb[86].mxu1  ;;  %9752 = vmatpush3.bf16.msra.mxu1 %v3761_v5  ;;  %v8985_v47 = vpop.f32.mrb[140].mxu0  ;;  %v10511_v5 = vld [vmem:[%s13463_s3 + $0x65c] sm:$0xff]   ;;  %v10515_v19 = vld [vmem:[%s13463_s3 + $0x664] sm:$0xff]  }
 0x41c   :  { %v8887_v17 = vpop.f32.mrb[87].mxu1  ;;  %9149 = vmatprep.subr.bf16.mxu1 %v10503_v37  ;;  %v8986_v36 = vpop.f32.mrb[141].mxu0  ;;  %v10514_v46 = vld [vmem:[%s13463_s3 + $0x8bc] sm:$0xff]  }
 0x41d   :  { %v12566_v11 = vadd.f32 %v8885_v27, %v12355_v60  ;;  %9268 = vmatpush3.bf16.msra.mxu0 %v10502_v38  ;;  %v8888_v62 = vadd.f32 %v8887_v17, %v8886_v16  ;;  %v12571_v56 = vadd.f32 %v8986_v36, %v8985_v47  ;;  %v8988_v34 = vpop.f32.mrb[142].mxu0  ;;  %v10508_v60 = vld [vmem:[%s13463_s3 + $0x888] sm:$0xff]  }
 0x41e   :  { %9754 = vmatmul.mubr.msk.bf16.vlgmr.msra.gmra.mrb[76].mxu1 %vm158_vm2, %v13599_v25  ;;  %9269 = vmatprep.subr.bf16.mxu0 %v10504_v45  ;;  %v8989_v59 = vpop.f32.mrb[143].mxu0  ;;  %v10516_v16 = vld [vmem:[%s13463_s3 + $0x904] sm:$0xff]   ;;  %v10519_v36 = vld [vmem:[%s13463_s3 + $0x66c] sm:$0xff]   ;;  %v13603_v25 = vpack.c.bf16 %v12162_v52, %v12150_v12  ;;  %v10528_v52 = vld [vmem:[%s13463_s3 + $0x91c] sm:$0xff]  }
 0x41f   :  { %v12581_v33 = vadd.f32 %v8888_v62, %v12365_v23  ;;  %9150 = vmatpush3.bf16.msra.mxu1 %v10505_v0  ;;  %4079 = vmatprep.mubr.bf16.mxu1 %v13600_v39  ;;  %v12589_v22 = vadd.f32 %v8989_v59, %v8988_v34  ;;  %v10510_v23 = vld [vmem:[%s13463_s3 + $0x848] sm:$0xff]   ;;  %v13602_v62 = vpack.c.bf16 %v12169_v32, %v12157_v9  ;;  %v10523_v32 = vld [vmem:[%s13463_s3 + $0x674] sm:$0xff]   ;;  %v10529_v12 = vld [vmem:[%s13463_s3 + $0x63c] sm:$0xff]  }
 0x420   :  { %9151 = vmatprep.subr.bf16.mxu1 %v10507_v13  ;;  %v10517_v47 = vld [vmem:[%s13463_s3 + $0x624] sm:$0xff]   ;;  %v13601_v13 = vpack.c.bf16 %v12130_v29, %v12114_v43  ;;  %v10520_v43 = vld [vmem:[%s13463_s3 + $0x90c] sm:$0xff]   ;;  %v10524_v34 = vld [vmem:[%s13463_s3 + $0x914] sm:$0xff]   ;;  %v13604_v59 = vpack.c.bf16 %v12207_v8, %v12195_v26 }
 0x421   :  { %9270 = vmatpush3.bf16.msra.mxu0 %v10506_v6  ;;  %v10518_v6 = vld [vmem:[%s13463_s3 + $0x8c4] sm:$0xff]   ;;  %v10521_v29 = vld [vmem:[%s13463_s3 + $0x62c] sm:$0xff]   ;;  %v10526_v39 = vld [vmem:[%s13463_s3 + $0x8d4] sm:$0xff]  }
 0x422   :  { %9271 = vmatprep.subr.bf16.mxu0 %v10508_v60  ;;  %v10522_v9 = vld [vmem:[%s13463_s3 + $0x8cc] sm:$0xff]   ;;  %v10527_v60 = vld [vmem:[%s13463_s3 + $0x67c] sm:$0xff]   ;;  %v10531_v26 = vld [vmem:[%s13463_s3 + $0x684] sm:$0xff]  }
 0x423   :  { %9152 = vmatpush3.bf16.msra.mxu1 %v10509_v54  ;;  %v8991_v37 = vpop.f32.mrb[144].mxu0  ;;  %v10530_v8 = vld [vmem:[%s13463_s3 + $0x8dc] sm:$0xff]   ;;  %v10532_v54 = vld [vmem:[%s13463_s3 + $0x924] sm:$0xff]  }
 0x424   :  { %9153 = vmatprep.subr.bf16.mxu1 %v10511_v5  ;;  %v8992_v38 = vpop.f32.mrb[145].mxu0  ;;  %v10533_v5 = vld [vmem:[%s13463_s3 + $0x644] sm:$0xff]  }
 0x425   :  { %9272 = vmatpush3.bf16.msra.mxu0 %v10510_v23  ;;  %v12609_v45 = vadd.f32 %v8992_v38, %v8991_v37  ;;  %v8994_v27 = vpop.f32.mrb[146].mxu0  ;;  %v10535_v23 = vld [vmem:[%s13463_s3 + $0x68c] sm:$0xff]  }
 0x426   :  { %9293 = vmatprep.subr.bf16.mxu0 %v10512_v53  ;;  %v8995_v0 = vpop.f32.mrb[147].mxu0  ;;  %v10534_v53 = vld [vmem:[%s13463_s3 + $0x8e4] sm:$0xff]  }
 0x427   :  { %9154 = vmatpush3.bf16.msra.mxu1 %v10513_v55  ;;  %v12617_v17 = vadd.f32 %v8995_v0, %v8994_v27  ;;  %v10536_v55 = vld [vmem:[%s13463_s3 + $0x92c] sm:$0xff]   ;;  %v13605_v0 = vpack.c.bf16 %v11906_v4, %v11896_v21  ;;  %v10540_v21 = vld [vmem:[%s13463_s3 + $0x8f4] sm:$0xff]  }
 0x428   :  { %4932 = vmatmul.mubr.bf16.vlgmr.msra.gmra.mrb[196].mxu0 %v13601_v13  ;;  %9155 = vmatprep.subr.bf16.mxu1 %v10515_v19  ;;  %v10538_v19 = vld [vmem:[%s13463_s3 + $0x694] sm:$0xff]   ;;  %v10542_v4 = vld [vmem:[%s13463_s3 + $0x9a8] sm:$0xff]  }
 0x429   :  { %4939 = vmatprep.mubr.bf16.mxu0 %v13602_v62  ;;  %9294 = vmatpush3.bf16.msra.mxu0 %v10514_v46  ;;  %v10537_v46 = vld [vmem:[%s13463_s3 + $0x8ec] sm:$0xff]  }
 0x42a   :  { %9295 = vmatprep.subr.bf16.mxu0 %v10516_v16 }
 0x42b   :  { %9156 = vmatpush3.bf16.msra.mxu1 %v10517_v47  ;;  %v10539_v47 = vld [vmem:[%s13463_s3 + $0x934] sm:$0xff]  }
 0x42c   :  { %9157 = vmatprep.subr.bf16.mxu1 %v10519_v36  ;;  %v13606_v36 = vpack.c.bf16 %v11951_v44, %v11936_v58  ;;  %v10544_v44 = vld [vmem:[%s13463_s3 + $0x6a4] sm:$0xff]  }
 0x42d   :  { %9296 = vmatpush3.bf16.msra.mxu0 %v10518_v6  ;;  %v10541_v6 = vld [vmem:[%s13463_s3 + $0x69c] sm:$0xff]  }
 0x42e   :  { %9297 = vmatprep.subr.bf16.mxu0 %v10520_v43 }
 0x42f   :  { %9158 = vmatpush3.bf16.msra.mxu1 %v10521_v29  ;;  %v10543_v29 = vld [vmem:[%s13463_s3 + $0x968] sm:$0xff]  }
 0x430   :  { %4940 = vmatmul.mubr.bf16.gmra.mrb[200].mxu0 %v13603_v25  ;;  %9159 = vmatprep.subr.bf16.mxu1 %v10523_v32 }
 0x431   :  { %9298 = vmatpush3.bf16.msra.mxu0 %v10522_v9  ;;  %5215 = vmatprep.mubr.bf16.mxu0 %v13604_v59  ;;  %v13609_v59 = vld [vmem:[#allocation8_spill] sm:$0xff] }
 0x432   :  { %9299 = vmatprep.subr.bf16.mxu0 %v10524_v34  ;;  %v13607_v34 = vpack.c.bf16 %v11944_v63, %v11926_v7  ;;  %v10547_v7 = vld [vmem:[%s13463_s3 + $0x6ac] sm:$0xff]   ;;  %v13613_v63 = vpack.c.bf16 %v12243_v20, %v12228_v40  ;;  %v10550_v40 = vld [vmem:[%s13463_s3 + $0x6b4] ss:$0 sps:$4 sm:$0x11]  }
 0x433   :  { %9160 = vmatpush3.bf16.msra.mxu1 %v10525_v48  ;;  %v10545_v48 = vld [vmem:[%s13463_s3 + $0x9b0] sm:$0xff]  }
 0x434   :  { %9161 = vmatprep.subr.bf16.mxu1 %v10527_v60  ;;  %v13608_v60 = vld [vmem:[#allocation10_spill] sm:$0xff] }
 0x435   :  { %9300 = vmatpush3.bf16.msra.mxu0 %v10526_v39  ;;  %v13610_v39 = vpack.c.bf16 %v13608_v60, %v13609_v59  ;;  %v10557_v59 = vld [vmem:[%s13463_s3 + $0x9d0] sm:$0xff]  }
 0x436   :  { %9301 = vmatprep.subr.bf16.mxu0 %v10528_v52 }
 0x437   :  { %9162 = vmatpush3.bf16.msra.mxu1 %v10529_v12  ;;  %v13611_v12 = vld [vmem:[#allocation35_spill] sm:$0xff] }
 0x438   :  { %9163 = vmatprep.subr.bf16.mxu1 %v10531_v26  ;;  %v13612_v26 = vpack.c.bf16 %v12200_v24, %v13611_v12  ;;  %v10548_v24 = vld [vmem:[%s13463_s3 + $0x9b8] sm:$0xff]  }
 0x439   :  { %9302 = vmatpush3.bf16.msra.mxu0 %v10530_v8  ;;  %v13622_v12 = vld [vmem:[#allocation12_spill] sm:$0xff] }
 0x43a   :  { %9303 = vmatprep.subr.bf16.mxu0 %v10532_v54  ;;  %v10546_v54 = vld [vmem:[%s13463_s3 + $0x970] sm:$0xff]  }
 0x43b   :  { %9164 = vmatpush3.bf16.msra.mxu1 %v10533_v5  ;;  %v9021_v37 = vpop.f32.mrb[148].mxu0 }
 0x43c   :  { %9757 = vmatprep.subr.bf16.mxu1 %v10535_v23  ;;  %v9022_v38 = vpop.f32.mrb[149].mxu0 }
 0x43d   :  { %9304 = vmatpush3.bf16.msra.mxu0 %v10534_v53  ;;  %v12694_v27 = vadd.f32 %v9022_v38, %v9021_v37  ;;  %v9024_v16 = vpop.f32.mrb[150].mxu0  ;;  %v10551_v38 = vld [vmem:[%s13463_s3 + $0x9c0] sm:$0xff]  }
 0x43e   :  { %4080 = vmatmul.mubr.bf16.vlgmr.msra.gmra.mrb[96].mxu1 %v13605_v0  ;;  %9305 = vmatprep.subr.bf16.mxu0 %v10536_v55  ;;  %v9025_v13 = vpop.f32.mrb[151].mxu0  ;;  %v13614_v0 = vpack.c.bf16 %v12236_v35, %v12220_v30  ;;  %v10552_v35 = vld [vmem:[%s13463_s3 + $0x980] sm:$0xff]  }
 0x43f   :  { %4087 = vmatprep.mubr.bf16.mxu1 %v13606_v36  ;;  %9758 = vmatpush3.bf16.msra.mxu1 %v10535_v23  ;;  %v12705_v62 = vadd.f32 %v9025_v13, %v9024_v16  ;;  %v13615_v36 = vld [vmem:[#allocation39_spill] sm:$0xff] }
 0x440   :  { %9759 = vmatprep.subr.bf16.mxu1 %v10538_v19 }
 0x441   :  { %9306 = vmatpush3.bf16.msra.mxu0 %v10537_v46 }
 0x442   :  { %9307 = vmatprep.subr.bf16.mxu0 %v10539_v47  ;;  %v10553_v47 = vld [vmem:[%s13463_s3 + $0x738] sm:$0xff]  }
 0x443   :  { %9760 = vmatpush3.bf16.msra.mxu1 %v10538_v19  ;;  %v9027_v58 = vpop.f32.mrb[152].mxu0  ;;  %v10549_v19 = vld [vmem:[%s13463_s3 + $0x978] sm:$0xff]  }
 0x444   :  { %9761 = vmatprep.subr.bf16.mxu1 %v10541_v6  ;;  %v9028_v43 = vpop.f32.mrb[153].mxu0 }
 0x445   :  { %9308 = vmatpush3.bf16.msra.mxu0 %v10540_v21  ;;  %v12722_v32 = vadd.f32 %v9028_v43, %v9027_v58  ;;  %v9030_v9 = vpop.f32.mrb[154].mxu0 }
 0x446   :  { %4088 = vmatmul.mubr.bf16.gmra.mrb[100].mxu1 %v13607_v34  ;;  %9329 = vmatprep.subr.bf16.mxu0 %v10542_v4  ;;  %v9031_v25 = vpop.f32.mrb[155].mxu0  ;;  %v10554_v4 = vld [vmem:[%s13463_s3 + $0x9c8] sm:$0xff]  }
 0x447   :  { %9762 = vmatpush3.bf16.msra.mxu1 %v10541_v6  ;;  %9769 = vmatprep.mubr.msk.bf16.mxu1 %vm158_vm2, %v13610_v39  ;;  %v12734_v52 = vadd.f32 %v9031_v25, %v9030_v9  ;;  %v13618_v25 = vld [vmem:[#allocation9_spill] sm:$0xff]  ;;  %v13621_v39 = vld [vmem:[#allocation14_spill] sm:$0xff] }
 0x448   :  { %5216 = vmatmul.mubr.bf16.vlgmr.msra.gmra.mrb[204].mxu0 %v13612_v26  ;;  %9763 = vmatprep.subr.bf16.mxu1 %v10544_v44  ;;  %v13623_v26 = vpack.c.bf16 %v13621_v39, %v13622_v12  ;;  %v13636_v12 = vld [vmem:[#allocation42_spill] sm:$0xff] }
 0x449   :  { %5223 = vmatprep.mubr.bf16.mxu0 %v13613_v63  ;;  %9330 = vmatpush3.bf16.msra.mxu0 %v10543_v29  ;;  %v8913_v8 = vpop.f32.mrb[88].mxu1 }
 0x44a   :  { %v8914_v5 = vpop.f32.mrb[89].mxu1  ;;  %9331 = vmatprep.subr.bf16.mxu0 %v10545_v48 }
 0x44b   :  { %v8915_v23 = vadd.f32 %v8914_v5, %v8913_v8  ;;  %v8916_v53 = vpop.f32.mrb[90].mxu1  ;;  %9764 = vmatpush3.bf16.msra.mxu1 %v10544_v44 }
 0x44c   :  { %v8917_v55 = vpop.f32.mrb[91].mxu1  ;;  %9765 = vmatprep.subr.bf16.mxu1 %v10547_v7 }
 0x44d   :  { %v10078_v20 = vadd.f32 %v12537_v57, %v8915_v23  ;;  %9332 = vmatpush3.bf16.msra.mxu0 %v10546_v54  ;;  %v8918_v37 = vadd.f32 %v8917_v55, %v8916_v53  ;;  %v4045_v57 = vsel %vm1539_vm9, %v10550_v40, 0 }
 0x44e   :  { %9333 = vmatprep.subr.bf16.mxu0 %v10548_v24 }
 0x44f   :  { %v10079_v46 = vadd.f32 %v10078_v20, %v12449_v51  ;;  %v10110_v16 = vadd.f32 %v12546_v2, %v8918_v37  ;;  %9766 = vmatpush3.bf16.msra.mxu1 %v10547_v7  ;;  %v13616_v51 = vld [vmem:[#allocation37_spill] sm:$0xff]  ;;  %v10559_v7 = vld [vmem:[%s13463_s3 + $0x748] sm:$0xff]  }
 0x450   :  { %5224 = vmatmul.mubr.bf16.gmra.mrb[208].mxu0 %v13614_v0  ;;  %10194 = vmatprep.subr.msk.bf16.mxu1 %vm1539_vm9, %v10550_v40  ;;  %v13617_v6 = vpack.c.bf16 %v13615_v36, %v13616_v51  ;;  %v10561_v40 = vld [vmem:[%s13463_s3 + $0x998] sm:$0xff]  }
 0x451   :  { %v10111_v13 = vadd.f32 %v10110_v16, %v12457_v31  ;;  %9334 = vmatpush3.bf16.msra.mxu0 %v10549_v19  ;;  %v10080_v2 = vadd.f32 %v10079_v46, %v12571_v56  ;;  %v8919_v21 = vpop.f32.mrb[92].mxu1  ;;  %v10556_v56 = vld [vmem:[%s13463_s3 + $0x740] sm:$0xff]   ;;  %v10566_v46 = vld [vmem:[%s13463_s3 + $0xa54] sm:$0xff]  }
 0x452   :  { %5499 = vmatprep.mubr.bf16.mxu0 %v13617_v6  ;;  %v8920_v30 = vpop.f32.mrb[93].mxu1  ;;  %9335 = vmatprep.subr.bf16.mxu0 %v10551_v38  ;;  %v10564_v38 = vld [vmem:[%s13463_s3 + $0x9a0] sm:$0xff]   ;;  %v10567_v36 = vld [vmem:[%s13463_s3 + $0xa14] sm:$0xff]  }
 0x453   :  { %v10081_v31 = vadd.f32 %v10080_v2, %v12694_v27  ;;  %v8921_v58 = vadd.f32 %v8920_v30, %v8919_v21  ;;  %v10112_v44 = vadd.f32 %v10111_v13, %v12589_v22  ;;  %v8922_v43 = vpop.f32.mrb[94].mxu1  ;;  %9768 = vmatpush3.bf16.msra.mxu1 %v4045_v57  ;;  %v10555_v27 = vld [vmem:[%s13463_s3 + $0x988] sm:$0xff]   ;;  %v10568_v57 = vld [vmem:[%s13463_s3 + $0x760] ss:$0 sps:$4 sm:$0x11]   ;;  %v13625_v30 = vld [vmem:[#allocation36_spill] sm:$0xff] }
 0x454   :  { %v8923_v29 = vpop.f32.mrb[95].mxu1  ;;  %9773 = vmatprep.subr.bf16.mxu1 %v10553_v47  ;;  %v13619_v22 = vld [vmem:[#allocation7_spill] sm:$0xff]  ;;  %v10569_v6 = vld [vmem:[%s13463_s3 + $0xa5c] sm:$0xff]  }
 0x455   :  { %v10062_v9 = vadd.f32 %v12566_v11, %v8921_v58  ;;  %v10113_v34 = vadd.f32 %v10112_v44, %v12705_v62  ;;  %9336 = vmatpush3.bf16.msra.mxu0 %v10552_v35  ;;  %v8924_v48 = vadd.f32 %v8923_v29, %v8922_v43  ;;  %v13620_v60 = vpack.c.bf16 %v13618_v25, %v13619_v22  ;;  %v13624_v35 = vld [vmem:[#allocation38_spill] sm:$0xff]  ;;  %v13627_v43 = vld [vmem:[#allocation43_spill] sm:$0xff]  ;;  %v13628_v29 = vld [vmem:[#allocation41_spill] sm:$0xff] }
 0x456   :  { %9337 = vmatprep.subr.bf16.mxu0 %v10554_v4  ;;  %v13626_v4 = vpack.c.bf16 %v13624_v35, %v13625_v30  ;;  %v10571_v58 = vld [vmem:[%s13463_s3 + $0x7e4] sm:$0xff]   ;;  %v13630_v25 = vld [vmem:[#allocation13_spill] sm:$0xff] }
 0x457   :  { %9770 = vmatmul.mubr.msk.bf16.vlgmr.msra.gmra.mrb[76].mxu1 %vm158_vm2, %v13620_v60  ;;  %v10063_v11 = vadd.f32 %v10062_v9, %v12473_v28  ;;  %v10094_v62 = vadd.f32 %v12581_v33, %v8924_v48  ;;  %v10558_v28 = vld [vmem:[%s13463_s3 + $0x990] sm:$0xff]   ;;  %v10560_v33 = vld [vmem:[%s13463_s3 + $0x9d8] sm:$0xff]   ;;  %v13642_v30 = vld [vmem:[#allocation22_spill] sm:$0xff] }
 0x458   :  { %9774 = vmatpush3.bf16.msra.mxu1 %v10553_v47  ;;  %9785 = vmatprep.mubr.msk.bf16.mxu1 %vm158_vm2, %v13623_v26  ;;  %v10570_v9 = vld [vmem:[%s13463_s3 + $0xa1c] sm:$0xff]   ;;  %v10574_v48 = vld [vmem:[%s13463_s3 + $0x7ec] sm:$0xff]  }
 0x459   :  { %9775 = vmatprep.subr.bf16.mxu1 %v10556_v56  ;;  %v10095_v63 = vadd.f32 %v10094_v62, %v12481_v18  ;;  %v10064_v8 = vadd.f32 %v10063_v11, %v12609_v45  ;;  %9338 = vmatpush3.bf16.msra.mxu0 %v10555_v27  ;;  %v10562_v18 = vld [vmem:[%s13463_s3 + $0x750] sm:$0xff]   ;;  %v10573_v27 = vld [vmem:[%s13463_s3 + $0xa24] sm:$0xff]  }
 0x45a   :  { %9339 = vmatprep.subr.bf16.mxu0 %v10557_v59  ;;  %v13631_v22 = vld [vmem:[#allocation11_spill] sm:$0xff]  ;;  %v13633_v11 = vld [vmem:[#allocation18_spill] sm:$0xff]  ;;  %v13634_v62 = vld [vmem:[#allocation16_spill] sm:$0xff] }
 0x45b   :  { %v10065_v54 = vadd.f32 %v10064_v8, %v12722_v32  ;;  %v10096_v5 = vadd.f32 %v10095_v63, %v12617_v17  ;;  %v9057_v24 = vpop.f32.mrb[156].mxu0  ;;  %v10563_v17 = vld [vmem:[%s13463_s3 + $0x9e0] sm:$0xff]   ;;  %v13632_v60 = vpack.c.bf16 %v13630_v25, %v13631_v22  ;;  %v10575_v59 = vld [vmem:[%s13463_s3 + $0xa6c] sm:$0xff]   ;;  %v13635_v39 = vpack.c.bf16 %v13633_v11, %v13634_v62  ;;  %v10577_v63 = vld [vmem:[%s13463_s3 + $0x7f4] sm:$0xff]  }
 0x45c   :  { %9776 = vmatpush3.bf16.msra.mxu1 %v10556_v56  ;;  %v9058_v23 = vpop.f32.mrb[157].mxu0  ;;  %v13629_v56 = vpack.c.bf16 %v13627_v43, %v13628_v29  ;;  %v13637_v26 = vld [vmem:[#allocation40_spill] sm:$0xff]  ;;  %v10591_v29 = vld [vmem:[%s13463_s3 + $0x8a0] sm:$0xff]  }
 0x45d   :  { %9777 = vmatprep.subr.bf16.mxu1 %v10559_v7  ;;  %v10097_v45 = vadd.f32 %v10096_v5, %v12734_v52  ;;  %v9059_v53 = vadd.f32 %v9058_v23, %v9057_v24  ;;  %v9060_v55 = vpop.f32.mrb[158].mxu0  ;;  %9340 = vmatpush3.bf16.msra.mxu0 %v10558_v28  ;;  %v10565_v52 = vld [vmem:[%s13463_s3 + $0x758] sm:$0xff]   ;;  %v10576_v8 = vld [vmem:[%s13463_s3 + $0xa2c] sm:$0xff]   ;;  %v10584_v5 = vld [vmem:[%s13463_s3 + $0xa84] sm:$0xff]  }
 0x45e   :  { %v9061_v32 = vpop.f32.mrb[159].mxu0  ;;  %9341 = vmatprep.subr.bf16.mxu0 %v10560_v33  ;;  %v10578_v28 = vld [vmem:[%s13463_s3 + $0xa74] sm:$0xff]   ;;  %v10580_v33 = vld [vmem:[%s13463_s3 + $0x7fc] sm:$0xff]  }
 0x45f   :  { %v12828_v20 = vadd.f32 %v10081_v31, %v9059_v53  ;;  %v9062_v37 = vadd.f32 %v9061_v32, %v9060_v55  ;;  %v4329_v31 = vsel %vm1539_vm9, %v10568_v57, 0  ;;  %v10585_v55 = vld [vmem:[%s13463_s3 + $0xa44] sm:$0xff]   ;;  %v10587_v32 = vld [vmem:[%s13463_s3 + $0xa8c] sm:$0xff]  }
 0x460   :  { %9778 = vmatpush3.bf16.msra.mxu1 %v10559_v7  ;;  %v13638_v7 = vpack.c.bf16 %v13636_v12, %v13637_v26  ;;  %v13651_v11 = vld [vmem:[#allocation24_spill] sm:$0xff] }
 0x461   :  { %9779 = vmatprep.subr.bf16.mxu1 %v10562_v18  ;;  %v12833_v19 = vadd.f32 %v10113_v34, %v9062_v37  ;;  %9342 = vmatpush3.bf16.msra.mxu0 %v10561_v40  ;;  %v10572_v34 = vld [vmem:[%s13463_s3 + $0xa64] sm:$0xff]  }
 0x462   :  { %9343 = vmatprep.subr.bf16.mxu0 %v10563_v17 }
 0x463   :  { %v9063_v16 = vpop.f32.mrb[160].mxu0 }
 0x464   :  { %9780 = vmatpush3.bf16.msra.mxu1 %v10562_v18  ;;  %v9064_v0 = vpop.f32.mrb[161].mxu0  ;;  %v10586_v18 = vld [vmem:[%s13463_s3 + $0x80c] ss:$0 sps:$4 sm:$0x11]  }
 0x465   :  { %9781 = vmatprep.subr.bf16.mxu1 %v10565_v52  ;;  %v9065_v47 = vadd.f32 %v9064_v0, %v9063_v16  ;;  %v9066_v13 = vpop.f32.mrb[162].mxu0  ;;  %9344 = vmatpush3.bf16.msra.mxu0 %v10564_v38  ;;  %v10589_v38 = vld [vmem:[%s13463_s3 + $0x890] sm:$0xff]  }
 0x466   :  { %v9067_v51 = vpop.f32.mrb[163].mxu0  ;;  %9365 = vmatprep.subr.bf16.mxu0 %v10566_v46  ;;  %v10588_v16 = vld [vmem:[%s13463_s3 + $0xa4c] sm:$0xff]  }
 0x467   :  { %v12850_v2 = vadd.f32 %v10065_v54, %v9065_v47  ;;  %v9068_v21 = vadd.f32 %v9067_v51, %v9066_v13  ;;  %v10582_v54 = vld [vmem:[%s13463_s3 + $0xa3c] sm:$0xff]  }
 0x468   :  { %9782 = vmatpush3.bf16.msra.mxu1 %v10565_v52  ;;  %5500 = vmatmul.mubr.bf16.vlgmr.msra.gmra.mrb[212].mxu0 %v13626_v4  ;;  %v4613_v52 = vsel %vm1539_vm9, %v10586_v18, 0  ;;  %v13639_v51 = vld [vmem:[#allocation17_spill] sm:$0xff]  ;;  %v13643_v4 = vld [vmem:[#allocation20_spill] sm:$0xff] }
 0x469   :  { %10195 = vmatprep.subr.msk.bf16.mxu1 %vm1539_vm9, %v10568_v57  ;;  %v12860_v44 = vadd.f32 %v10097_v45, %v9068_v21  ;;  %5507 = vmatprep.mubr.bf16.mxu0 %v13629_v56  ;;  %v10590_v57 = vld [vmem:[%s13463_s3 + $0x898] sm:$0xff]  }
 0x46a   :  { %9366 = vmatpush3.bf16.msra.mxu0 %v10567_v36 }
 0x46b   :  { %9367 = vmatprep.subr.bf16.mxu0 %v10569_v6 }
 0x46c   :  { %9784 = vmatpush3.bf16.msra.mxu1 %v4329_v31  ;;  %v13644_v31 = vpack.c.bf16 %v13642_v30, %v13643_v4  ;;  %v10607_v4 = vld [vmem:[%s13463_s3 + $0xa94] sm:$0xff]  }
 0x46d   :  { %9789 = vmatprep.subr.bf16.mxu1 %v10571_v58 }
 0x46e   :  { %9368 = vmatpush3.bf16.msra.mxu0 %v10570_v9 }
 0x46f   :  { %9786 = vmatmul.mubr.msk.bf16.vlgmr.msra.gmra.mrb[76].mxu1 %vm158_vm2, %v13632_v60  ;;  %9369 = vmatprep.subr.bf16.mxu0 %v10572_v34 }
 0x470   :  { %9790 = vmatpush3.bf16.msra.mxu1 %v10571_v58  ;;  %9801 = vmatprep.mubr.msk.bf16.mxu1 %vm158_vm2, %v13635_v39  ;;  %v13645_v58 = vld [vmem:[#allocation44_spill] sm:$0xff] }
 0x471   :  { %5508 = vmatmul.mubr.bf16.gmra.mrb[216].mxu0 %v13638_v7  ;;  %9791 = vmatprep.subr.bf16.mxu1 %v10574_v48  ;;  %v13646_v43 = vpack.c.bf16 %v12346_v41, %v13645_v58  ;;  %v10593_v41 = vld [vmem:[%s13463_s3 + $0x8b0] sm:$0xff]   ;;  %v13659_v58 = vld [vmem:[#allocation29_spill] sm:$0xff] }
 0x472   :  { %9370 = vmatpush3.bf16.msra.mxu0 %v10573_v27  ;;  %5783 = vmatprep.mubr.bf16.mxu0 %v1312_v10  ;;  %v10579_v10 = vld [vmem:[%s13463_s3 + $0xa34] sm:$0xff]   ;;  %v13648_v27 = vld [vmem:[#allocation19_spill] sm:$0xff] }
 0x473   :  { %9371 = vmatprep.subr.bf16.mxu0 %v10575_v59  ;;  %v13650_v59 = vld [vmem:[#allocation26_spill] sm:$0xff]  ;;  %v10597_v39 = vld [vmem:[%s13463_s3 + $0x94c] sm:$0xff]  }
 0x474   :  { %9792 = vmatpush3.bf16.msra.mxu1 %v10574_v48  ;;  %v13647_v48 = vld [vmem:[#allocation21_spill] sm:$0xff]  ;;  %v13652_v62 = vpack.c.bf16 %v13650_v59, %v13651_v11 }
 0x475   :  { %9793 = vmatprep.subr.bf16.mxu1 %v10577_v63  ;;  %v13649_v25 = vpack.c.bf16 %v13647_v48, %v13648_v27 }
 0x476   :  { %9372 = vmatpush3.bf16.msra.mxu0 %v10576_v8 }
 0x477   :  { %9373 = vmatprep.subr.bf16.mxu0 %v10578_v28 }
 0x478   :  { %9794 = vmatpush3.bf16.msra.mxu1 %v10577_v63  ;;  %v10598_v63 = vld [vmem:[%s13463_s3 + $0x954] sm:$0xff]  }
 0x479   :  { %9795 = vmatprep.subr.bf16.mxu1 %v10580_v33 }
 0x47a   :  { %9374 = vmatpush3.bf16.msra.mxu0 %v10579_v10 }
 0x47b   :  { %9375 = vmatprep.subr.bf16.mxu0 %v10581_v42  ;;  %v9093_v24 = vpop.f32.mrb[164].mxu0 }
 0x47c   :  { %9796 = vmatpush3.bf16.msra.mxu1 %v10580_v33  ;;  %v9094_v23 = vpop.f32.mrb[165].mxu0 }
 0x47d   :  { %9797 = vmatprep.subr.bf16.mxu1 %v10583_v15  ;;  %v9095_v45 = vadd.f32 %v9094_v23, %v9093_v24  ;;  %v9096_v53 = vpop.f32.mrb[166].mxu0  ;;  %v10601_v23 = vld [vmem:[%s13463_s3 + $0x9e8] sm:$0xff]  }
 0x47e   :  { %9376 = vmatpush3.bf16.msra.mxu0 %v10582_v54  ;;  %v9097_v40 = vpop.f32.mrb[167].mxu0 }
 0x47f   :  { %9377 = vmatprep.subr.bf16.mxu0 %v10584_v5  ;;  %v10083_v17 = vadd.f32 %v12828_v20, %v9095_v45  ;;  %v9098_v37 = vadd.f32 %v9097_v40, %v9096_v53  ;;  %v10600_v5 = vld [vmem:[%s13463_s3 + $0x964] ss:$0 sps:$4 sm:$0x11]   ;;  %v13653_v45 = vld [vmem:[#allocation25_spill] sm:$0xff]  ;;  %v13654_v53 = vld [vmem:[#allocation23_spill] sm:$0xff] }
 0x480   :  { %9798 = vmatpush3.bf16.msra.mxu1 %v10583_v15  ;;  %v10599_v15 = vld [vmem:[%s13463_s3 + $0x95c] sm:$0xff]   ;;  %v5181_v24 = vsel %vm1539_vm9, %v10600_v5, 0 }
 0x481   :  { %10196 = vmatprep.subr.msk.bf16.mxu1 %vm1539_vm9, %v10586_v18  ;;  %v10115_v46 = vadd.f32 %v12833_v19, %v9098_v37  ;;  %v13640_v19 = vld [vmem:[#allocation15_spill] sm:$0xff]  ;;  %v13656_v40 = vld [vmem:[#allocation30_spill] sm:$0xff]  ;;  %v10603_v37 = vld [vmem:[%s13463_s3 + $0x9f8] sm:$0xff]  }
 0x482   :  { %9378 = vmatpush3.bf16.msra.mxu0 %v10585_v55  ;;  %v13641_v6 = vpack.c.bf16 %v13639_v51, %v13640_v19  ;;  %v10602_v18 = vld [vmem:[%s13463_s3 + $0x9f0] sm:$0xff]   ;;  %v13655_v55 = vpack.c.bf16 %v13653_v45, %v13654_v53 }
 0x483   :  { %9379 = vmatprep.subr.bf16.mxu0 %v10587_v32  ;;  %v9099_v0 = vpop.f32.mrb[168].mxu0  ;;  %v13657_v32 = vld [vmem:[#allocation28_spill] sm:$0xff] }
 0x484   :  { %9800 = vmatpush3.bf16.msra.mxu1 %v4613_v52  ;;  %v9100_v20 = vpop.f32.mrb[169].mxu0 }
 0x485   :  { %9805 = vmatprep.subr.bf16.mxu1 %v10589_v38  ;;  %v9101_v47 = vadd.f32 %v9100_v20, %v9099_v0  ;;  %v9102_v13 = vpop.f32.mrb[170].mxu0 }
 0x486   :  { %9380 = vmatpush3.bf16.msra.mxu0 %v10588_v16  ;;  %v9103_v36 = vpop.f32.mrb[171].mxu0 }
 0x487   :  { %9802 = vmatmul.mubr.msk.bf16.vlgmr.msra.gmra.mrb[76].mxu1 %vm158_vm2, %v13641_v6  ;;  %v10067_v21 = vadd.f32 %v12850_v2, %v9101_v47  ;;  %v9104_v35 = vadd.f32 %v9103_v36, %v9102_v13  ;;  %v10592_v2 = vld [vmem:[%s13463_s3 + $0x8a8] sm:$0xff]   ;;  %v10606_v36 = vld [vmem:[%s13463_s3 + $0xa10] ss:$0 sps:$4 sm:$0x11]  }
 0x488   :  { %9806 = vmatpush3.bf16.msra.mxu1 %v10589_v38  ;;  %9817 = vmatprep.mubr.msk.bf16.mxu1 %vm158_vm2, %v13644_v31  ;;  %v10604_v38 = vld [vmem:[%s13463_s3 + $0xa00] sm:$0xff]   ;;  %v10605_v47 = vld [vmem:[%s13463_s3 + $0xa08] sm:$0xff]   ;;  %v5465_v30 = vsel %vm1539_vm9, %v10606_v36, 0 }
 0x489   :  { %5784 = vmatmul.mubr.bf16.vlgmr.msra.gmra.mrb[220].mxu0 %v13646_v43  ;;  %9807 = vmatprep.subr.bf16.mxu1 %v10590_v57  ;;  %v10099_v56 = vadd.f32 %v12860_v44, %v9104_v35  ;;  %v10608_v31 = vld [vmem:[%s13463_s3 + $0xa9c] sm:$0xff]   ;;  %v13660_v43 = vld [vmem:[#allocation27_spill] sm:$0xff] }
 0x48a   :  { %5791 = vmatprep.mubr.bf16.mxu0 %v1315_v50  ;;  %v10596_v50 = vld [vmem:[%s13463_s3 + $0x944] sm:$0xff]  }
 0x48c   :  { %9808 = vmatpush3.bf16.msra.mxu1 %v10590_v57 }
 0x48d   :  { %9809 = vmatprep.subr.bf16.mxu1 %v10591_v29 }
 0x490   :  { %9810 = vmatpush3.bf16.msra.mxu1 %v10591_v29  ;;  %v13661_v29 = vpack.c.bf16 %v13659_v58, %v13660_v43 }
 0x491   :  { %5792 = vmatmul.mubr.bf16.gmra.mrb[224].mxu0 %v1314_v61  ;;  %9811 = vmatprep.subr.bf16.mxu1 %v10592_v2 }
 0x494   :  { %9812 = vmatpush3.bf16.msra.mxu1 %v10592_v2  ;;  %v13663_v2 = vld [vmem:[#allocation32_spill] sm:$0xff] }
 0x495   :  { %9813 = vmatprep.subr.bf16.mxu1 %v10593_v41 }
 0x498   :  { %9814 = vmatpush3.bf16.msra.mxu1 %v10593_v41 }
 0x499   :  { %10197 = vmatprep.subr.msk.bf16.mxu1 %vm1539_vm9, %v10594_v3  ;;  %v10609_v3 = vld [vmem:[%s13463_s3 + $0xaa4] sm:$0xff]  }
 0x49b   :  { %v9129_v1 = vpop.f32.mrb[172].mxu0 }
 0x49c   :  { %9816 = vmatpush3.bf16.msra.mxu1 %v4897_v49  ;;  %v9130_v61 = vpop.f32.mrb[173].mxu0  ;;  %v10610_v49 = vld [vmem:[%s13463_s3 + $0xaac] sm:$0xff]  }
 0x49d   :  { %9821 = vmatprep.subr.bf16.mxu1 %v10595_v14  ;;  %v9131_v44 = vadd.f32 %v9130_v61, %v9129_v1  ;;  %v9132_v9 = vpop.f32.mrb[174].mxu0 }
 0x49e   :  { %v9133_v34 = vpop.f32.mrb[175].mxu0 }
 0x49f   :  { %9818 = vmatmul.mubr.msk.bf16.vlgmr.msra.gmra.mrb[76].mxu1 %vm158_vm2, %v13649_v25  ;;  %v12986_v22 = vadd.f32 %v10083_v17, %v9131_v44  ;;  %v9134_v60 = vadd.f32 %v9133_v34, %v9132_v9  ;;  %v13658_v17 = vpack.c.bf16 %v13656_v40, %v13657_v32 }
 0x4a0   :  { %9822 = vmatpush3.bf16.msra.mxu1 %v10595_v14  ;;  %9833 = vmatprep.mubr.msk.bf16.mxu1 %vm158_vm2, %v13652_v62  ;;  %v10611_v14 = vld [vmem:[%s13463_s3 + $0xab4] sm:$0xff]  }
 0x4a1   :  { %9823 = vmatprep.subr.bf16.mxu1 %v10596_v50  ;;  %v12995_v12 = vadd.f32 %v10115_v46, %v9134_v60 }
 0x4a3   :  { %v9135_v26 = vpop.f32.mrb[176].mxu0 }
 0x4a4   :  { %9824 = vmatpush3.bf16.msra.mxu1 %v10596_v50  ;;  %v9136_v7 = vpop.f32.mrb[177].mxu0  ;;  %v10612_v50 = vld [vmem:[%s13463_s3 + $0xabc] ss:$0 sps:$4 sm:$0x11]  }
 0x4a5   :  { %9825 = vmatprep.subr.bf16.mxu1 %v10597_v39  ;;  %v9137_v8 = vadd.f32 %v9136_v7, %v9135_v26  ;;  %v9138_v28 = vpop.f32.mrb[178].mxu0  ;;  %v5749_v27 = vsel %vm1539_vm9, %v10612_v50, 0  ;;  %v13666_v26 = vld [vmem:[#allocation31_spill] sm:$0xff] }
 0x4a6   :  { %v9139_v33 = vpop.f32.mrb[179].mxu0 }
 0x4a7   :  { %v13000_v10 = vadd.f32 %v10067_v21, %v9137_v8  ;;  %v9140_v42 = vadd.f32 %v9139_v33, %v9138_v28 }
 0x4a8   :  { %9826 = vmatpush3.bf16.msra.mxu1 %v10597_v39  ;;  %v13665_v39 = vld [vmem:[#allocation33_spill] sm:$0xff] }
 0x4a9   :  { %9827 = vmatprep.subr.bf16.mxu1 %v10598_v63  ;;  %v13005_v54 = vadd.f32 %v10099_v56, %v9140_v42  ;;  %v13662_v56 = vld [vmem:[#allocation34_spill] sm:$0xff]  ;;  %v13667_v7 = vpack.c.bf16 %v13665_v39, %v13666_v26 }
 0x4aa   :  { %v13664_v41 = vpack.c.bf16 %v13662_v56, %v13663_v2 }
 0x4ac   :  { %9828 = vmatpush3.bf16.msra.mxu1 %v10598_v63 }
 0x4ad   :  { %9829 = vmatprep.subr.bf16.mxu1 %v10599_v15 }
 0x4b0   :  { %9830 = vmatpush3.bf16.msra.mxu1 %v10599_v15 }
 0x4b1   :  { %10198 = vmatprep.subr.msk.bf16.mxu1 %vm1539_vm9, %v10600_v5 }
 0x4b4   :  { %9832 = vmatpush3.bf16.msra.mxu1 %v5181_v24 }
 0x4b5   :  { %9837 = vmatprep.subr.bf16.mxu1 %v10601_v23 }
 0x4b7   :  { %9834 = vmatmul.mubr.msk.bf16.vlgmr.msra.gmra.mrb[76].mxu1 %vm158_vm2, %v13655_v55 }
 0x4b8   :  { %9838 = vmatpush3.bf16.msra.mxu1 %v10601_v23  ;;  %9849 = vmatprep.mubr.msk.bf16.mxu1 %vm158_vm2, %v13658_v17 }
 0x4b9   :  { %9839 = vmatprep.subr.bf16.mxu1 %v10602_v18 }
 0x4bb   :  { %v9201_v52 = vpop.f32.mrb[180].mxu0 }
 0x4bc   :  { %9840 = vmatpush3.bf16.msra.mxu1 %v10602_v18  ;;  %v9202_v46 = vpop.f32.mrb[181].mxu0 }
 0x4bd   :  { %9841 = vmatprep.subr.bf16.mxu1 %v10603_v37  ;;  %v13032_v16 = vadd.f32 %v9202_v46, %v9201_v52  ;;  %v9204_v0 = vpop.f32.mrb[182].mxu0 }
 0x4be   :  { %v9205_v20 = vpop.f32.mrb[183].mxu0 }
 0x4bf   :  { %v13034_v57 = vadd.f32 %v9205_v20, %v9204_v0 }
 0x4c0   :  { %9842 = vmatpush3.bf16.msra.mxu1 %v10603_v37 }
 0x4c1   :  { %9843 = vmatprep.subr.bf16.mxu1 %v10604_v38 }
 0x4c3   :  { %v9207_v13 = vpop.f32.mrb[184].mxu0 }
 0x4c4   :  { %9844 = vmatpush3.bf16.msra.mxu1 %v10604_v38  ;;  %v9208_v51 = vpop.f32.mrb[185].mxu0 }
 0x4c5   :  { %9845 = vmatprep.subr.bf16.mxu1 %v10605_v47  ;;  %v13042_v19 = vadd.f32 %v9208_v51, %v9207_v13  ;;  %v9210_v6 = vpop.f32.mrb[186].mxu0 }
 0x4c6   :  { %v9211_v21 = vpop.f32.mrb[187].mxu0 }
 0x4c7   :  { %v13044_v35 = vadd.f32 %v9211_v21, %v9210_v6 }
 0x4c8   :  { %9846 = vmatpush3.bf16.msra.mxu1 %v10605_v47 }
 0x4c9   :  { %10199 = vmatprep.subr.msk.bf16.mxu1 %vm1539_vm9, %v10606_v36 }
 0x4cc   :  { %9848 = vmatpush3.bf16.msra.mxu1 %v5465_v30 }
 0x4cd   :  { %9853 = vmatprep.subr.bf16.mxu1 %v10607_v4 }
 0x4cf   :  { %9850 = vmatmul.mubr.msk.bf16.vlgmr.msra.gmra.mrb[76].mxu1 %vm158_vm2, %v13661_v29 }
 0x4d0   :  { %9854 = vmatpush3.bf16.msra.mxu1 %v10607_v4  ;;  %9865 = vmatprep.mubr.msk.bf16.mxu1 %vm158_vm2, %v13664_v41 }
 0x4d1   :  { %9855 = vmatprep.subr.bf16.mxu1 %v10608_v31 }
 0x4d4   :  { %9856 = vmatpush3.bf16.msra.mxu1 %v10608_v31 }
 0x4d5   :  { %9857 = vmatprep.subr.bf16.mxu1 %v10609_v3 }
 0x4d8   :  { %9858 = vmatpush3.bf16.msra.mxu1 %v10609_v3 }
 0x4d9   :  { %9859 = vmatprep.subr.bf16.mxu1 %v10610_v49 }
 0x4db   :  { %v9237_v1 = vpop.f32.mrb[188].mxu0 }
 0x4dc   :  { %9860 = vmatpush3.bf16.msra.mxu1 %v10610_v49  ;;  %v9238_v61 = vpop.f32.mrb[189].mxu0 }
 0x4dd   :  { %9861 = vmatprep.subr.bf16.mxu1 %v10611_v14  ;;  %v9239_v44 = vadd.f32 %v9238_v61, %v9237_v1  ;;  %v9240_v9 = vpop.f32.mrb[190].mxu0 }
 0x4de   :  { %v9241_v34 = vpop.f32.mrb[191].mxu0 }
 0x4df   :  { %v9242_v48 = vadd.f32 %v9241_v34, %v9240_v9 }
 0x4e0   :  { %9862 = vmatpush3.bf16.msra.mxu1 %v10611_v14 }
 0x4e1   :  { %10200 = vmatprep.subr.msk.bf16.mxu1 %vm1539_vm9, %v10612_v50 }
 0x4e3   :  { %v9243_v25 = vpop.f32.mrb[192].mxu0 }
 0x4e4   :  { %9864 = vmatpush3.bf16.msra.mxu1 %v5749_v27  ;;  %v9244_v60 = vpop.f32.mrb[193].mxu0 }
 0x4e5   :  { %v9245_v59 = vadd.f32 %v9244_v60, %v9243_v25  ;;  %v9246_v11 = vpop.f32.mrb[194].mxu0 }
 0x4e6   :  { %v9247_v62 = vpop.f32.mrb[195].mxu0 }
 0x4e7   :  { %9866 = vmatmul.mubr.msk.bf16.vlgmr.msra.gmra.mrb[76].mxu1 %vm158_vm2, %v13667_v7  ;;  %v9248_v63 = vadd.f32 %v9247_v62, %v9246_v11 }
 0x4fb   :  { %v9273_v8 = vpop.f32.mrb[196].mxu0 }
 0x4fc   :  { %v9274_v28 = vpop.f32.mrb[197].mxu0 }
 0x4fd   :  { %v9275_v33 = vadd.f32 %v9274_v28, %v9273_v8  ;;  %v9276_v42 = vpop.f32.mrb[198].mxu0 }
 0x4fe   :  { %v9277_v15 = vpop.f32.mrb[199].mxu0 }
 0x4ff   :  { %v9278_v5 = vadd.f32 %v9277_v15, %v9276_v42 }
 0x503   :  { %v9279_v24 = vpop.f32.mrb[200].mxu0 }
 0x504   :  { %v9280_v23 = vpop.f32.mrb[201].mxu0 }
 0x505   :  { %v9281_v18 = vadd.f32 %v9280_v23, %v9279_v24  ;;  %v9282_v45 = vpop.f32.mrb[202].mxu0 }
 0x506   :  { %v9283_v53 = vpop.f32.mrb[203].mxu0 }
 0x507   :  { %v9284_v55 = vadd.f32 %v9283_v53, %v9282_v45 }
 0x511   :  { %v9165_v40 = vpop.f32.mrb[96].mxu1 }
 0x512   :  { %v9166_v32 = vpop.f32.mrb[97].mxu1 }
 0x513   :  { %v9167_v17 = vadd.f32 %v9166_v32, %v9165_v40  ;;  %v9168_v37 = vpop.f32.mrb[98].mxu1 }
 0x514   :  { %v9169_v52 = vpop.f32.mrb[99].mxu1 }
 0x515   :  { %v10085_v38 = vadd.f32 %v12986_v22, %v9167_v17  ;;  %v9170_v46 = vadd.f32 %v9169_v52, %v9168_v37 }
 0x517   :  { %v10086_v0 = vadd.f32 %v10085_v38, %v13032_v16  ;;  %v10117_v20 = vadd.f32 %v12995_v12, %v9170_v46 }
 0x519   :  { %v10118_v47 = vadd.f32 %v10117_v20, %v13034_v57  ;;  %v9171_v13 = vpop.f32.mrb[100].mxu1  ;;  %v10087_v36 = vadd.f32 %v10086_v0, %v9239_v44 }
 0x51a   :  { %v9172_v51 = vpop.f32.mrb[101].mxu1 }
 0x51b   :  { %v9309_v6 = vpop.f32.mrb[204].mxu0  ;;  %v9173_v21 = vadd.f32 %v9172_v51, %v9171_v13  ;;  %v10088_v30 = vadd.f32 %v10087_v36, %v9275_v33  ;;  %v9174_v4 = vpop.f32.mrb[102].mxu1  ;;  %v10119_v31 = vadd.f32 %v10118_v47, %v9242_v48 }
 0x51c   :  { %v9310_v58 = vpop.f32.mrb[205].mxu0  ;;  %v9175_v43 = vpop.f32.mrb[103].mxu1 }
 0x51d   :  { %v10069_v29 = vadd.f32 %v13000_v10, %v9173_v21  ;;  %v9311_v22 = vadd.f32 %v9310_v58, %v9309_v6  ;;  %v9312_v56 = vpop.f32.mrb[206].mxu0  ;;  %v9176_v2 = vadd.f32 %v9175_v43, %v9174_v4  ;;  %v10120_v16 = vadd.f32 %v10119_v31, %v9278_v5 }
 0x51e   :  { %v9313_v41 = vpop.f32.mrb[207].mxu0 }
 0x51f   :  { %v10070_v12 = vadd.f32 %v10069_v29, %v13042_v19  ;;  %v10089_v57 = vadd.f32 %v10088_v30, %v9311_v22  ;;  %v10101_v3 = vadd.f32 %v13005_v54, %v9176_v2  ;;  %v9314_v49 = vadd.f32 %v9313_v41, %v9312_v56 }
 0x521   :  { %v10102_v14 = vadd.f32 %v10101_v3, %v13044_v35  ;;  %v10121_v1 = vadd.f32 %v10120_v16, %v9314_v49  ;;  %v10071_v61 = vadd.f32 %v10070_v12, %v9245_v59 }
 0x523   :  { %v9315_v50 = vpop.f32.mrb[208].mxu0  ;;  %v10072_v44 = vadd.f32 %v10071_v61, %v9281_v18  ;;  %v10103_v9 = vadd.f32 %v10102_v14, %v9248_v63 }
 0x524   :  { %v9316_v34 = vpop.f32.mrb[209].mxu0 }
 0x525   :  { %v9317_v10 = vadd.f32 %v9316_v34, %v9315_v50  ;;  %v9318_v48 = vpop.f32.mrb[210].mxu0  ;;  %v10104_v27 = vadd.f32 %v10103_v9, %v9284_v55 }
 0x526   :  { %v9319_v25 = vpop.f32.mrb[211].mxu0 }
 0x527   :  { %v10073_v60 = vadd.f32 %v10072_v44, %v9317_v10  ;;  %v9320_v11 = vadd.f32 %v9319_v25, %v9318_v48 }
 0x529   :  { %v10105_v62 = vadd.f32 %v10104_v27, %v9320_v11 }
 0x53b   :  { %v9345_v19 = vpop.f32.mrb[212].mxu0 }
 0x53c   :  { %v9346_v39 = vpop.f32.mrb[213].mxu0 }
 0x53d   :  { %v9347_v26 = vadd.f32 %v9346_v39, %v9345_v19  ;;  %v9348_v54 = vpop.f32.mrb[214].mxu0 }
 0x53e   :  { %v9349_v7 = vpop.f32.mrb[215].mxu0 }
 0x53f   :  { %v10090_v8 = vadd.f32 %v10089_v57, %v9347_v26  ;;  %v9350_v35 = vadd.f32 %v9349_v7, %v9348_v54 }
 0x541   :  { %v10122_v28 = vadd.f32 %v10121_v1, %v9350_v35 }
 0x544   :  { %v9351_v59 = vpop.f32.mrb[216].mxu0 }
 0x545   :  { %v9352_v33 = vpop.f32.mrb[217].mxu0 }
 0x546   :  { %v9353_v42 = vadd.f32 %v9352_v33, %v9351_v59  ;;  %v9354_v63 = vpop.f32.mrb[218].mxu0 }
 0x547   :  { %v9355_v15 = vpop.f32.mrb[219].mxu0 }
 0x548   :  { %v10074_v5 = vadd.f32 %v10073_v60, %v9353_v42  ;;  %v9356_v24 = vadd.f32 %v9355_v15, %v9354_v63 }
 0x54a   :  { %v10106_v23 = vadd.f32 %v10105_v62, %v9356_v24  ;;  %v5900_v24 = vld [vmem:[%s13468_s8 + $0x10] sm:$0xff] }
 0x55c   :  { %v9381_v18 = vpop.f32.mrb[220].mxu0 }
 0x55d   :  { %v9382_v45 = vpop.f32.mrb[221].mxu0 }
 0x55e   :  { %v9383_v53 = vadd.f32 %v9382_v45, %v9381_v18  ;;  %v9384_v55 = vpop.f32.mrb[222].mxu0 }
 0x55f   :  { %v9385_v40 = vpop.f32.mrb[223].mxu0 }
 0x560   :  { %v9386_v32 = vadd.f32 %v9385_v40, %v9384_v55  ;;  %v10091_v17 = vadd.f32 %v10090_v8, %v9383_v53  ;;  %v5898_v55 = vld [vmem:[%s13468_s8] sm:$0xff] }
 0x562   :  { %v10123_v37 = vadd.f32 %v10122_v28, %v9386_v32 }
 0x564   :  { %v9387_v52 = vpop.f32.mrb[224].mxu0 }
 0x565   :  { %v9388_v38 = vpop.f32.mrb[225].mxu0 }
 0x566   :  { %v9389_v46 = vadd.f32 %v9388_v38, %v9387_v52  ;;  %v9390_v0 = vpop.f32.mrb[226].mxu0 }
 0x567   :  { %v9391_v20 = vpop.f32.mrb[227].mxu0 }
 0x568   :  { %v9392_v47 = vadd.f32 %v9391_v20, %v9390_v0  ;;  %v10075_v13 = vadd.f32 %v10074_v5, %v9389_v46  ;;  %v5914_v46 = vld [vmem:[%s13469_s9] sm:$0xff]  ;;  %v5901_v0 = vld [vmem:[%s13468_s8 + $0x18] sm:$0xff] }
 0x569   :  { %v10613_v20 = vld [vmem:[%s13465_s5] sm:$0xff]  }
 0x56a   :  { %v10107_v36 = vadd.f32 %v10106_v23, %v9392_v47  ;;  %v10614_v47 = vld [vmem:[%s13465_s5 + $0x1c] sm:$0xff]   ;;  %9869 = vmatprep.subr.bf16.mxu0 %v10613_v20 }
 0x56b   :  { %9881 = vmatprep.subr.bf16.mxu1 %v10614_v47  ;;  %9870 = vmatpush3.bf16.msra.mxu0 %v10613_v20  ;;  %v10634_v20 = vld [vmem:[%s13465_s5 + $0x9c] sm:$0xff]  }
 0x56c   :  { %9882 = vmatpush3.bf16.msra.mxu1 %v10614_v47  ;;  %v10635_v47 = vld [vmem:[%s13465_s5 + $0x88] ss:$0 sps:$4 sm:$0x11]  }
 0x5ba   :  { %v9867_v51 = vpop.f32.mrb[76].mxu1 }
 0x5bb   :  { %v13088_v6 = vadd.f32 %v10075_v13, %v9867_v51  ;;  %v5834_v21 = vpop.f32.mrb[77].mxu1 }
 0x5bc   :  { %v13090_v30 = vadd.f32 %v10091_v17, %v5834_v21  ;;  %v9868_v4 = vpop.f32.mrb[78].mxu1  ;;  %v5899_v17 = vld [vmem:[%s13468_s8 + $0x8] sm:$0xff] }
 0x5bd   :  { %v13092_v31 = vadd.f32 %v10107_v36, %v9868_v4  ;;  %v5837_v58 = vpop.f32.mrb[79].mxu1  ;;  %v5860_v43 = vsel %vm5853_vm10, %v13088_v6, 0.0  ;;  %v5872_v56 = vmul.f32 %v13088_v6, %v13088_v6 }
 0x5be   :  { %v13096_v29 = vadd.f32 %v10123_v37, %v5837_v58  ;;  %5861 = vadd.xlane.f32.xlu1 %v5860_v43  ;;  %v5854_v2 = vsel %vm5853_vm10, %v13090_v30, 0.0  ;;  %v5870_v12 = vmul.f32 %v13090_v30, %v13090_v30  ;;  %v5916_v58 = vld [vmem:[%s13469_s9 + $0x10] sm:$0xff]  ;;  %v5915_v43 = vld [vmem:[%s13469_s9 + $0x8] sm:$0xff] }
 0x5bf   :  { %v5880_v16 = vsel %vm5853_vm10, %v5872_v56, 0.0  ;;  %v5863_v41 = vsel %vm5853_vm10, %v13092_v31, 0.0  ;;  %v5873_v14 = vmul.f32 %v13092_v31, %v13092_v31 }
 0x5c0   :  { %v5857_v22 = vsel %vm5853_vm10, %v13096_v29, 0.0  ;;  %v5874_v57 = vsel %vm5853_vm10, %v5870_v12, 0.0  ;;  %v5871_v3 = vmul.f32 %v13096_v29, %v13096_v29  ;;  %v5917_v12 = vld [vmem:[%s13469_s9 + $0x18] sm:$0xff] }
 0x5c1   :  { %5858 = vadd.xlane.f32.xlu0 %v5857_v22  ;;  %v5883_v1 = vsel %vm5853_vm10, %v5873_v14, 0.0  ;;  %v10618_v14 = vld [vmem:[%s13465_s5 + $0x2c] sm:$0xff]  }
 0x5c2   :  { %5855 = vadd.xlane.f32.xlu1 %v5854_v2  ;;  %v5877_v49 = vsel %vm5853_vm10, %v5871_v3, 0.0 }
 0x5c5   :  { %5881 = vadd.xlane.f32.xlu0 %v5880_v16  ;;  %v10615_v16 = vld [vmem:[%s13465_s5 + $0x8] sm:$0xff]  }
 0x5c6   :  { %5864 = vadd.xlane.f32.xlu1 %v5863_v41  ;;  %v10616_v41 = vld [vmem:[%s13465_s5 + $0x24] sm:$0xff]   ;;  %9871 = vmatprep.subr.bf16.mxu0 %v10615_v16 }
 0x5c7   :  { %9883 = vmatprep.subr.bf16.mxu1 %v10616_v41  ;;  %9872 = vmatpush3.bf16.msra.mxu0 %v10615_v16  ;;  %v10644_v16 = vld [vmem:[%s13465_s5 + $0xdc] ss:$0 sps:$4 sm:$0x11]  }
 0x5c8   :  { %9884 = vmatpush3.bf16.msra.mxu1 %v10616_v41 }
 0x5c9   :  { %9885 = vmatprep.subr.bf16.mxu1 %v10618_v14 }
 0x5ca   :  { %5875 = vadd.xlane.f32.xlu1 %v5874_v57  ;;  %v7322_v57 = vld [vmem:[#allocation2] sm:$0x1] }
 0x5cc   :  { %9886 = vmatpush3.bf16.msra.mxu1 %v10618_v14  ;;  %v10648_v14 = vld [vmem:[%s13465_s5 + $0x104] sm:$0xff]  }
 0x5ce   :  { %5878 = vadd.xlane.f32.xlu1 %v5877_v49  ;;  %v10617_v49 = vld [vmem:[%s13465_s5 + $0x10] sm:$0xff]  }
 0x5cf   :  { %9873 = vmatprep.subr.bf16.mxu0 %v10617_v49 }
 0x5d0   :  { %9874 = vmatpush3.bf16.msra.mxu0 %v10617_v49  ;;  %v10647_v49 = vld [vmem:[%s13465_s5 + $0xe8] sm:$0xff]  }
 0x5d2   :  { %5884 = vadd.xlane.f32.xlu1 %v5883_v1  ;;  %v10619_v1 = vld [vmem:[%s13465_s5 + $0x18] ss:$0 sps:$4 sm:$0x11]  }
 0x5d3   :  { %10201 = vmatprep.subr.msk.bf16.mxu0 %vm1539_vm9, %v10619_v1 }
 0x64b   :  { %v5862_v61 = vpop.xlane.xlu1 %5861 }
 0x64c   :  { %v5868_v44 = vmul.f32 0.02, %v5862_v61  ;;  %v10620_v61 = vld [vmem:[%s13465_s5 + $0x34] ss:$0 sps:$4 sm:$0x11]  }
 0x64d   :  { %10202 = vmatprep.subr.msk.bf16.mxu1 %vm1539_vm9, %v10620_v61 }
 0x64e   :  { %v5859_v50 = vpop.xlane.xlu0 %5858  ;;  %v5892_v10 = vmul.f32 %v5868_v44, %v5868_v44 }
 0x64f   :  { %v5856_v9 = vpop.xlane.xlu1 %5855  ;;  %v5867_v19 = vmul.f32 0.02, %v5859_v50  ;;  %v6023_v50 = vsel %vm1539_vm9, %v10619_v1, 0  ;;  %v10649_v1 = vld [vmem:[%s13465_s5 + $0xf0] sm:$0xff]  }
 0x650   :  { %v5866_v25 = vmul.f32 0.02, %v5856_v9  ;;  %v10621_v9 = vld [vmem:[%s13465_s5 + $0x38] sm:$0xff]   ;;  %9876 = vmatpush3.bf16.msra.mxu0 %v6023_v50 }
 0x651   :  { %v5891_v8 = vmul.f32 %v5867_v19, %v5867_v19  ;;  %9893 = vmatprep.subr.bf16.mxu0 %v10621_v9  ;;  %v10651_v50 = vld [vmem:[%s13465_s5 + $0xf8] ss:$0 sps:$4 sm:$0x11]  }
 0x652   :  { %v5882_v34 = vpop.xlane.xlu0 %5881  ;;  %v5890_v39 = vmul.f32 %v5866_v25, %v5866_v25 }
 0x653   :  { %v5888_v48 = vmul.f32 0.02, %v5882_v34  ;;  %v5865_v27 = vpop.xlane.xlu1 %5864  ;;  %v10622_v34 = vld [vmem:[%s13465_s5 + $0x54] sm:$0xff]  }
 0x654   :  { %v5869_v35 = vmul.f32 0.02, %v5865_v27 }
 0x655   :  { %v5896_v60 = vsub.f32 %v5888_v48, %v5892_v10 }
 0x656   :  { %v5893_v63 = vmul.f32 %v5869_v35, %v5869_v35 }
 0x657   :  { %v5904_v11 = vadd.f32 1e-05, %v5896_v60  ;;  %v5876_v62 = vpop.xlane.xlu1 %5875 }
 0x658   :  { %v5886_v26 = vmul.f32 0.02, %v5876_v62 }
 0x659   :  { %10681 = vrsqrt.f32 %v5904_v11 }
 0x65a   :  { %v5894_v54 = vsub.f32 %v5886_v26, %v5890_v39 }
 0x65b   :  { %v5879_v7 = vpop.xlane.xlu1 %5878 }
 0x65c   :  { %v5902_v28 = vadd.f32 1e-05, %v5894_v54  ;;  %v5887_v59 = vmul.f32 0.02, %v5879_v7 }
 0x65e   :  { %10683 = vrsqrt.f32 %v5902_v28  ;;  %v5895_v33 = vsub.f32 %v5887_v59, %v5891_v8 }
 0x65f   :  { %v5885_v42 = vpop.xlane.xlu1 %5884 }
 0x660   :  { %v5903_v15 = vadd.f32 1e-05, %v5895_v33  ;;  %v5889_v5 = vmul.f32 0.02, %v5885_v42 }
 0x662   :  { %10685 = vrsqrt.f32 %v5903_v15  ;;  %v5897_v23 = vsub.f32 %v5889_v5, %v5893_v63 }
 0x663   :  { %v10682_v18 = vpop.eup %10681 }
 0x664   :  { %v5905_v45 = vadd.f32 1e-05, %v5897_v23  ;;  %v5912_v53 = vmul.f32 %v10682_v18, %v5900_v24  ;;  %v10623_v23 = vld [vmem:[%s13465_s5 + $0x40] sm:$0xff]  }
 0x665   :  { %v10624_v18 = vld [vmem:[%s13465_s5 + $0x5c] sm:$0xff]  }
 0x666   :  { %10687 = vrsqrt.f32 %v5905_v45  ;;  %5938 = vperm.xlu1 %10223, %v5912_v53   ;;  %v5920_v36 = vmul.f32 %v5912_v53, %v5868_v44  ;;  %v6106_v44 = vsel %vm1539_vm9, %v10620_v61, 0  ;;  %v10625_v45 = vld [vmem:[%s13465_s5 + $0x48] sm:$0xff]  }
 0x667   :  { %9888 = vmatpush3.bf16.msra.mxu1 %v6106_v44  ;;  %v10626_v53 = vld [vmem:[%s13465_s5 + $0x64] sm:$0xff]   ;;  %v10650_v61 = vld [vmem:[%s13465_s5 + $0x10c] sm:$0xff]   ;;  %v10652_v44 = vld [vmem:[%s13465_s5 + $0x114] ss:$0 sps:$4 sm:$0x11]  }
 0x668   :  { %v10684_v40 = vpop.eup %10683  ;;  %v5924_v22 = vsub.f32 %v5916_v58, %v5920_v36  ;;  %9905 = vmatprep.subr.bf16.mxu1 %v10622_v34  ;;  %v6355_v36 = vsel %vm1539_vm9, %v10635_v47, 0  ;;  %v10639_v58 = vld [vmem:[%s13465_s5 + $0xb0] sm:$0xff]  }
 0x669   :  { %v5910_v32 = vmul.f32 %v10684_v40, %v5898_v55  ;;  %v10627_v55 = vld [vmem:[%s13465_s5 + $0x50] ss:$0 sps:$4 sm:$0x11]   ;;  %v10628_v40 = vld [vmem:[%s13465_s5 + $0x6c] ss:$0 sps:$4 sm:$0x11]  }
 0x66b   :  { %5928 = vperm.xlu0 %10222, %v5910_v32   ;;  %v5918_v38 = vmul.f32 %v5910_v32, %v5866_v25  ;;  %v6189_v32 = vsel %vm1539_vm9, %v10627_v55, 0 }
 0x66c   :  { %v10686_v37 = vpop.eup %10685 }
 0x66d   :  { %v5911_v52 = vmul.f32 %v10686_v37, %v5899_v17  ;;  %v5922_v51 = vsub.f32 %v5914_v46, %v5918_v38  ;;  %v6272_v17 = vsel %vm1539_vm9, %v10628_v40, 0  ;;  %v10629_v37 = vld [vmem:[%s13465_s5 + $0x70] sm:$0xff]   ;;  %v10631_v38 = vld [vmem:[%s13465_s5 + $0x78] sm:$0xff]  }
 0x66e   :  { %v10632_v46 = vld [vmem:[%s13465_s5 + $0x94] sm:$0xff]  }
 0x66f   :  { %5933 = vperm.xlu1 %10223, %v5911_v52   ;;  %v5919_v4 = vmul.f32 %v5911_v52, %v5867_v19  ;;  %v10630_v52 = vld [vmem:[%s13465_s5 + $0x8c] sm:$0xff]  }
 0x670   :  { %v10688_v13 = vpop.eup %10687 }
 0x671   :  { %v5913_v21 = vmul.f32 %v10688_v13, %v5901_v0  ;;  %v5923_v56 = vsub.f32 %v5915_v43, %v5919_v4  ;;  %v10633_v0 = vld [vmem:[%s13465_s5 + $0x80] sm:$0xff]   ;;  %v10640_v43 = vld [vmem:[%s13465_s5 + $0xcc] sm:$0xff]  }
 0x672   :  { %v10636_v13 = vld [vmem:[%s13465_s5 + $0xa4] ss:$0 sps:$4 sm:$0x11]  }
 0x673   :  { %5952 = vperm.xlu1 %10223, %v5922_v51   ;;  %5943 = vperm.xlu0 %10222, %v5913_v21   ;;  %v5921_v2 = vmul.f32 %v5913_v21, %v5869_v35  ;;  %v10637_v51 = vld [vmem:[%s13465_s5 + $0xa8] sm:$0xff]   ;;  %v6438_v21 = vsel %vm1539_vm9, %v10636_v13, 0 }
 0x674   :  { %v10638_v4 = vld [vmem:[%s13465_s5 + $0xc4] sm:$0xff]  }
 0x675   :  { %v5925_v3 = vsub.f32 %v5917_v12, %v5921_v2  ;;  %v10643_v2 = vld [vmem:[%s13465_s5 + $0xc0] ss:$0 sps:$4 sm:$0x11]  }
 0x676   :  { %v6521_v41 = vsel %vm1539_vm9, %v10643_v2, 0  ;;  %v10645_v12 = vld [vmem:[%s13465_s5 + $0xe0] sm:$0xff]  }
 0x677   :  { %5962 = vperm.xlu1 %10223, %v5924_v22   ;;  %5957 = vperm.xlu0 %10222, %v5923_v56   ;;  %v10641_v22 = vld [vmem:[%s13465_s5 + $0xb8] sm:$0xff]  }
 0x678   :  { %v10642_v56 = vld [vmem:[%s13465_s5 + $0xd4] sm:$0xff]  }
 0x67b   :  { %7325 = vperm.xlu1 %10223, %v7322_v57   ;;  %5967 = vperm.xlu0 %10222, %v5925_v3   ;;  %v6604_v57 = vsel %vm1539_vm9, %v10644_v16, 0  ;;  %v10646_v3 = vld [vmem:[%s13465_s5 + $0xfc] sm:$0xff]  }
 0x6e5   :  { %v5939_v10 = vpop.permute.xlu1 %5938 }
 0x6e6   :  { %v5948_v19 = vmul.f32 %v13088_v6, %v5939_v10  ;;  %v6770_v10 = vsel %vm1539_vm9, %v10652_v44, 0 }
 0x6ea   :  { %v5929_v48 = vpop.permute.xlu0 %5928 }
 0x6eb   :  { %v5946_v25 = vmul.f32 %v13090_v30, %v5929_v48  ;;  %v10654_v48 = vld [vmem:[%s13465_s5 + $0x134] sm:$0xff]  }
 0x6ee   :  { %v5934_v27 = vpop.permute.xlu1 %5933 }
 0x6ef   :  { %v5947_v39 = vmul.f32 %v13096_v29, %v5934_v27  ;;  %v10655_v27 = vld [vmem:[%s13465_s5 + $0x120] sm:$0xff]  }
 0x6f2   :  { %v5944_v60 = vpop.permute.xlu0 %5943  ;;  %v5953_v11 = vpop.permute.xlu1 %5952 }
 0x6f3   :  { %v5970_v62 = vadd.f32 %v5953_v11, %v5946_v25  ;;  %v5949_v28 = vmul.f32 %v13092_v31, %v5944_v60  ;;  %v10656_v25 = vld [vmem:[%s13465_s5 + $0x13c] sm:$0xff]   ;;  %v10657_v60 = vld [vmem:[%s13465_s5 + $0x128] sm:$0xff]  }
 0x6f4   :  { %v10658_v11 = vld [vmem:[%s13465_s5 + $0x144] sm:$0xff]  }
 0x6f5   :  { %v5978_v7 = vmul.f32 0.2, %v5970_v62  ;;  %vm5974_vm11 = vcmp.ge.f32.partialorder %v5970_v62, 0.0 }
 0x6f6   :  { %v5958_v26 = vpop.permute.xlu0 %5957  ;;  %v5963_v54 = vpop.permute.xlu1 %5962 }
 0x6f7   :  { %v5971_v8 = vadd.f32 %v5958_v26, %v5947_v39  ;;  %v5972_v35 = vadd.f32 %v5963_v54, %v5948_v19  ;;  %v5982_v42 = vsel %vm5974_vm11, %v5970_v62, %v5978_v7  ;;  %v10659_v62 = vld [vmem:[%s13465_s5 + $0x130] ss:$0 sps:$4 sm:$0x11]   ;;  %v10660_v19 = vld [vmem:[%s13465_s5 + $0x14c] ss:$0 sps:$4 sm:$0x11]  }
 0x6f8   :  { %v6853_v39 = vsel %vm1539_vm9, %v10659_v62, 0  ;;  %v10661_v26 = vld [vmem:[%s13465_s5 + $0x150] sm:$0xff]   ;;  %v6936_v54 = vsel %vm1539_vm9, %v10660_v19, 0 }
 0x6f9   :  { %vm5975_vm12 = vcmp.ge.f32.partialorder %v5971_v8, 0.0  ;;  %v5979_v59 = vmul.f32 0.2, %v5971_v8  ;;  %v5980_v63 = vmul.f32 0.2, %v5972_v35  ;;  %vm5976_vm13 = vcmp.ge.f32.partialorder %v5972_v35, 0.0 }
 0x6fa   :  { %v5968_v33 = vpop.permute.xlu0 %5967  ;;  %v10662_v7 = vld [vmem:[%s13465_s5 + $0x16c] sm:$0xff]  }
 0x6fb   :  { %v5983_v30 = vsel %vm5975_vm12, %v5971_v8, %v5979_v59  ;;  %v5973_v15 = vadd.f32 %v5968_v33, %v5949_v28  ;;  %v5984_v29 = vsel %vm5976_vm13, %v5972_v35, %v5980_v63  ;;  %v10663_v8 = vld [vmem:[%s13465_s5 + $0x158] sm:$0xff]   ;;  %v10665_v28 = vld [vmem:[%s13465_s5 + $0x160] sm:$0xff]   ;;  %v10667_v33 = vld [vmem:[%s13465_s5 + $0x168] ss:$0 sps:$4 sm:$0x11]  }
 0x6fc   :  { %v13178_v5 = vpack.c.bf16 %v5983_v30, %v5982_v42  ;;  %v10664_v35 = vld [vmem:[%s13465_s5 + $0x174] sm:$0xff]   ;;  %v10666_v59 = vld [vmem:[%s13465_s5 + $0x17c] sm:$0xff]   ;;  %v10668_v42 = vld [vmem:[%s13465_s5 + $0x184] ss:$0 sps:$4 sm:$0x11]   ;;  %v7019_v30 = vsel %vm1539_vm9, %v10667_v33, 0 }
 0x6fd   :  { %vm5977_vm14 = vcmp.ge.f32.partialorder %v5973_v15, 0.0  ;;  %v5981_v6 = vmul.f32 0.2, %v5973_v15  ;;  %v10669_v63 = vld [vmem:[%s13465_s5 + $0x188] sm:$0xff]  }
 0x6fe   :  { %9877 = vmatprep.mubr.msk.bf16.mxu0 %vm5853_vm10, %v13178_v5  ;;  %9889 = vmatprep.mubr.msk.bf16.mxu1 %vm5853_vm10, %v13178_v5 }
 0x6ff   :  { %v5985_v31 = vsel %vm5977_vm14, %v5973_v15, %v5981_v6  ;;  %v7102_v15 = vsel %vm1539_vm9, %v10668_v42, 0  ;;  %v10670_v6 = vld [vmem:[%s13465_s5 + $0x1a4] sm:$0xff]  }
 0x700   :  { %v13184_v24 = vpack.c.bf16 %v5985_v31, %v5984_v29  ;;  %v10671_v29 = vld [vmem:[%s13465_s5 + $0x190] sm:$0xff]  }
 0x701   :  { %v10672_v31 = vld [vmem:[%s13465_s5 + $0x1ac] sm:$0xff]  }
 0x702   :  { %9878 = vmatmul.mubr.msk.bf16.vlgmr.msra.gmra.mrb[228].mxu0 %vm5853_vm10, %v13184_v24  ;;  %9890 = vmatmul.mubr.msk.bf16.vlgmr.msra.gmra.mrb[104].mxu1 %vm5853_vm10, %v13184_v24 }
 0x703   :  { %9894 = vmatpush3.bf16.msra.mxu0 %v10621_v9  ;;  %9906 = vmatpush3.bf16.msra.mxu1 %v10622_v34  ;;  %v6687_v9 = vsel %vm1539_vm9, %v10651_v50, 0  ;;  %v10653_v34 = vld [vmem:[%s13465_s5 + $0x118] sm:$0xff]  }
 0x704   :  { %9901 = vmatprep.mubr.msk.bf16.mxu0 %vm5853_vm10, %v13178_v5  ;;  %9913 = vmatprep.mubr.msk.bf16.mxu1 %vm5853_vm10, %v13178_v5 }
 0x705   :  { %9895 = vmatprep.subr.bf16.mxu0 %v10623_v23  ;;  %9907 = vmatprep.subr.bf16.mxu1 %v10624_v18 }
 0x707   :  { %9896 = vmatpush3.bf16.msra.mxu0 %v10623_v23  ;;  %9908 = vmatpush3.bf16.msra.mxu1 %v10624_v18  ;;  %v10673_v23 = vld [vmem:[%s13465_s5 + $0x198] sm:$0xff]  }
 0x708   :  { %9897 = vmatprep.subr.bf16.mxu0 %v10625_v45  ;;  %9909 = vmatprep.subr.bf16.mxu1 %v10626_v53  ;;  %v10674_v18 = vld [vmem:[%s13465_s5 + $0x1b4] sm:$0xff]  }
 0x70b   :  { %9898 = vmatpush3.bf16.msra.mxu0 %v10625_v45  ;;  %9910 = vmatpush3.bf16.msra.mxu1 %v10626_v53  ;;  %v10675_v45 = vld [vmem:[%s13465_s5 + $0x1a0] ss:$0 sps:$4 sm:$0x11]   ;;  %v10676_v53 = vld [vmem:[%s13465_s5 + $0x1bc] ss:$0 sps:$4 sm:$0x11]  }
 0x70c   :  { %10203 = vmatprep.subr.msk.bf16.mxu0 %vm1539_vm9, %v10627_v55  ;;  %10204 = vmatprep.subr.msk.bf16.mxu1 %vm1539_vm9, %v10628_v40  ;;  %v7268_v55 = vsel %vm1539_vm9, %v10676_v53, 0  ;;  %v7328_v40 = vlaneseq }
 0x70f   :  { %9900 = vmatpush3.bf16.msra.mxu0 %v6189_v32  ;;  %9912 = vmatpush3.bf16.msra.mxu1 %v6272_v17  ;;  %v10716_v32 = vmov 1966171168  }
 0x710   :  { %9917 = vmatprep.subr.bf16.mxu0 %v10629_v37  ;;  %9929 = vmatprep.subr.bf16.mxu1 %v10630_v52  ;;  %v7342_v17 = vunpack.c.l.s4 %v10716_v32 }
 0x712   :  { %9902 = vmatmul.mubr.msk.bf16.vlgmr.msra.gmra.mrb[232].mxu0 %vm5853_vm10, %v13184_v24  ;;  %9914 = vmatmul.mubr.msk.bf16.vlgmr.msra.gmra.mrb[108].mxu1 %vm5853_vm10, %v13184_v24 }
 0x713   :  { %9918 = vmatpush3.bf16.msra.mxu0 %v10629_v37  ;;  %9925 = vmatprep.mubr.msk.bf16.mxu0 %vm5853_vm10, %v13178_v5  ;;  %v13436_v37 = vshrl.u32 %v7328_v40, 7 }
 0x714   :  { %9930 = vmatpush3.bf16.msra.mxu1 %v10630_v52  ;;  %9937 = vmatprep.mubr.msk.bf16.mxu1 %vm5853_vm10, %v13178_v5  ;;  %v7343_v52 = vunpack.c.0.s8 %v7342_v17 }
 0x715   :  { %9919 = vmatprep.subr.bf16.mxu0 %v10631_v38  ;;  %9931 = vmatprep.subr.bf16.mxu1 %v10632_v46 }
 0x717   :  { %9920 = vmatpush3.bf16.msra.mxu0 %v10631_v38  ;;  %v8789_v38 = vld.sshfl [vmem:[%s13464_s4] sm:$0x33 pattern:$0x75316420]  ;;  %s10717_s4 = smov [#allocation3]  }
 0x718   :  { %9932 = vmatpush3.bf16.msra.mxu1 %v10632_v46  ;;  %9921 = vmatprep.subr.bf16.mxu0 %v10633_v0  ;;  %v7340_v46 = vcombine.high %v8789_v38, %v8789_v38  ;;  %s7449_s2 = sshll.u32 %s10717_s4, 4  ;;  %s7450_s2 = int_to_ptr.vmem [resolvable:$true] %s7449_s2 }
 0x719   :  { %9933 = vmatprep.subr.bf16.mxu1 %v10634_v20  ;;  %s10689_s7 = scalar_lea.vmem %s7450_s2, 16  ;;  %s10693_s14 = scalar_lea.vmem %s7450_s2, 32 }
 0x71a   :  { %p10690_p0 = scmp.ne.s32.totalorder %s7450_s2, %s10689_s7  ;;  %p10694_p1 = scmp.lt.s32.totalorder %s7450_s2, %s7450_s2 }
 0x71b   :  { %9922 = vmatpush3.bf16.msra.mxu0 %v10633_v0  ;;  %v7346_v0 = vsub.s32 %v7343_v52, %v13436_v37  ;;  %p10695_p2 = scmp.lt.s32.totalorder %s10693_s14, %s10689_s7 }
 0x71c   :  { %9934 = vmatpush3.bf16.msra.mxu1 %v10634_v20  ;;  %10205 = vmatprep.subr.msk.bf16.mxu0 %vm1539_vm9, %v10635_v47 }
 0x71d   :  { %10206 = vmatprep.subr.msk.bf16.mxu1 %vm1539_vm9, %v10636_v13  ;;  %v13442_v20 = vrot.slane %v8789_v38, %v7346_v0  ;;  %v7354_v47 = vrot.slane %v7340_v46, %v7346_v0  ;;  %p10696_p3 = por %p10695_p2, %p10694_p1 }
 0x71f   :  { %9924 = vmatpush3.bf16.msra.mxu0 %v6355_v36  ;;  %p10697_p4 = pnand %p10696_p3, %p10690_p0 }
 0x720   :  { %9936 = vmatpush3.bf16.msra.mxu1 %v6438_v21  ;;  %9941 = vmatprep.subr.bf16.mxu0 %v10637_v51 }
 0x721   :  { %9953 = vmatprep.subr.bf16.mxu1 %v10638_v4 }
 0x722   :  { %9926 = vmatmul.mubr.msk.bf16.vlgmr.msra.gmra.mrb[236].mxu0 %vm5853_vm10, %v13184_v24 }
 0x723   :  { %9938 = vmatmul.mubr.msk.bf16.vlgmr.msra.gmra.mrb[112].mxu1 %vm5853_vm10, %v13184_v24  ;;  %9942 = vmatpush3.bf16.msra.mxu0 %v10637_v51 }
 0x724   :  { %9949 = vmatprep.mubr.msk.bf16.mxu0 %vm5853_vm10, %v13178_v5  ;;  %9954 = vmatpush3.bf16.msra.mxu1 %v10638_v4 }
 0x725   :  { %9961 = vmatprep.mubr.msk.bf16.mxu1 %vm5853_vm10, %v13178_v5  ;;  %9943 = vmatprep.subr.bf16.mxu0 %v10639_v58 }
 0x726   :  { %9955 = vmatprep.subr.bf16.mxu1 %v10640_v43 }
 0x727   :  { %9944 = vmatpush3.bf16.msra.mxu0 %v10639_v58 }
 0x728   :  { %9956 = vmatpush3.bf16.msra.mxu1 %v10640_v43  ;;  %9945 = vmatprep.subr.bf16.mxu0 %v10641_v22 }
 0x729   :  { %9957 = vmatprep.subr.bf16.mxu1 %v10642_v56 }
 0x72b   :  { %9946 = vmatpush3.bf16.msra.mxu0 %v10641_v22 }
 0x72c   :  { %9958 = vmatpush3.bf16.msra.mxu1 %v10642_v56  ;;  %10207 = vmatprep.subr.msk.bf16.mxu0 %vm1539_vm9, %v10643_v2  ;;  %v7356_v2 = vcombine.high %v7354_v47, %v7354_v47 }
 0x72d   :  { %10208 = vmatprep.subr.msk.bf16.mxu1 %vm1539_vm9, %v10644_v16 }
 0x72f   :  { %9948 = vmatpush3.bf16.msra.mxu0 %v6521_v41 }
 0x730   :  { %9960 = vmatpush3.bf16.msra.mxu1 %v6604_v57  ;;  %9965 = vmatprep.subr.bf16.mxu0 %v10645_v12 }
 0x731   :  { %9977 = vmatprep.subr.bf16.mxu1 %v10646_v3 }
 0x732   :  { %9950 = vmatmul.mubr.msk.bf16.vlgmr.msra.gmra.mrb[240].mxu0 %vm5853_vm10, %v13184_v24 }
 0x733   :  { %9962 = vmatmul.mubr.msk.bf16.vlgmr.msra.gmra.mrb[116].mxu1 %vm5853_vm10, %v13184_v24  ;;  %9966 = vmatpush3.bf16.msra.mxu0 %v10645_v12 }
 0x734   :  { %9973 = vmatprep.mubr.msk.bf16.mxu0 %vm5853_vm10, %v13178_v5  ;;  %9978 = vmatpush3.bf16.msra.mxu1 %v10646_v3 }
 0x735   :  { %9985 = vmatprep.mubr.msk.bf16.mxu1 %vm5853_vm10, %v13178_v5  ;;  %9967 = vmatprep.subr.bf16.mxu0 %v10647_v49 }
 0x736   :  { %9979 = vmatprep.subr.bf16.mxu1 %v10648_v14 }
 0x737   :  { %9968 = vmatpush3.bf16.msra.mxu0 %v10647_v49 }
 0x738   :  { %9980 = vmatpush3.bf16.msra.mxu1 %v10648_v14  ;;  %9969 = vmatprep.subr.bf16.mxu0 %v10649_v1 }
 0x739   :  { %9981 = vmatprep.subr.bf16.mxu1 %v10650_v61 }
 0x73b   :  { %9970 = vmatpush3.bf16.msra.mxu0 %v10649_v1 }
 0x73c   :  { %9982 = vmatpush3.bf16.msra.mxu1 %v10650_v61  ;;  %10209 = vmatprep.subr.msk.bf16.mxu0 %vm1539_vm9, %v10651_v50 }
 0x73d   :  { %10210 = vmatprep.subr.msk.bf16.mxu1 %vm1539_vm9, %v10652_v44 }
 0x73f   :  { %9972 = vmatpush3.bf16.msra.mxu0 %v6687_v9 }
 0x740   :  { %9984 = vmatpush3.bf16.msra.mxu1 %v6770_v10  ;;  %9989 = vmatprep.subr.bf16.mxu0 %v10653_v34 }
 0x741   :  { %10001 = vmatprep.subr.bf16.mxu1 %v10654_v48 }
 0x742   :  { %9974 = vmatmul.mubr.msk.bf16.vlgmr.msra.gmra.mrb[244].mxu0 %vm5853_vm10, %v13184_v24 }
 0x743   :  { %9986 = vmatmul.mubr.msk.bf16.vlgmr.msra.gmra.mrb[120].mxu1 %vm5853_vm10, %v13184_v24  ;;  %9990 = vmatpush3.bf16.msra.mxu0 %v10653_v34 }
 0x744   :  { %9997 = vmatprep.mubr.msk.bf16.mxu0 %vm5853_vm10, %v13178_v5  ;;  %10002 = vmatpush3.bf16.msra.mxu1 %v10654_v48 }
 0x745   :  { %10009 = vmatprep.mubr.msk.bf16.mxu1 %vm5853_vm10, %v13178_v5  ;;  %9991 = vmatprep.subr.bf16.mxu0 %v10655_v27 }
 0x746   :  { %10003 = vmatprep.subr.bf16.mxu1 %v10656_v25 }
 0x747   :  { %9992 = vmatpush3.bf16.msra.mxu0 %v10655_v27 }
 0x748   :  { %10004 = vmatpush3.bf16.msra.mxu1 %v10656_v25  ;;  %9993 = vmatprep.subr.bf16.mxu0 %v10657_v60 }
 0x749   :  { %10005 = vmatprep.subr.bf16.mxu1 %v10658_v11 }
 0x74b   :  { %9994 = vmatpush3.bf16.msra.mxu0 %v10657_v60 }
 0x74c   :  { %10006 = vmatpush3.bf16.msra.mxu1 %v10658_v11  ;;  %10211 = vmatprep.subr.msk.bf16.mxu0 %vm1539_vm9, %v10659_v62 }
 0x74d   :  { %10212 = vmatprep.subr.msk.bf16.mxu1 %vm1539_vm9, %v10660_v19 }
 0x74f   :  { %9996 = vmatpush3.bf16.msra.mxu0 %v6853_v39 }
 0x750   :  { %10008 = vmatpush3.bf16.msra.mxu1 %v6936_v54  ;;  %10013 = vmatprep.subr.bf16.mxu0 %v10661_v26 }
 0x751   :  { %10025 = vmatprep.subr.bf16.mxu1 %v10662_v7 }
 0x752   :  { %9998 = vmatmul.mubr.msk.bf16.vlgmr.msra.gmra.mrb[248].mxu0 %vm5853_vm10, %v13184_v24 }
 0x753   :  { %10010 = vmatmul.mubr.msk.bf16.vlgmr.msra.gmra.mrb[124].mxu1 %vm5853_vm10, %v13184_v24  ;;  %10014 = vmatpush3.bf16.msra.mxu0 %v10661_v26 }
 0x754   :  { %10021 = vmatprep.mubr.msk.bf16.mxu0 %vm5853_vm10, %v13178_v5  ;;  %10026 = vmatpush3.bf16.msra.mxu1 %v10662_v7 }
 0x755   :  { %10033 = vmatprep.mubr.msk.bf16.mxu1 %vm5853_vm10, %v13178_v5  ;;  %10015 = vmatprep.subr.bf16.mxu0 %v10663_v8 }
 0x756   :  { %10027 = vmatprep.subr.bf16.mxu1 %v10664_v35 }
 0x757   :  { %10016 = vmatpush3.bf16.msra.mxu0 %v10663_v8 }
 0x758   :  { %10028 = vmatpush3.bf16.msra.mxu1 %v10664_v35  ;;  %10017 = vmatprep.subr.bf16.mxu0 %v10665_v28 }
 0x759   :  { %10029 = vmatprep.subr.bf16.mxu1 %v10666_v59 }
 0x75b   :  { %10018 = vmatpush3.bf16.msra.mxu0 %v10665_v28 }
 0x75c   :  { %10030 = vmatpush3.bf16.msra.mxu1 %v10666_v59  ;;  %10213 = vmatprep.subr.msk.bf16.mxu0 %vm1539_vm9, %v10667_v33 }
 0x75d   :  { %10214 = vmatprep.subr.msk.bf16.mxu1 %vm1539_vm9, %v10668_v42 }
 0x75f   :  { %10020 = vmatpush3.bf16.msra.mxu0 %v7019_v30 }
 0x760   :  { %10032 = vmatpush3.bf16.msra.mxu1 %v7102_v15  ;;  %10037 = vmatprep.subr.bf16.mxu0 %v10669_v63 }
 0x761   :  { %10049 = vmatprep.subr.bf16.mxu1 %v10670_v6 }
 0x762   :  { %10022 = vmatmul.mubr.msk.bf16.vlgmr.msra.gmra.mrb[252].mxu0 %vm5853_vm10, %v13184_v24 }
 0x763   :  { %10034 = vmatmul.mubr.msk.bf16.vlgmr.msra.gmra.mrb[128].mxu1 %vm5853_vm10, %v13184_v24  ;;  %10038 = vmatpush3.bf16.msra.mxu0 %v10669_v63 }
 0x764   :  { %10045 = vmatprep.mubr.msk.bf16.mxu0 %vm5853_vm10, %v13178_v5  ;;  %10050 = vmatpush3.bf16.msra.mxu1 %v10670_v6 }
 0x765   :  { %10057 = vmatprep.mubr.msk.bf16.mxu1 %vm5853_vm10, %v13178_v5  ;;  %10039 = vmatprep.subr.bf16.mxu0 %v10671_v29  ;;  %v7185_v5 = vsel %vm1539_vm9, %v10675_v45, 0 }
 0x766   :  { %10051 = vmatprep.subr.bf16.mxu1 %v10672_v31 }
 0x767   :  { %10040 = vmatpush3.bf16.msra.mxu0 %v10671_v29 }
 0x768   :  { %10052 = vmatpush3.bf16.msra.mxu1 %v10672_v31  ;;  %10041 = vmatprep.subr.bf16.mxu0 %v10673_v23 }
 0x769   :  { %10053 = vmatprep.subr.bf16.mxu1 %v10674_v18 }
 0x76b   :  { %10042 = vmatpush3.bf16.msra.mxu0 %v10673_v23 }
 0x76c   :  { %10054 = vmatpush3.bf16.msra.mxu1 %v10674_v18  ;;  %10215 = vmatprep.subr.msk.bf16.mxu0 %vm1539_vm9, %v10675_v45 }
 0x76d   :  { %10216 = vmatprep.subr.msk.bf16.mxu1 %vm1539_vm9, %v10676_v53 }
 0x76f   :  { %10044 = vmatpush3.bf16.msra.mxu0 %v7185_v5 }
 0x770   :  { %10056 = vmatpush3.bf16.msra.mxu1 %v7268_v55 }
 0x772   :  { %10046 = vmatmul.mubr.msk.bf16.vlgmr.msra.gmra.mrb[0].mxu0 %vm5853_vm10, %v13184_v24 }
 0x773   :  { %10058 = vmatmul.mubr.msk.bf16.vlgmr.msra.gmra.mrb[132].mxu1 %vm5853_vm10, %v13184_v24  ;;  %7393 = vmatprep.mubr.bf16.mxu0 %v7354_v47 }
 0x774   :  { %7433 = vmatprep.mubr.bf16.mxu1 %v7356_v2 }
 0x7d5   :  { %v9879_v13 = vpop.f32.mrb[228].mxu0  ;;  %v9891_v36 = vpop.f32.mrb[104].mxu1 }
 0x7d6   :  { %v6059_v24 = vpop.f32.mrb[229].mxu0  ;;  %v6142_v51 = vpop.f32.mrb[105].mxu1 }
 0x7d7   :  { %v9880_v21 = vpop.f32.mrb[230].mxu0  ;;  %v9892_v4 = vpop.f32.mrb[106].mxu1 }
 0x7d8   :  { %v6075_v58 = vpack.c.bf16 %v9880_v21, %v9879_v13  ;;  %v6158_v43 = vpack.c.bf16 %v9892_v4, %v9891_v36  ;;  %v6062_v22 = vpop.f32.mrb[231].mxu0  ;;  %v6145_v56 = vpop.f32.mrb[107].mxu1 }
 0x7d9   :  { %v6074_v16 = vpack.c.bf16 %v6062_v22, %v6059_v24  ;;  %v6157_v41 = vpack.c.bf16 %v6145_v56, %v6142_v51 }
 0x7e5   :  { %v9903_v12 = vpop.f32.mrb[232].mxu0  ;;  %v9915_v57 = vpop.f32.mrb[108].mxu1 }
 0x7e6   :  { %v6225_v3 = vpop.f32.mrb[233].mxu0  ;;  %v6308_v49 = vpop.f32.mrb[109].mxu1 }
 0x7e7   :  { %v9904_v14 = vpop.f32.mrb[234].mxu0  ;;  %v9916_v1 = vpop.f32.mrb[110].mxu1 }
 0x7e8   :  { %v6241_v61 = vpack.c.bf16 %v9904_v14, %v9903_v12  ;;  %v6324_v50 = vpack.c.bf16 %v9916_v1, %v9915_v57  ;;  %v6228_v44 = vpop.f32.mrb[235].mxu0  ;;  %v6311_v9 = vpop.f32.mrb[111].mxu1 }
 0x7e9   :  { %v6240_v34 = vpack.c.bf16 %v6228_v44, %v6225_v3  ;;  %v6323_v10 = vpack.c.bf16 %v6311_v9, %v6308_v49 }
 0x7f5   :  { %v9927_v48 = vpop.f32.mrb[236].mxu0 }
 0x7f6   :  { %v9939_v27 = vpop.f32.mrb[112].mxu1  ;;  %v6391_v25 = vpop.f32.mrb[237].mxu0 }
 0x7f7   :  { %v6474_v60 = vpop.f32.mrb[113].mxu1  ;;  %v9928_v11 = vpop.f32.mrb[238].mxu0 }
 0x7f8   :  { %v6407_v62 = vpack.c.bf16 %v9928_v11, %v9927_v48  ;;  %v9940_v19 = vpop.f32.mrb[114].mxu1  ;;  %v6394_v39 = vpop.f32.mrb[239].mxu0 }
 0x7f9   :  { %v6490_v26 = vpack.c.bf16 %v9940_v19, %v9939_v27  ;;  %v6406_v54 = vpack.c.bf16 %v6394_v39, %v6391_v25  ;;  %v6477_v7 = vpop.f32.mrb[115].mxu1 }
 0x7fa   :  { %v6489_v8 = vpack.c.bf16 %v6477_v7, %v6474_v60  ;;  %v7355_v7 = vcombine.high %v13442_v20, %v13442_v20 }
 0x7fb   :  { %9497 = vmatprep.subr.bf16.mxu0 %v6406_v54 }
 0x7fc   :  { %9498 = vmatpush3.bf16.msra.mxu0 %v6074_v16 }
 0x7fd   :  { %9499 = vmatprep.subr.bf16.mxu0 %v6407_v62 }
 0x800   :  { %9500 = vmatpush3.bf16.msra.mxu0 %v6075_v58 }
 0x801   :  { %9501 = vmatprep.subr.bf16.mxu0 %v6489_v8 }
 0x804   :  { %9502 = vmatpush3.bf16.msra.mxu0 %v6157_v41 }
 0x805   :  { %v9951_v35 = vpop.f32.mrb[240].mxu0  ;;  %9503 = vmatprep.subr.bf16.mxu0 %v6490_v26 }
 0x806   :  { %v9963_v28 = vpop.f32.mrb[116].mxu1  ;;  %v6557_v59 = vpop.f32.mrb[241].mxu0 }
 0x807   :  { %v6640_v33 = vpop.f32.mrb[117].mxu1  ;;  %v9952_v42 = vpop.f32.mrb[242].mxu0 }
 0x808   :  { %v6573_v30 = vpack.c.bf16 %v9952_v42, %v9951_v35  ;;  %v9964_v63 = vpop.f32.mrb[118].mxu1  ;;  %v6560_v15 = vpop.f32.mrb[243].mxu0  ;;  %9504 = vmatpush3.bf16.msra.mxu0 %v6158_v43  ;;  %v7330_v42 = vsub.s32 0, %v13436_v37 }
 0x809   :  { %v6656_v6 = vpack.c.bf16 %v9964_v63, %v9963_v28  ;;  %v6572_v29 = vpack.c.bf16 %v6560_v15, %v6557_v59  ;;  %v6643_v31 = vpop.f32.mrb[119].mxu1 }
 0x80a   :  { %v6655_v23 = vpack.c.bf16 %v6643_v31, %v6640_v33 }
 0x80b   :  { %9505 = vmatprep.subr.bf16.mxu0 %v6572_v29 }
 0x80c   :  { %9506 = vmatpush3.bf16.msra.mxu0 %v6240_v34 }
 0x80d   :  { %9507 = vmatprep.subr.bf16.mxu0 %v6573_v30  ;;  %v7326_v30 = vpop.permute.xlu1 %7325 }
 0x80e   :  { %v7331_v63 = vrot.slane %v7326_v30, %v7330_v42 }
 0x810   :  { %9508 = vmatpush3.bf16.msra.mxu0 %v6241_v61 }
 0x811   :  { %9509 = vmatprep.subr.bf16.mxu0 %v6655_v23 }
 0x814   :  { %9510 = vmatpush3.bf16.msra.mxu0 %v6323_v10 }
 0x815   :  { %v9975_v18 = vpop.f32.mrb[244].mxu0  ;;  %9511 = vmatprep.subr.bf16.mxu0 %v6656_v6 }
 0x816   :  { %v9987_v45 = vpop.f32.mrb[120].mxu1  ;;  %v6723_v53 = vpop.f32.mrb[245].mxu0 }
 0x817   :  { %v6806_v5 = vpop.f32.mrb[121].mxu1  ;;  %v9976_v55 = vpop.f32.mrb[246].mxu0 }
 0x818   :  { %v6739_v40 = vpack.c.bf16 %v9976_v55, %v9975_v18  ;;  %v9988_v32 = vpop.f32.mrb[122].mxu1  ;;  %v6726_v17 = vpop.f32.mrb[247].mxu0  ;;  %9512 = vmatpush3.bf16.msra.mxu0 %v6324_v50 }
 0x819   :  { %v6822_v52 = vpack.c.bf16 %v9988_v32, %v9987_v45  ;;  %v6738_v38 = vpack.c.bf16 %v6726_v17, %v6723_v53  ;;  %v6809_v46 = vpop.f32.mrb[123].mxu1 }
 0x81a   :  { %v6821_v0 = vpack.c.bf16 %v6809_v46, %v6806_v5 }
 0x81b   :  { %7394 = vmatmul.mubr.bf16.vlgmr.msra.gmra.mrb[4].mxu0 %v13442_v20 }
 0x825   :  { %v9999_v47 = vpop.f32.mrb[248].mxu0 }
 0x826   :  { %v10011_v13 = vpop.f32.mrb[124].mxu1  ;;  %v6889_v36 = vpop.f32.mrb[249].mxu0 }
 0x827   :  { %v6972_v24 = vpop.f32.mrb[125].mxu1  ;;  %v10000_v51 = vpop.f32.mrb[250].mxu0 }
 0x828   :  { %v6905_v21 = vpack.c.bf16 %v10000_v51, %v9999_v47  ;;  %v10012_v4 = vpop.f32.mrb[126].mxu1  ;;  %v6892_v58 = vpop.f32.mrb[251].mxu0 }
 0x829   :  { %v6988_v43 = vpack.c.bf16 %v10012_v4, %v10011_v13  ;;  %v6904_v22 = vpack.c.bf16 %v6892_v58, %v6889_v36  ;;  %v6975_v56 = vpop.f32.mrb[127].mxu1 }
 0x82a   :  { %v6987_v2 = vpack.c.bf16 %v6975_v56, %v6972_v24 }
 0x835   :  { %v10023_v16 = vpop.f32.mrb[252].mxu0 }
 0x836   :  { %v10035_v41 = vpop.f32.mrb[128].mxu1  ;;  %v7055_v12 = vpop.f32.mrb[253].mxu0 }
 0x837   :  { %v7138_v57 = vpop.f32.mrb[129].mxu1  ;;  %v10024_v3 = vpop.f32.mrb[254].mxu0 }
 0x838   :  { %v7071_v49 = vpack.c.bf16 %v10024_v3, %v10023_v16  ;;  %v10036_v14 = vpop.f32.mrb[130].mxu1  ;;  %v7058_v1 = vpop.f32.mrb[255].mxu0 }
 0x839   :  { %v7154_v61 = vpack.c.bf16 %v10036_v14, %v10035_v41  ;;  %v7070_v50 = vpack.c.bf16 %v7058_v1, %v7055_v12  ;;  %v7141_v44 = vpop.f32.mrb[131].mxu1 }
 0x83a   :  { %v7153_v9 = vpack.c.bf16 %v7141_v44, %v7138_v57 }
 0x83b   :  { %9519 = vmatprep.subr.bf16.mxu1 %v7070_v50 }
 0x83c   :  { %9520 = vmatpush3.bf16.msra.mxu1 %v6738_v38 }
 0x83d   :  { %9521 = vmatprep.subr.bf16.mxu1 %v7071_v49 }
 0x840   :  { %9522 = vmatpush3.bf16.msra.mxu1 %v6739_v40 }
 0x841   :  { %9523 = vmatprep.subr.bf16.mxu1 %v7153_v9 }
 0x844   :  { %9524 = vmatpush3.bf16.msra.mxu1 %v6821_v0 }
 0x845   :  { %v10047_v34 = vpop.f32.mrb[0].mxu0  ;;  %9525 = vmatprep.subr.bf16.mxu1 %v7154_v61 }
 0x846   :  { %v10059_v10 = vpop.f32.mrb[132].mxu1  ;;  %v7221_v48 = vpop.f32.mrb[1].mxu0 }
 0x847   :  { %v7304_v27 = vpop.f32.mrb[133].mxu1  ;;  %v10048_v25 = vpop.f32.mrb[2].mxu0 }
 0x848   :  { %v7237_v60 = vpack.c.bf16 %v10048_v25, %v10047_v34  ;;  %v10060_v11 = vpop.f32.mrb[134].mxu1  ;;  %v7224_v62 = vpop.f32.mrb[3].mxu0  ;;  %9526 = vmatpush3.bf16.msra.mxu1 %v6822_v52 }
 0x849   :  { %v7320_v19 = vpack.c.bf16 %v10060_v11, %v10059_v10  ;;  %v7236_v39 = vpack.c.bf16 %v7224_v62, %v7221_v48  ;;  %v7307_v26 = vpop.f32.mrb[135].mxu1 }
 0x84a   :  { %v7319_v54 = vpack.c.bf16 %v7307_v26, %v7304_v27 }
 0x84b   :  { %9527 = vmatprep.subr.bf16.mxu1 %v7236_v39 }
 0x84c   :  { %9528 = vmatpush3.bf16.msra.mxu1 %v6904_v22 }
 0x84d   :  { %9529 = vmatprep.subr.bf16.mxu1 %v7237_v60 }
 0x850   :  { %9530 = vmatpush3.bf16.msra.mxu1 %v6905_v21 }
 0x851   :  { %9531 = vmatprep.subr.bf16.mxu1 %v7319_v54 }
 0x854   :  { %9532 = vmatpush3.bf16.msra.mxu1 %v6987_v2 }
 0x855   :  { %9533 = vmatprep.subr.bf16.mxu1 %v7320_v19 }
 0x858   :  { %9534 = vmatpush3.bf16.msra.mxu1 %v6988_v43 }
 0x85b   :  { %7434 = vmatmul.mubr.bf16.vlgmr.msra.gmra.mrb[136].mxu1 %v7355_v7 }
 0x8ee   :  { %v9513_v8 = vpop.f32.mrb[4].mxu0 }
 0x8ef   :  { %v9514_v35 = vpop.f32.mrb[5].mxu0 }
 0x8f0   :  { %v9515_v28 = vadd.f32 %v9514_v35, %v9513_v8  ;;  %v9516_v59 = vpop.f32.mrb[6].mxu0 }
 0x8f1   :  { %v9517_v33 = vpop.f32.mrb[7].mxu0 }
 0x8f2   :  { %v7396_v29 = vadd.f32 %v9515_v28, %v7331_v63 }
 0x92e   :  { %v9535_v15 = vpop.f32.mrb[136].mxu1 }
 0x92f   :  { %v9536_v6 = vpop.f32.mrb[137].mxu1 }
 0x930   :  { %v9537_v31 = vadd.f32 %v9536_v6, %v9535_v15  ;;  %v9538_v23 = vpop.f32.mrb[138].mxu1 }
 0x931   :  { %v9539_v18 = vpop.f32.mrb[139].mxu1 }
 0x932   :  { %v7436_v20 = vadd.f32 %v9537_v31, %v7396_v29 }
 0x934   :  { %7442 = vst.msk [vmem:[#allocation3] sm:$0x1] %vm7441_vm15, %v7436_v20 }
 0x935   :  { %10700 = shalt.err (!%p10697_p4)
}
 0x936   :  { %s10701_s17 = scalar_lea.hbm %s13471_s11, 16 }
 0x937   :  { %p10702_p5 = scmp.ne.s32.totalorder %s13471_s11, %s10701_s17  ;;  %p10705_p6 = scmp.lt.u32.totalorder %s10701_s17, %s13471_s11 }
 0x939   :  { %p10707_p7 = pnand %p10705_p6, %p10702_p5 }
 0x93b   :  { %10710 = shalt.err (!%p10707_p7)
}
 0x93c   :  { %7452 = dma.vmem_to_hbm [thread:$0]  %s7450_s2, 16, %s13471_s11, [#allocation4]  }
 0x93d   :  { %10711 = dma.done.wait [#allocation4], 16  }
 0x93e   :  { %10712 = vsyncadd [#allocation4], 4294967280 }
 0x93f   :  { %7456 = vsyncpa [#allocation4], 1 }

</bundles_post_ra>
